<compile_context>
chip_gen: v7x
topology: tpu7x:2x2x1
jax: 0.10.0
libtpu: 0.0.40
codegen_flags: <defaults>
</compile_context>

<pallas_src>
import functools
import math

import jax
import jax.numpy as jnp
from jax import lax
from jax.experimental import pallas as pl
from jax.experimental.pallas import tpu as pltpu


# ----------------------------- in-kernel helpers -----------------------------

def _layernorm(v, g, b, eps=1e-5):
    mu = jnp.mean(v, axis=-1, keepdims=True)
    var = jnp.mean((v - mu) * (v - mu), axis=-1, keepdims=True)
    return (v - mu) * lax.rsqrt(var + eps) * g + b


# ------------------------------- Pallas kernel --------------------------------

def _mha_kernel(img_ref, tab_ref,
                img_g_ref, img_b_ref, tab_g_ref, tab_b_ref,
                wa_ref, ba_ref, wb_ref, bb_ref,
                wq_ref, wk_ref, wv_ref, wo_ref, bo_ref,
                out_ref, *, heads):
    f32 = jnp.float32
    img = img_ref[0].astype(f32)              # (N, D)
    tab = tab_ref[0].astype(f32)              # (N, D)
    N, D = img.shape
    G = wa_ref.shape[1]                       # gate hidden (256)
    cdt = wa_ref.dtype                        # matmul compute dtype (bf16)

    # ---- LayerNorms (f32 elementwise) ----
    img_n = _layernorm(img, img_g_ref[...], img_b_ref[...])
    tab_n = _layernorm(tab, tab_g_ref[...], tab_b_ref[...])
    img_c = img_n.astype(cdt)
    tab_c = tab_n.astype(cdt)

    # ---- Gated_Attention (dropout p=0 -> identity) ----
    a_lin = jnp.dot(img_c, wa_ref[...], preferred_element_type=f32) + ba_ref[...]
    b_lin = jnp.dot(tab_c, wb_ref[...], preferred_element_type=f32) + bb_ref[...]
    a_gate = jnp.tanh(a_lin)                                   # (N, G) f32
    b_gate = 1.0 / (1.0 + jnp.exp(-b_lin))                     # sigmoid, f32
    a_c = a_gate.astype(cdt)
    b_c = b_gate.astype(cdt)
    gate_A = lax.dot_general(a_c, b_c, (((1,), (1,)), ((), ())),
                             preferred_element_type=f32)       # (N, N) = a @ b^T
    gout = lax.dot_general(gate_A.astype(cdt), b_c, (((1,), (0,)), ((), ())),
                           preferred_element_type=f32)         # (N, G) = A @ b

    # ---- head-batched q / k / v projections (head-major weights) ----
    H = heads
    proj_dims = (((2,), (1,)), ((0,), (0,)))                   # 'hng,hgd->hnd'
    gout_b = jnp.broadcast_to(gout.astype(cdt)[None], (H, N, G))
    img_b3 = jnp.broadcast_to(img_c[None], (H, N, D))
    qh = lax.dot_general(gout_b, wq_ref[...], proj_dims,
                         preferred_element_type=f32)           # (H, N, dh) (scale folded)
    kh = lax.dot_general(img_b3, wk_ref[...], proj_dims,
                         preferred_element_type=f32)           # (H, N, dh)
    vh = lax.dot_general(img_b3, wv_ref[...], proj_dims,
                         preferred_element_type=f32)           # (H, N, dh)

    # ---- scaled-dot-product attention, all heads batched ----
    s = lax.dot_general(qh.astype(cdt), kh.astype(cdt),
                        (((2,), (2,)), ((0,), (0,))),
                        preferred_element_type=f32)            # (H, N, N)
    s = s - jnp.max(s, axis=-1, keepdims=True)
    p = jnp.exp(s)
    p = p * pl.reciprocal(jnp.sum(p, axis=-1, keepdims=True), approx=True)
    o = lax.dot_general(p.astype(cdt), vh.astype(cdt),
                        (((2,), (1,)), ((0,), (0,))),
                        preferred_element_type=f32)            # (H, N, dh)

    # ---- output projection with fused head merge: sum_h o_h @ Wo_h + bo ----
    proj = lax.dot_general(o.astype(cdt), wo_ref[...],
                           (((2,), (1,)), ((0,), (0,))),
                           preferred_element_type=f32)         # (H, N, D)
    out = jnp.sum(proj, axis=0) + bo_ref[...]
    out_ref[0] = out.astype(out_ref.dtype)


# ---------------------------------- wrapper -----------------------------------

def mha_forward(img, tab, params, *, heads, dim_head):
    """MultiHeadAttention.forward(img, tab) with return_weights=False."""
    B, N, D = img.shape
    inner = heads * dim_head
    G = params["wa"].shape[1]
    scale = 1.0 / math.sqrt(dim_head)

    # Trace-time weight restructuring (plain JAX, outside the kernel):
    #  - fold softmax scale into the q projection,
    #  - split heads on weights so the kernel never slices activations,
    #  - pre-split to_kv so there is no unaligned kv[:, :inner] slice in-kernel.
    wq3 = (params["wq"] * scale).reshape(G, heads, dim_head).transpose(1, 0, 2)
    wkv = params["wkv"]
    wk3 = wkv[:, :inner].reshape(D, heads, dim_head).transpose(1, 0, 2)
    wv3 = wkv[:, inner:].reshape(D, heads, dim_head).transpose(1, 0, 2)
    wo3 = params["wo"].reshape(heads, dim_head, D)

    def full2(shape):
        return pl.BlockSpec(shape, lambda b: (0, 0))

    def full3(shape):
        return pl.BlockSpec(shape, lambda b: (0, 0, 0))

    seq_spec = pl.BlockSpec((1, N, D), lambda b: (b, 0, 0))

    in_specs = [
        seq_spec, seq_spec,                                    # img, tab
        full2((1, D)), full2((1, D)),                          # img LN gamma/beta
        full2((1, D)), full2((1, D)),                          # tab LN gamma/beta
        full2((D, G)), full2((1, G)),                          # attention_a Linear
        full2((D, G)), full2((1, G)),                          # attention_b Linear
        full3((heads, G, dim_head)),                           # gated to_out (q proj)
        full3((heads, D, dim_head)),                           # k proj
        full3((heads, D, dim_head)),                           # v proj
        full3((heads, dim_head, D)),                           # to_out weight
        full2((1, D)),                                         # to_out bias
    ]

    kernel = functools.partial(_mha_kernel, heads=heads)
    return pl.pallas_call(
        kernel,
        out_shape=jax.ShapeDtypeStruct((B, N, D), img.dtype),
        grid=(B,),
        in_specs=in_specs,
        out_specs=pl.BlockSpec((1, N, D), lambda b: (b, 0, 0)),
        compiler_params=pltpu.CompilerParams(dimension_semantics=("parallel",)),
    )(img, tab,
      params["img_ln_g"], params["img_ln_b"],
      params["tab_ln_g"], params["tab_ln_b"],
      params["wa"], params["ba"], params["wb"], params["bb"],
      wq3, wk3, wv3, wo3, params["bo"])


# ---------------------------- parameter initialization ------------------------

def init_params(key, dim, heads, dim_head, gate_dim=256,
                weight_dtype=jnp.bfloat16):
    """Weights stored as (in_features, out_features), i.e. transpose of
    nn.Linear.weight, so y = x @ W + b.  Matmul weights kept in bf16."""
    inner = heads * dim_head
    ks = jax.random.split(key, 8)

    def lin_w(k, fi, fo):
        return (jax.random.normal(k, (fi, fo), jnp.float32)
                * (1.0 / math.sqrt(fi))).astype(weight_dtype)

    def lin_b(k, fo):
        return (jax.random.normal(k, (1, fo), jnp.float32) * 0.02)

    return {
        "img_ln_g": jnp.ones((1, dim), jnp.float32),
        "img_ln_b": jnp.zeros((1, dim), jnp.float32),
        "tab_ln_g": jnp.ones((1, dim), jnp.float32),
        "tab_ln_b": jnp.zeros((1, dim), jnp.float32),
        "wa": lin_w(ks[0], dim, gate_dim), "ba": lin_b(ks[1], gate_dim),
        "wb": lin_w(ks[2], dim, gate_dim), "bb": lin_b(ks[3], gate_dim),
        "wq": lin_w(ks[4], gate_dim, inner),        # Gated_Attention.to_out (no bias)
        "wkv": lin_w(ks[5], dim, 2 * inner),        # to_kv (no bias)
        "wo": lin_w(ks[6], inner, dim),             # to_out Linear
        "bo": lin_b(ks[7], dim),
    }


# ------------------------------------ main -------------------------------------

if __name__ == "__main__":
    # Small but lane/sublane-dense shapes (last dims multiples of 128, N mult. of 8).
    B, N, D = 2, 128, 128
    HEADS, DIM_HEAD, GATE = 4, 32, 256     # inner = 128

    key = jax.random.PRNGKey(0)
    k_img, k_tab, k_p = jax.random.split(key, 3)
    img = jax.random.normal(k_img, (B, N, D), jnp.float32)
    tab = jax.random.normal(k_tab, (B, N, D), jnp.float32)
    params = init_params(k_p, D, HEADS, DIM_HEAD, GATE)

    fwd = jax.jit(functools.partial(mha_forward, heads=HEADS, dim_head=DIM_HEAD))
    out = fwd(img, tab, params)
    jax.block_until_ready(out)
    assert out.shape == (B, N, D)
    print("KERNEL_OK")
</pallas_src>

<mosaic_0001>
module attributes {stable_mosaic.version = 11 : i64} {
  func.func @_mha_kernel(%arg0: i32, %arg1: memref<1x128x128xf32, #tpu.memory_space<vmem>>, %arg2: memref<1x128x128xf32, #tpu.memory_space<vmem>>, %arg3: memref<1x128xf32, #tpu.memory_space<vmem>>, %arg4: memref<1x128xf32, #tpu.memory_space<vmem>>, %arg5: memref<1x128xf32, #tpu.memory_space<vmem>>, %arg6: memref<1x128xf32, #tpu.memory_space<vmem>>, %arg7: memref<128x256xbf16, #tpu.memory_space<vmem>>, %arg8: memref<1x256xf32, #tpu.memory_space<vmem>>, %arg9: memref<128x256xbf16, #tpu.memory_space<vmem>>, %arg10: memref<1x256xf32, #tpu.memory_space<vmem>>, %arg11: memref<4x256x32xbf16, #tpu.memory_space<vmem>>, %arg12: memref<4x128x32xbf16, #tpu.memory_space<vmem>>, %arg13: memref<4x128x32xbf16, #tpu.memory_space<vmem>>, %arg14: memref<4x32x128xbf16, #tpu.memory_space<vmem>>, %arg15: memref<1x128xf32, #tpu.memory_space<vmem>>, %arg16: memref<1x128x128xf32, #tpu.memory_space<vmem>>) attributes {dimension_semantics = [#tpu.dimension_semantics<parallel>], iteration_bounds = array<i64: 2>, scalar_prefetch = 0 : i64, scratch_operands = 0 : i64, tpu.core_type = #tpu.core_type<tc>, window_params = [{transform_indices = @transform_0, window_bounds = array<i64: 1, 128, 128>}, {transform_indices = @transform_1, window_bounds = array<i64: 1, 128, 128>}, {pipeline_mode = #tpu.pipeline_mode<synchronous>, transform_indices = @transform_2, window_bounds = array<i64: 1, 128>}, {pipeline_mode = #tpu.pipeline_mode<synchronous>, transform_indices = @transform_3, window_bounds = array<i64: 1, 128>}, {pipeline_mode = #tpu.pipeline_mode<synchronous>, transform_indices = @transform_4, window_bounds = array<i64: 1, 128>}, {pipeline_mode = #tpu.pipeline_mode<synchronous>, transform_indices = @transform_5, window_bounds = array<i64: 1, 128>}, {pipeline_mode = #tpu.pipeline_mode<synchronous>, transform_indices = @transform_6, window_bounds = array<i64: 128, 256>}, {pipeline_mode = #tpu.pipeline_mode<synchronous>, transform_indices = @transform_7, window_bounds = array<i64: 1, 256>}, {pipeline_mode = #tpu.pipeline_mode<synchronous>, transform_indices = @transform_8, window_bounds = array<i64: 128, 256>}, {pipeline_mode = #tpu.pipeline_mode<synchronous>, transform_indices = @transform_9, window_bounds = array<i64: 1, 256>}, {pipeline_mode = #tpu.pipeline_mode<synchronous>, transform_indices = @transform_10, window_bounds = array<i64: 4, 256, 32>}, {pipeline_mode = #tpu.pipeline_mode<synchronous>, transform_indices = @transform_11, window_bounds = array<i64: 4, 128, 32>}, {pipeline_mode = #tpu.pipeline_mode<synchronous>, transform_indices = @transform_12, window_bounds = array<i64: 4, 128, 32>}, {pipeline_mode = #tpu.pipeline_mode<synchronous>, transform_indices = @transform_13, window_bounds = array<i64: 4, 32, 128>}, {pipeline_mode = #tpu.pipeline_mode<synchronous>, transform_indices = @transform_14, window_bounds = array<i64: 1, 128>}, {transform_indices = @transform_15, window_bounds = array<i64: 1, 128, 128>}]} {
    %c0 = arith.constant 0 : index
    %c0_0 = arith.constant 0 : index
    %c0_1 = arith.constant 0 : index
    %0 = vector.load %arg1[%c0, %c0_0, %c0_1] : memref<1x128x128xf32, #tpu.memory_space<vmem>>, vector<1x128x128xf32>
    %1 = vector.shape_cast %0 : vector<1x128x128xf32> to vector<128x128xf32>
    %c0_2 = arith.constant 0 : index
    %c0_3 = arith.constant 0 : index
    %c0_4 = arith.constant 0 : index
    %2 = vector.load %arg2[%c0_2, %c0_3, %c0_4] : memref<1x128x128xf32, #tpu.memory_space<vmem>>, vector<1x128x128xf32>
    %3 = vector.shape_cast %2 : vector<1x128x128xf32> to vector<128x128xf32>
    %c0_5 = arith.constant 0 : index
    %c0_6 = arith.constant 0 : index
    %4 = vector.load %arg3[%c0_5, %c0_6] : memref<1x128xf32, #tpu.memory_space<vmem>>, vector<1x128xf32>
    %c0_7 = arith.constant 0 : index
    %c0_8 = arith.constant 0 : index
    %5 = vector.load %arg4[%c0_7, %c0_8] : memref<1x128xf32, #tpu.memory_space<vmem>>, vector<1x128xf32>
    %cst = arith.constant dense<0.000000e+00> : vector<128xf32>
    %6 = vector.multi_reduction <add>, %1, %cst [1] : vector<128x128xf32> to vector<128xf32>
    %7 = vector.shape_cast %6 : vector<128xf32> to vector<128x1xf32>
    %cst_9 = arith.constant 1.280000e+02 : f32
    %8 = vector.broadcast %cst_9 : f32 to vector<128x1xf32>
    %9 = arith.divf %7, %8 : vector<128x1xf32>
    %10 = vector.broadcast %9 : vector<128x1xf32> to vector<128x128xf32>
    %11 = arith.subf %1, %10 : vector<128x128xf32>
    %12 = vector.broadcast %9 : vector<128x1xf32> to vector<128x128xf32>
    %13 = arith.subf %1, %12 : vector<128x128xf32>
    %14 = arith.mulf %11, %13 : vector<128x128xf32>
    %cst_10 = arith.constant dense<0.000000e+00> : vector<128xf32>
    %15 = vector.multi_reduction <add>, %14, %cst_10 [1] : vector<128x128xf32> to vector<128xf32>
    %16 = vector.shape_cast %15 : vector<128xf32> to vector<128x1xf32>
    %cst_11 = arith.constant 1.280000e+02 : f32
    %17 = vector.broadcast %cst_11 : f32 to vector<128x1xf32>
    %18 = arith.divf %16, %17 : vector<128x1xf32>
    %19 = vector.broadcast %9 : vector<128x1xf32> to vector<128x128xf32>
    %20 = arith.subf %1, %19 : vector<128x128xf32>
    %cst_12 = arith.constant 9.99999974E-6 : f32
    %21 = vector.broadcast %cst_12 : f32 to vector<128x1xf32>
    %22 = arith.addf %18, %21 : vector<128x1xf32>
    %23 = math.rsqrt %22 : vector<128x1xf32>
    %24 = vector.broadcast %23 : vector<128x1xf32> to vector<128x128xf32>
    %25 = arith.mulf %20, %24 : vector<128x128xf32>
    %26 = vector.broadcast %4 : vector<1x128xf32> to vector<128x128xf32>
    %27 = arith.mulf %25, %26 : vector<128x128xf32>
    %28 = vector.broadcast %5 : vector<1x128xf32> to vector<128x128xf32>
    %29 = arith.addf %27, %28 : vector<128x128xf32>
    %c0_13 = arith.constant 0 : index
    %c0_14 = arith.constant 0 : index
    %30 = vector.load %arg5[%c0_13, %c0_14] : memref<1x128xf32, #tpu.memory_space<vmem>>, vector<1x128xf32>
    %c0_15 = arith.constant 0 : index
    %c0_16 = arith.constant 0 : index
    %31 = vector.load %arg6[%c0_15, %c0_16] : memref<1x128xf32, #tpu.memory_space<vmem>>, vector<1x128xf32>
    %cst_17 = arith.constant dense<0.000000e+00> : vector<128xf32>
    %32 = vector.multi_reduction <add>, %3, %cst_17 [1] : vector<128x128xf32> to vector<128xf32>
    %33 = vector.shape_cast %32 : vector<128xf32> to vector<128x1xf32>
    %cst_18 = arith.constant 1.280000e+02 : f32
    %34 = vector.broadcast %cst_18 : f32 to vector<128x1xf32>
    %35 = arith.divf %33, %34 : vector<128x1xf32>
    %36 = vector.broadcast %35 : vector<128x1xf32> to vector<128x128xf32>
    %37 = arith.subf %3, %36 : vector<128x128xf32>
    %38 = vector.broadcast %35 : vector<128x1xf32> to vector<128x128xf32>
    %39 = arith.subf %3, %38 : vector<128x128xf32>
    %40 = arith.mulf %37, %39 : vector<128x128xf32>
    %cst_19 = arith.constant dense<0.000000e+00> : vector<128xf32>
    %41 = vector.multi_reduction <add>, %40, %cst_19 [1] : vector<128x128xf32> to vector<128xf32>
    %42 = vector.shape_cast %41 : vector<128xf32> to vector<128x1xf32>
    %cst_20 = arith.constant 1.280000e+02 : f32
    %43 = vector.broadcast %cst_20 : f32 to vector<128x1xf32>
    %44 = arith.divf %42, %43 : vector<128x1xf32>
    %45 = vector.broadcast %35 : vector<128x1xf32> to vector<128x128xf32>
    %46 = arith.subf %3, %45 : vector<128x128xf32>
    %cst_21 = arith.constant 9.99999974E-6 : f32
    %47 = vector.broadcast %cst_21 : f32 to vector<128x1xf32>
    %48 = arith.addf %44, %47 : vector<128x1xf32>
    %49 = math.rsqrt %48 : vector<128x1xf32>
    %50 = vector.broadcast %49 : vector<128x1xf32> to vector<128x128xf32>
    %51 = arith.mulf %46, %50 : vector<128x128xf32>
    %52 = vector.broadcast %30 : vector<1x128xf32> to vector<128x128xf32>
    %53 = arith.mulf %51, %52 : vector<128x128xf32>
    %54 = vector.broadcast %31 : vector<1x128xf32> to vector<128x128xf32>
    %55 = arith.addf %53, %54 : vector<128x128xf32>
    %56 = arith.truncf %29 : vector<128x128xf32> to vector<128x128xbf16>
    %57 = arith.truncf %55 : vector<128x128xf32> to vector<128x128xbf16>
    %c0_22 = arith.constant 0 : index
    %c0_23 = arith.constant 0 : index
    %58 = vector.load %arg7[%c0_22, %c0_23] : memref<128x256xbf16, #tpu.memory_space<vmem>>, vector<128x256xbf16>
    %cst_24 = arith.constant dense<0.000000e+00> : vector<128x256xf32>
    %59 = tpu.matmul %56, %58, %cst_24 {dimension_numbers = #tpu.dot_dimension_numbers<[1], [0], [0], [1], [0, 0, 1, 1], [], []>} : vector<128x128xbf16>, vector<128x256xbf16>, vector<128x256xf32> -> vector<128x256xf32>
    %c0_25 = arith.constant 0 : index
    %c0_26 = arith.constant 0 : index
    %60 = vector.load %arg8[%c0_25, %c0_26] : memref<1x256xf32, #tpu.memory_space<vmem>>, vector<1x256xf32>
    %61 = vector.broadcast %60 : vector<1x256xf32> to vector<128x256xf32>
    %62 = arith.addf %59, %61 : vector<128x256xf32>
    %c0_27 = arith.constant 0 : index
    %c0_28 = arith.constant 0 : index
    %63 = vector.load %arg9[%c0_27, %c0_28] : memref<128x256xbf16, #tpu.memory_space<vmem>>, vector<128x256xbf16>
    %cst_29 = arith.constant dense<0.000000e+00> : vector<128x256xf32>
    %64 = tpu.matmul %57, %63, %cst_29 {dimension_numbers = #tpu.dot_dimension_numbers<[1], [0], [0], [1], [0, 0, 1, 1], [], []>} : vector<128x128xbf16>, vector<128x256xbf16>, vector<128x256xf32> -> vector<128x256xf32>
    %c0_30 = arith.constant 0 : index
    %c0_31 = arith.constant 0 : index
    %65 = vector.load %arg10[%c0_30, %c0_31] : memref<1x256xf32, #tpu.memory_space<vmem>>, vector<1x256xf32>
    %66 = vector.broadcast %65 : vector<1x256xf32> to vector<128x256xf32>
    %67 = arith.addf %64, %66 : vector<128x256xf32>
    %68 = math.tanh %62 : vector<128x256xf32>
    %cst_32 = arith.constant 0.000000e+00 : f32
    %69 = vector.broadcast %cst_32 : f32 to vector<128x256xf32>
    %70 = arith.subf %69, %67 : vector<128x256xf32>
    %71 = math.exp %70 : vector<128x256xf32>
    %cst_33 = arith.constant 1.000000e+00 : f32
    %72 = vector.broadcast %cst_33 : f32 to vector<128x256xf32>
    %73 = arith.addf %72, %71 : vector<128x256xf32>
    %cst_34 = arith.constant 1.000000e+00 : f32
    %74 = vector.broadcast %cst_34 : f32 to vector<128x256xf32>
    %75 = arith.divf %74, %73 : vector<128x256xf32>
    %76 = arith.truncf %68 : vector<128x256xf32> to vector<128x256xbf16>
    %77 = arith.truncf %75 : vector<128x256xf32> to vector<128x256xbf16>
    %cst_35 = arith.constant dense<0.000000e+00> : vector<128x128xf32>
    %78 = tpu.matmul %76, %77, %cst_35 {dimension_numbers = #tpu.dot_dimension_numbers<[1], [1], [0], [0], [0, 0, 1, 0], [], []>} : vector<128x256xbf16>, vector<128x256xbf16>, vector<128x128xf32> -> vector<128x128xf32>
    %79 = arith.truncf %78 : vector<128x128xf32> to vector<128x128xbf16>
    %cst_36 = arith.constant dense<0.000000e+00> : vector<128x256xf32>
    %80 = tpu.matmul %79, %77, %cst_36 {dimension_numbers = #tpu.dot_dimension_numbers<[1], [0], [0], [1], [0, 0, 1, 1], [], []>} : vector<128x128xbf16>, vector<128x256xbf16>, vector<128x256xf32> -> vector<128x256xf32>
    %81 = arith.truncf %80 : vector<128x256xf32> to vector<128x256xbf16>
    %82 = vector.shape_cast %81 : vector<128x256xbf16> to vector<1x128x256xbf16>
    %83 = vector.shape_cast %82 : vector<1x128x256xbf16> to vector<1x128x256xbf16>
    %84 = vector.broadcast %83 : vector<1x128x256xbf16> to vector<4x128x256xbf16>
    %85 = vector.shape_cast %56 : vector<128x128xbf16> to vector<1x128x128xbf16>
    %86 = vector.shape_cast %85 : vector<1x128x128xbf16> to vector<1x128x128xbf16>
    %87 = vector.broadcast %86 : vector<1x128x128xbf16> to vector<4x128x128xbf16>
    %c0_37 = arith.constant 0 : index
    %c0_38 = arith.constant 0 : index
    %c0_39 = arith.constant 0 : index
    %88 = vector.load %arg11[%c0_37, %c0_38, %c0_39] : memref<4x256x32xbf16, #tpu.memory_space<vmem>>, vector<4x256x32xbf16>
    %cst_40 = arith.constant dense<0.000000e+00> : vector<4x128x32xf32>
    %89 = tpu.matmul %84, %88, %cst_40 {dimension_numbers = #tpu.dot_dimension_numbers<[2], [1], [1], [2], [0, 0, 0, 1, 1, 2], [0], [0]>} : vector<4x128x256xbf16>, vector<4x256x32xbf16>, vector<4x128x32xf32> -> vector<4x128x32xf32>
    %c0_41 = arith.constant 0 : index
    %c0_42 = arith.constant 0 : index
    %c0_43 = arith.constant 0 : index
    %90 = vector.load %arg12[%c0_41, %c0_42, %c0_43] : memref<4x128x32xbf16, #tpu.memory_space<vmem>>, vector<4x128x32xbf16>
    %cst_44 = arith.constant dense<0.000000e+00> : vector<4x128x32xf32>
    %91 = tpu.matmul %87, %90, %cst_44 {dimension_numbers = #tpu.dot_dimension_numbers<[2], [1], [1], [2], [0, 0, 0, 1, 1, 2], [0], [0]>} : vector<4x128x128xbf16>, vector<4x128x32xbf16>, vector<4x128x32xf32> -> vector<4x128x32xf32>
    %c0_45 = arith.constant 0 : index
    %c0_46 = arith.constant 0 : index
    %c0_47 = arith.constant 0 : index
    %92 = vector.load %arg13[%c0_45, %c0_46, %c0_47] : memref<4x128x32xbf16, #tpu.memory_space<vmem>>, vector<4x128x32xbf16>
    %cst_48 = arith.constant dense<0.000000e+00> : vector<4x128x32xf32>
    %93 = tpu.matmul %87, %92, %cst_48 {dimension_numbers = #tpu.dot_dimension_numbers<[2], [1], [1], [2], [0, 0, 0, 1, 1, 2], [0], [0]>} : vector<4x128x128xbf16>, vector<4x128x32xbf16>, vector<4x128x32xf32> -> vector<4x128x32xf32>
    %94 = arith.truncf %89 : vector<4x128x32xf32> to vector<4x128x32xbf16>
    %95 = arith.truncf %91 : vector<4x128x32xf32> to vector<4x128x32xbf16>
    %cst_49 = arith.constant dense<0.000000e+00> : vector<4x128x128xf32>
    %96 = tpu.matmul %94, %95, %cst_49 {dimension_numbers = #tpu.dot_dimension_numbers<[2], [2], [1], [1], [0, 0, 0, 1, 1, 1], [0], [0]>} : vector<4x128x32xbf16>, vector<4x128x32xbf16>, vector<4x128x128xf32> -> vector<4x128x128xf32>
    %cst_50 = arith.constant dense<0xFF800000> : vector<4x128xf32>
    %97 = vector.multi_reduction <maximumf>, %96, %cst_50 [2] : vector<4x128x128xf32> to vector<4x128xf32>
    %98 = vector.shape_cast %97 : vector<4x128xf32> to vector<4x128x1xf32>
    %99 = vector.broadcast %98 : vector<4x128x1xf32> to vector<4x128x128xf32>
    %100 = arith.subf %96, %99 : vector<4x128x128xf32>
    %101 = math.exp %100 : vector<4x128x128xf32>
    %cst_51 = arith.constant dense<0.000000e+00> : vector<4x128xf32>
    %102 = vector.multi_reduction <add>, %101, %cst_51 [2] : vector<4x128x128xf32> to vector<4x128xf32>
    %103 = vector.shape_cast %102 : vector<4x128xf32> to vector<4x128x1xf32>
    %104 = tpu.reciprocal %103 {approx = true} : vector<4x128x1xf32> -> vector<4x128x1xf32>
    %105 = vector.broadcast %104 : vector<4x128x1xf32> to vector<4x128x128xf32>
    %106 = arith.mulf %101, %105 : vector<4x128x128xf32>
    %107 = arith.truncf %106 : vector<4x128x128xf32> to vector<4x128x128xbf16>
    %108 = arith.truncf %93 : vector<4x128x32xf32> to vector<4x128x32xbf16>
    %cst_52 = arith.constant dense<0.000000e+00> : vector<4x128x32xf32>
    %109 = tpu.matmul %107, %108, %cst_52 {dimension_numbers = #tpu.dot_dimension_numbers<[2], [1], [1], [2], [0, 0, 0, 1, 1, 2], [0], [0]>} : vector<4x128x128xbf16>, vector<4x128x32xbf16>, vector<4x128x32xf32> -> vector<4x128x32xf32>
    %110 = arith.truncf %109 : vector<4x128x32xf32> to vector<4x128x32xbf16>
    %c0_53 = arith.constant 0 : index
    %c0_54 = arith.constant 0 : index
    %c0_55 = arith.constant 0 : index
    %111 = vector.load %arg14[%c0_53, %c0_54, %c0_55] : memref<4x32x128xbf16, #tpu.memory_space<vmem>>, vector<4x32x128xbf16>
    %cst_56 = arith.constant dense<0.000000e+00> : vector<4x128x128xf32>
    %112 = tpu.matmul %110, %111, %cst_56 {dimension_numbers = #tpu.dot_dimension_numbers<[2], [1], [1], [2], [0, 0, 0, 1, 1, 2], [0], [0]>} : vector<4x128x32xbf16>, vector<4x32x128xbf16>, vector<4x128x128xf32> -> vector<4x128x128xf32>
    %cst_57 = arith.constant dense<0.000000e+00> : vector<128x128xf32>
    %113 = vector.multi_reduction <add>, %112, %cst_57 [0] : vector<4x128x128xf32> to vector<128x128xf32>
    %c0_58 = arith.constant 0 : index
    %c0_59 = arith.constant 0 : index
    %114 = vector.load %arg15[%c0_58, %c0_59] : memref<1x128xf32, #tpu.memory_space<vmem>>, vector<1x128xf32>
    %115 = vector.broadcast %114 : vector<1x128xf32> to vector<128x128xf32>
    %116 = arith.addf %113, %115 : vector<128x128xf32>
    %c0_60 = arith.constant 0 : index
    %c0_61 = arith.constant 0 : index
    %c0_62 = arith.constant 0 : index
    %117 = vector.load %arg16[%c0_60, %c0_61, %c0_62] : memref<1x128x128xf32, #tpu.memory_space<vmem>>, vector<1x128x128xf32>
    %118 = vector.shape_cast %117 : vector<1x128x128xf32> to vector<128x128xf32>
    %119 = vector.shape_cast %116 : vector<128x128xf32> to vector<1x128x128xf32>
    tpu.vector_store %arg16[%c0_60, %c0_61, %c0_62], %119 {strides = array<i32>} : memref<1x128x128xf32, #tpu.memory_space<vmem>>, vector<1x128x128xf32>,
    return
  }
  func.func @transform_0(%arg0: i32) -> (i32, i32, i32) {
    %c0_i32 = arith.constant 0 : i32
    %c0_i32_0 = arith.constant 0 : i32
    %c0_i32_1 = arith.constant 0 : i32
    return %arg0, %c0_i32, %c0_i32_0 : i32, i32, i32
  }
  func.func @transform_1(%arg0: i32) -> (i32, i32, i32) {
    %c0_i32 = arith.constant 0 : i32
    %c0_i32_0 = arith.constant 0 : i32
    %c0_i32_1 = arith.constant 0 : i32
    return %arg0, %c0_i32, %c0_i32_0 : i32, i32, i32
  }
  func.func @transform_2(%arg0: i32) -> (i32, i32) {
    %c0_i32 = arith.constant 0 : i32
    %c0_i32_0 = arith.constant 0 : i32
    %c0_i32_1 = arith.constant 0 : i32
    return %c0_i32, %c0_i32_0 : i32, i32
  }
  func.func @transform_3(%arg0: i32) -> (i32, i32) {
    %c0_i32 = arith.constant 0 : i32
    %c0_i32_0 = arith.constant 0 : i32
    %c0_i32_1 = arith.constant 0 : i32
    return %c0_i32, %c0_i32_0 : i32, i32
  }
  func.func @transform_4(%arg0: i32) -> (i32, i32) {
    %c0_i32 = arith.constant 0 : i32
    %c0_i32_0 = arith.constant 0 : i32
    %c0_i32_1 = arith.constant 0 : i32
    return %c0_i32, %c0_i32_0 : i32, i32
  }
  func.func @transform_5(%arg0: i32) -> (i32, i32) {
    %c0_i32 = arith.constant 0 : i32
    %c0_i32_0 = arith.constant 0 : i32
    %c0_i32_1 = arith.constant 0 : i32
    return %c0_i32, %c0_i32_0 : i32, i32
  }
  func.func @transform_6(%arg0: i32) -> (i32, i32) {
    %c0_i32 = arith.constant 0 : i32
    %c0_i32_0 = arith.constant 0 : i32
    %c0_i32_1 = arith.constant 0 : i32
    return %c0_i32, %c0_i32_0 : i32, i32
  }
  func.func @transform_7(%arg0: i32) -> (i32, i32) {
    %c0_i32 = arith.constant 0 : i32
    %c0_i32_0 = arith.constant 0 : i32
    %c0_i32_1 = arith.constant 0 : i32
    return %c0_i32, %c0_i32_0 : i32, i32
  }
  func.func @transform_8(%arg0: i32) -> (i32, i32) {
    %c0_i32 = arith.constant 0 : i32
    %c0_i32_0 = arith.constant 0 : i32
    %c0_i32_1 = arith.constant 0 : i32
    return %c0_i32, %c0_i32_0 : i32, i32
  }
  func.func @transform_9(%arg0: i32) -> (i32, i32) {
    %c0_i32 = arith.constant 0 : i32
    %c0_i32_0 = arith.constant 0 : i32
    %c0_i32_1 = arith.constant 0 : i32
    return %c0_i32, %c0_i32_0 : i32, i32
  }
  func.func @transform_10(%arg0: i32) -> (i32, i32, i32) {
    %c0_i32 = arith.constant 0 : i32
    %c0_i32_0 = arith.constant 0 : i32
    %c0_i32_1 = arith.constant 0 : i32
    %c0_i32_2 = arith.constant 0 : i32
    return %c0_i32, %c0_i32_0, %c0_i32_1 : i32, i32, i32
  }
  func.func @transform_11(%arg0: i32) -> (i32, i32, i32) {
    %c0_i32 = arith.constant 0 : i32
    %c0_i32_0 = arith.constant 0 : i32
    %c0_i32_1 = arith.constant 0 : i32
    %c0_i32_2 = arith.constant 0 : i32
    return %c0_i32, %c0_i32_0, %c0_i32_1 : i32, i32, i32
  }
  func.func @transform_12(%arg0: i32) -> (i32, i32, i32) {
    %c0_i32 = arith.constant 0 : i32
    %c0_i32_0 = arith.constant 0 : i32
    %c0_i32_1 = arith.constant 0 : i32
    %c0_i32_2 = arith.constant 0 : i32
    return %c0_i32, %c0_i32_0, %c0_i32_1 : i32, i32, i32
  }
  func.func @transform_13(%arg0: i32) -> (i32, i32, i32) {
    %c0_i32 = arith.constant 0 : i32
    %c0_i32_0 = arith.constant 0 : i32
    %c0_i32_1 = arith.constant 0 : i32
    %c0_i32_2 = arith.constant 0 : i32
    return %c0_i32, %c0_i32_0, %c0_i32_1 : i32, i32, i32
  }
  func.func @transform_14(%arg0: i32) -> (i32, i32) {
    %c0_i32 = arith.constant 0 : i32
    %c0_i32_0 = arith.constant 0 : i32
    %c0_i32_1 = arith.constant 0 : i32
    return %c0_i32, %c0_i32_0 : i32, i32
  }
  func.func @transform_15(%arg0: i32) -> (i32, i32, i32) {
    %c0_i32 = arith.constant 0 : i32
    %c0_i32_0 = arith.constant 0 : i32
    %c0_i32_1 = arith.constant 0 : i32
    return %arg0, %c0_i32, %c0_i32_0 : i32, i32, i32
  }
}

</mosaic_0001>

<bundles_post_ra>
// kernel: mha_forward.1
= control target key start
LH: loop header
LB: loop body
LE: loop exit
PB: predicated region body
PF: predicated region fallthrough
CT: control target
= control target key end

     0   :  { %s11518_s0 = inlined_call_operand.vmem [shape: f32[2,128,128], index: 0, kind: input, shape index: {}]   ;;  %s11519_s1 = inlined_call_operand.vmem [shape: f32[2,128,128], index: 1, kind: input, shape index: {}]   ;;  %s11520_s2 = inlined_call_operand.vmem [shape: f32[1,128], index: 2, kind: input, shape index: {}]   ;;  %s11521_s3 = inlined_call_operand.vmem [shape: f32[1,128], index: 3, kind: input, shape index: {}]   ;;  %s11522_s4 = inlined_call_operand.vmem [shape: f32[1,128], index: 4, kind: input, shape index: {}]   ;;  %s11523_s5 = inlined_call_operand.vmem [shape: f32[1,128], index: 5, kind: input, shape index: {}]   ;;  %s11524_s6 = inlined_call_operand.vmem [shape: bf16[128,256], index: 6, kind: input, shape index: {}]   ;;  %s11525_s7 = inlined_call_operand.vmem [shape: f32[1,256], index: 7, kind: input, shape index: {}]   ;;  %s11526_s8 = inlined_call_operand.vmem [shape: bf16[128,256], index: 8, kind: input, shape index: {}]   ;;  %s11527_s9 = inlined_call_operand.vmem [shape: f32[1,256], index: 9, kind: input, shape index: {}]   ;;  %s11528_s10 = inlined_call_operand.vmem [shape: bf16[4,256,32], index: 10, kind: input, shape index: {}]   ;;  %s11529_s11 = inlined_call_operand.vmem [shape: bf16[4,128,32], index: 11, kind: input, shape index: {}]   ;;  %s11530_s12 = inlined_call_operand.vmem [shape: bf16[4,128,32], index: 12, kind: input, shape index: {}]   ;;  %s11531_s13 = inlined_call_operand.vmem [shape: bf16[4,32,128], index: 13, kind: input, shape index: {}]   ;;  %s11532_s14 = inlined_call_operand.vmem [shape: f32[1,128], index: 14, kind: input, shape index: {}]   ;;  %s11533_s15 = inlined_call_operand.hbm [shape: f32[2,128,128], index: 15, kind: output, shape index: {}]  }
   0x1   :  { %11608 = sst [smem:[#allocation48_spill]] %s11518_s0 }
   0x2   :  { %11609 = sst [smem:[#allocation49_spill]] %s11519_s1 }
   0x3   :  { %11610 = sst [smem:[#allocation50_spill]] %s11520_s2 }
   0x4   :  { %20 = vsyncpa [#allocation3], 0 }
   0x5   :  { %22 = vsyncpa [#allocation3 + $0x1], 0  ;;  %s8919_s18 = smov 0   ;;  %s8921_s19 = smov 0  }
   0x6   :  { %s8923_s20 = smov 0   ;;  %s8925_s21 = smov 0  }
   0x7 LB: > { %s8940_s22 = sadd.s32 4294967295, %s8833_s21   ;;  %s6555_s23 = sadd.s32 4294967294, %s8833_s21   ;;  %s8833_s21 = sphi %s8925_s21, %s11798_s21   ;;  %s8829_s20 = sphi %s8923_s20, %s11797_s20   ;;  %s8825_s19 = sphi %s8921_s19, %s11796_s19   ;;  %s8821_s18 = sphi %s8919_s18, %s11795_s18  }
   0x8   : > { %s8944_s24 = sadd.s32 1, %s8833_s21   ;;  %s360_s25 = sadd.s32 1, %s8829_s20 }
   0x9   : > { %s357_s26 = ssub.s32 %s8833_s21, %s8944_s24  ;;  %p370_p0 = scmp.ne.s32.totalorder %s8829_s20, %s8825_s19 }
   0xa   : > { %p358_p1 = scmp.eq.s32.totalorder %s357_s26, 0  ;;  %p371_p2 = scmp.eq.s32.totalorder %s8940_s22, 1 }
   0xb   : > { %p376_p3 = scmp.ne.s32.totalorder %s8825_s19, %s8821_s18  ;;  %p377_p4 = scmp.eq.s32.totalorder %s6555_s23, 1 }
   0xc   : > { %s8955_s27 = scalar_select %p358_p1, %s8829_s20, %s360_s25  }
   0xd   : > { %p8957_p5 = por %p371_p2, %p370_p0  ;;  %p8961_p6 = por %p377_p4, %p376_p3 }
   0xe   : > { %11611 = sst [smem:[#allocation5_spill]] %s8955_s27  ;;  %p6558_p7 = scmp.ge.s32.totalorder %s8833_s21, 1 }
   0xf   : > { %p450_p8 = scmp.lt.s32.totalorder %s8833_s21, 3 }
  0x11   : > { %p451_p9 = pnand %p6558_p7, %p450_p8 }
  0x13   : > { %454 = sbr.rel (%p451_p9) target bundleno = 2780 (0xadc), region = 80 }
  0x1a   : > { %p503_p10 = scmp.lt.s32.totalorder %s8940_s22, 1  ;;  %s11614_s1 = sld [smem:[#allocation49_spill]]  ;;  %v8075_v16 = vld [vmem:[%s11526_s8 + $0x4] ss:$8 sps:$4 sm:$0xff]   ;;  %v8077_v17 = vld [vmem:[%s11526_s8] ss:$8 sps:$4 sm:$0xff]  }
  0x1b   : > { %v8078_v18 = vld [vmem:[%s11526_s8 + $0x14] ss:$8 sps:$4 sm:$0xff]   ;;  %1336 = vmatprep.subr.bf16.mxu1 %v8075_v16  ;;  %s11616_s0 = sld [smem:[#allocation48_spill]]  ;;  %v8080_v47 = vld [vmem:[%s11526_s8 + $0x10] ss:$8 sps:$4 sm:$0xff]   ;;  %s11617_s2 = sld [smem:[#allocation50_spill]] }
  0x1c   : > { %s8969_s30 = scalar_select %p503_p10, %s8940_s22, 1  ;;  %1337 = vmatpush1.bf16.msra.mxu1 %v8077_v17  ;;  %v8081_v50 = vld [vmem:[%s11526_s8 + $0x24] ss:$8 sps:$4 sm:$0xff]   ;;  %v8083_v54 = vld [vmem:[%s11526_s8 + $0x20] ss:$8 sps:$4 sm:$0xff]   ;;  %vm4191_vm0 = vcmask 261120  }
  0x1d   : > { %1338 = vmatprep.subr.bf16.mxu1 %v8078_v18  ;;  %v8084_v57 = vld [vmem:[%s11526_s8 + $0x34] ss:$8 sps:$4 sm:$0xff]   ;;  %v8086_v61 = vld [vmem:[%s11526_s8 + $0x30] ss:$8 sps:$4 sm:$0xff]  }
  0x1e   : > { %s11534_s16 = sshll.u32 %s8969_s30, 7  ;;  %v8092_v18 = vld [vmem:[%s11526_s8 + $0x50] ss:$8 sps:$4 sm:$0xff]  }
  0x20   : > { %s512_s25 = scalar_lea.vmem %s11614_s1, %s11534_s16  ;;  %s11615_s16 = sshll.u32 %s8969_s30, 7  ;;  %1339 = vmatpush1.bf16.msra.mxu1 %v8080_v47 }
  0x21   : > { %v530_v0 = vld [vmem:[%s512_s25] sm:$0xff]  ;;  %v532_v1 = vld [vmem:[%s512_s25 + $0x10] sm:$0xff]  ;;  %v531_v2 = vld [vmem:[%s512_s25 + $0x8] sm:$0xff]  ;;  %s9028_s1 = scalar_lea.vmem %s11616_s0, %s11615_s16  ;;  %1340 = vmatprep.subr.bf16.mxu1 %v8081_v50  ;;  %s6808_s30 = sshll.u32 %s8940_s22, 11 }
  0x22   : > { %771 = vadd.xlane.f32.xlu0 %v530_v0  ;;  %775 = vadd.xlane.f32.xlu1 %v532_v1  ;;  %v533_v3 = vld [vmem:[%s512_s25 + $0x18] sm:$0xff]  ;;  %v534_v4 = vld [vmem:[%s512_s25 + $0x20] sm:$0xff]  ;;  %v8977_v5 = vld [vmem:[%s512_s25 + $0x28] sm:$0xff]  ;;  %s11468_s23 = scalar_lea.hbm %s11533_s15, %s6808_s30 }
  0x23   : > { %v8979_v6 = vld [vmem:[%s512_s25 + $0x30] sm:$0xff]  ;;  %v8981_v7 = vld [vmem:[%s512_s25 + $0x38] sm:$0xff]  ;;  %v8984_v8 = vld [vmem:[%s512_s25 + $0x40] sm:$0xff] }
  0x24   : > { %v8986_v9 = vld [vmem:[%s512_s25 + $0x48] sm:$0xff]  ;;  %v8990_v10 = vld [vmem:[%s512_s25 + $0x50] sm:$0xff]  ;;  %v8992_v11 = vld [vmem:[%s512_s25 + $0x58] sm:$0xff]  ;;  %1341 = vmatpush1.bf16.msra.mxu1 %v8083_v54 }
  0x25   : > { %v8996_v12 = vld [vmem:[%s512_s25 + $0x60] sm:$0xff]  ;;  %v8998_v13 = vld [vmem:[%s512_s25 + $0x68] sm:$0xff]  ;;  %v9002_v14 = vld [vmem:[%s512_s25 + $0x70] sm:$0xff]  ;;  %1342 = vmatprep.subr.bf16.mxu1 %v8084_v57 }
  0x26   : > { %773 = vadd.xlane.f32.xlu0 %v531_v2  ;;  %777 = vadd.xlane.f32.xlu1 %v533_v3  ;;  %v9006_v15 = vld [vmem:[%s512_s25 + $0x78] sm:$0xff]  ;;  %v9035_v31 = vld [vmem:[%s9028_s1] sm:$0xff]  ;;  %v9045_v37 = vld [vmem:[%s9028_s1 + $0x8] sm:$0xff]  ;;  %s8836_s25 = smov [#allocation2]  }
  0x27   : > { %v9053_v42 = vld [vmem:[%s9028_s1 + $0x10] sm:$0xff]  ;;  %v9065_v48 = vld [vmem:[%s9028_s1 + $0x18] sm:$0xff]  ;;  %v9080_v55 = vld [vmem:[%s9028_s1 + $0x20] sm:$0xff]  ;;  %s8775_s26 = sshll.u32 %s8836_s25, 4  ;;  %s8776_s26 = int_to_ptr.vmem [resolvable:$false] %s8775_s26 }
  0x28   : > { %v9095_v62 = vld [vmem:[%s9028_s1 + $0x28] sm:$0xff]  ;;  %1343 = vmatpush1.bf16.msra.mxu1 %v8086_v61  ;;  %v9175_v50 = vld [vmem:[%s9028_s1 + $0x58] sm:$0xff]  ;;  %v9184_v57 = vld [vmem:[%s9028_s1 + $0x60] sm:$0xff]  ;;  %s8777_s30 = scalar_lea.vmem %s8776_s26, 4096 }
  0x29   : > { %v9199_v61 = vld [vmem:[%s9028_s1 + $0x70] sm:$0xff] }
  0x2a   : > { %779 = vadd.xlane.f32.xlu0 %v534_v4  ;;  %781 = vadd.xlane.f32.xlu1 %v8977_v5 }
  0x2e   : > { %783 = vadd.xlane.f32.xlu0 %v8979_v6  ;;  %785 = vadd.xlane.f32.xlu1 %v8981_v7 }
  0x32   : > { %787 = vadd.xlane.f32.xlu0 %v8984_v8  ;;  %789 = vadd.xlane.f32.xlu1 %v8986_v9 }
  0x36   : > { %791 = vadd.xlane.f32.xlu0 %v8990_v10  ;;  %793 = vadd.xlane.f32.xlu1 %v8992_v11 }
  0x3a   : > { %795 = vadd.xlane.f32.xlu0 %v8996_v12  ;;  %797 = vadd.xlane.f32.xlu1 %v8998_v13 }
  0x3e   : > { %799 = vadd.xlane.f32.xlu0 %v9002_v14  ;;  %801 = vadd.xlane.f32.xlu1 %v9006_v15 }
  0xaf   : > { %v772_v19 = vpop.xlane.xlu0 %771  ;;  %v776_v20 = vpop.xlane.xlu1 %775 }
  0xb0   : > { %v803_v21 = vmul.f32 0.0078125, %v772_v19  ;;  %v805_v23 = vmul.f32 0.0078125, %v776_v20  ;;  %v9125_v19 = vld [vmem:[%s9028_s1 + $0x38] sm:$0xff] }
  0xb2   : > { %v9019_v22 = vsub.f32 %v530_v0, %v803_v21  ;;  %v9032_v30 = vsub.f32 %v532_v1, %v805_v23  ;;  %v8087_v0 = vld [vmem:[%s11526_s8 + $0x44] ss:$8 sps:$4 sm:$0xff]  }
  0xb3   : > { %v774_v24 = vpop.xlane.xlu0 %773  ;;  %v778_v25 = vpop.xlane.xlu1 %777  ;;  %1344 = vmatprep.subr.bf16.mxu1 %v8087_v0  ;;  %v8093_v21 = vld [vmem:[%s11526_s8 + $0x64] ss:$8 sps:$4 sm:$0xff]   ;;  %v8101_v0 = vld [vmem:[%s11524_s6] ss:$8 sps:$4 sm:$0xff]  }
  0xb4   : > { %v804_v26 = vmul.f32 0.0078125, %v774_v24  ;;  %v835_v27 = vmul.f32 %v9019_v22, %v9019_v22  ;;  %v806_v29 = vmul.f32 0.0078125, %v778_v25  ;;  %v837_v34 = vmul.f32 %v9032_v30, %v9032_v30  ;;  %v8095_v25 = vld [vmem:[%s11526_s8 + $0x60] ss:$8 sps:$4 sm:$0xff]  }
  0xb6   : > { %851 = vadd.xlane.f32.xlu0 %v835_v27  ;;  %v9030_v28 = vsub.f32 %v531_v2, %v804_v26  ;;  %v9042_v36 = vsub.f32 %v533_v3, %v806_v29  ;;  %v9140_v26 = vld [vmem:[%s9028_s1 + $0x40] sm:$0xff]  ;;  %v8096_v29 = vld [vmem:[%s11526_s8 + $0x74] ss:$8 sps:$4 sm:$0xff]  }
  0xb7   : > { %v780_v32 = vpop.xlane.xlu0 %779  ;;  %v782_v38 = vpop.xlane.xlu1 %781 }
  0xb8   : > { %v836_v33 = vmul.f32 %v9030_v28, %v9030_v28  ;;  %v807_v35 = vmul.f32 0.0078125, %v780_v32  ;;  %v838_v39 = vmul.f32 %v9042_v36, %v9042_v36  ;;  %v808_v40 = vmul.f32 0.0078125, %v782_v38 }
  0xba   : > { %853 = vadd.xlane.f32.xlu1 %v836_v33  ;;  %548 = vadd.xlane.f32.xlu0 %v9035_v31  ;;  %v9050_v41 = vsub.f32 %v534_v4, %v807_v35  ;;  %v9059_v46 = vsub.f32 %v8977_v5, %v808_v40  ;;  %v8089_v4 = vld [vmem:[%s11526_s8 + $0x40] ss:$8 sps:$4 sm:$0xff]   ;;  %v9110_v5 = vld [vmem:[%s9028_s1 + $0x30] sm:$0xff] }
  0xbb   : > { %v784_v43 = vpop.xlane.xlu0 %783  ;;  %v786_v49 = vpop.xlane.xlu1 %785  ;;  %1345 = vmatpush1.bf16.msra.mxu1 %v8089_v4  ;;  %v9155_v35 = vld [vmem:[%s9028_s1 + $0x48] sm:$0xff] }
  0xbc   : > { %v839_v44 = vmul.f32 %v9050_v41, %v9050_v41  ;;  %v809_v45 = vmul.f32 0.0078125, %v784_v43  ;;  %v840_v51 = vmul.f32 %v9059_v46, %v9059_v46  ;;  %v810_v52 = vmul.f32 0.0078125, %v786_v49  ;;  %v9164_v43 = vld [vmem:[%s9028_s1 + $0x50] sm:$0xff] }
  0xbe   : > { %550 = vadd.xlane.f32.xlu1 %v9045_v37  ;;  %855 = vadd.xlane.f32.xlu0 %v837_v34  ;;  %v9074_v53 = vsub.f32 %v8979_v6, %v809_v45  ;;  %v9089_v60 = vsub.f32 %v8981_v7, %v810_v52  ;;  %v8090_v7 = vld [vmem:[%s11526_s8 + $0x54] ss:$8 sps:$4 sm:$0xff]   ;;  %v8098_v34 = vld [vmem:[%s11526_s8 + $0x70] ss:$8 sps:$4 sm:$0xff]   ;;  %v8835_v45 = vmov 0  }
  0xbf   : > { %v788_v56 = vpop.xlane.xlu0 %787  ;;  %v790_v63 = vpop.xlane.xlu1 %789  ;;  %1346 = vmatprep.subr.bf16.mxu1 %v8090_v7  ;;  %1368 = vmatprep.mubr.bf16.mxu1 %v8835_v45 }
  0xc0   : > { %v841_v58 = vmul.f32 %v9074_v53, %v9074_v53  ;;  %v811_v59 = vmul.f32 0.0078125, %v788_v56  ;;  %v842_v1 = vmul.f32 %v9089_v60, %v9089_v60  ;;  %v812_v2 = vmul.f32 0.0078125, %v790_v63  ;;  %1347 = vmatpush1.bf16.msra.mxu1 %v8092_v18  ;;  %1147 = vmatprep.mubr.bf16.mxu0 %v8835_v45  ;;  %v9203_v63 = vld [vmem:[%s9028_s1 + $0x78] sm:$0xff] }
  0xc1   : > { %1348 = vmatprep.subr.bf16.mxu1 %v8093_v21 }
  0xc2   : > { %857 = vadd.xlane.f32.xlu1 %v838_v39  ;;  %552 = vadd.xlane.f32.xlu0 %v9053_v42  ;;  %v9104_v3 = vsub.f32 %v8984_v8, %v811_v59  ;;  %v9119_v17 = vsub.f32 %v8986_v9, %v812_v2  ;;  %v9193_v59 = vld [vmem:[%s9028_s1 + $0x68] sm:$0xff]  ;;  %s500_s1 = sand.u32 1, %s8825_s19  }
  0xc3   : > { %v792_v6 = vpop.xlane.xlu0 %791  ;;  %v794_v20 = vpop.xlane.xlu1 %793  ;;  %s6559_s16 = sshll.u32 %s500_s1, 7  ;;  %s11477_s22 = scalar_lea.sflag [#allocation3], %s500_s1 }
  0xc4   : > { %v843_v8 = vmul.f32 %v9104_v3, %v9104_v3  ;;  %v813_v16 = vmul.f32 0.0078125, %v792_v6  ;;  %v844_v9 = vmul.f32 %v9119_v17, %v9119_v17  ;;  %v814_v23 = vmul.f32 0.0078125, %v794_v20  ;;  %1349 = vmatpush1.bf16.msra.mxu1 %v8095_v25  ;;  %s11448_s27 = scalar_lea.vmem [#allocation2], %s6559_s16 }
  0xc5   : > { %1350 = vmatprep.subr.bf16.mxu1 %v8096_v29  ;;  %s6481_s0 = sshll.u32 %s11448_s27, 4  ;;  %s11470_s0 = int_to_ptr.vmem [resolvable:$true] %s6481_s0 }
  0xc6   : > { %554 = vadd.xlane.f32.xlu1 %v9065_v48  ;;  %859 = vadd.xlane.f32.xlu0 %v839_v44  ;;  %v9134_v24 = vsub.f32 %v8990_v10, %v813_v16  ;;  %v9149_v33 = vsub.f32 %v8992_v11, %v814_v23  ;;  %s8771_s16 = scalar_lea.vmem %s11470_s0, 2048  ;;  %p8778_p0 = scmp.lt.s32.totalorder %s11470_s0, %s8776_s26 }
  0xc7   : > { %v796_v27 = vpop.xlane.xlu0 %795  ;;  %v798_v38 = vpop.xlane.xlu1 %797  ;;  %p8772_p11 = scmp.ne.s32.totalorder %s11470_s0, %s8771_s16  ;;  %p8779_p1 = scmp.lt.s32.totalorder %s8777_s30, %s8771_s16 }
  0xc8   : > { %v845_v10 = vmul.f32 %v9134_v24, %v9134_v24  ;;  %v815_v32 = vmul.f32 0.0078125, %v796_v27  ;;  %1351 = vmatpush1.bf16.msra.mxu1 %v8098_v34  ;;  %v846_v39 = vmul.f32 %v9149_v33, %v9149_v33  ;;  %v816_v40 = vmul.f32 0.0078125, %v798_v38 }
  0xc9   : > { %p8773_p12 = pnand %p8772_p11, %p8957_p5  ;;  %p8780_p2 = por %p8779_p1, %p8778_p0 }
  0xca   : > { %861 = vadd.xlane.f32.xlu1 %v840_v51  ;;  %556 = vadd.xlane.f32.xlu0 %v9080_v55  ;;  %v9161_v11 = vsub.f32 %v8996_v12, %v815_v32  ;;  %v9172_v12 = vsub.f32 %v8998_v13, %v816_v40 }
  0xcb   : > { %v800_v44 = vpop.xlane.xlu0 %799  ;;  %v802_v51 = vpop.xlane.xlu1 %801  ;;  %p8774_p13 = pneg %p8773_p12 }
  0xcc   : > { %v847_v47 = vmul.f32 %v9161_v11, %v9161_v11  ;;  %v817_v49 = vmul.f32 0.0078125, %v800_v44  ;;  %v848_v52 = vmul.f32 %v9172_v12, %v9172_v12  ;;  %v818_v54 = vmul.f32 0.0078125, %v802_v51 }
  0xcd   : > { %p8781_p3 = pnand %p8780_p2, %p8774_p13 }
  0xce   : > { %558 = vadd.xlane.f32.xlu1 %v9095_v62  ;;  %863 = vadd.xlane.f32.xlu0 %v841_v58  ;;  %v9181_v56 = vsub.f32 %v9002_v14, %v817_v49  ;;  %v9190_v58 = vsub.f32 %v9006_v15, %v818_v54  ;;  %v8099_v15 = vld [vmem:[%s11524_s6 + $0x4] ss:$8 sps:$4 sm:$0xff]  }
  0xcf   : > { %1115 = vmatprep.subr.bf16.mxu0 %v8099_v15  ;;  %v9234_v15 = vld [vmem:[%s11522_s4] ss:$0 sm:$0xff] }
  0xd0   : > { %v849_v13 = vmul.f32 %v9181_v56, %v9181_v56  ;;  %v850_v14 = vmul.f32 %v9190_v58, %v9190_v58  ;;  %1116 = vmatpush1.bf16.msra.mxu0 %v8101_v0 }
  0xd2   : > { %865 = vadd.xlane.f32.xlu1 %v842_v1  ;;  %560 = vadd.xlane.f32.xlu0 %v9110_v5  ;;  %v8102_v1 = vld [vmem:[%s11524_s6 + $0x14] ss:$8 sps:$4 sm:$0xff]  }
  0xd3   : > { %1117 = vmatprep.subr.bf16.mxu0 %v8102_v1 }
  0xd6   : > { %562 = vadd.xlane.f32.xlu1 %v9125_v19  ;;  %867 = vadd.xlane.f32.xlu0 %v843_v8 }
  0xda   : > { %869 = vadd.xlane.f32.xlu1 %v844_v9  ;;  %564 = vadd.xlane.f32.xlu0 %v9140_v26 }
  0xde   : > { %566 = vadd.xlane.f32.xlu1 %v9155_v35  ;;  %871 = vadd.xlane.f32.xlu0 %v845_v10 }
  0xe2   : > { %873 = vadd.xlane.f32.xlu1 %v846_v39  ;;  %568 = vadd.xlane.f32.xlu0 %v9164_v43 }
  0xe6   : > { %570 = vadd.xlane.f32.xlu1 %v9175_v50  ;;  %875 = vadd.xlane.f32.xlu0 %v847_v47 }
  0xea   : > { %877 = vadd.xlane.f32.xlu1 %v848_v52  ;;  %572 = vadd.xlane.f32.xlu0 %v9184_v57 }
  0xee   : > { %574 = vadd.xlane.f32.xlu1 %v9193_v59  ;;  %879 = vadd.xlane.f32.xlu0 %v849_v13 }
  0xf2   : > { %881 = vadd.xlane.f32.xlu1 %v850_v14  ;;  %576 = vadd.xlane.f32.xlu0 %v9199_v61 }
  0xf6   : > { %578 = vadd.xlane.f32.xlu1 %v9203_v63 }
 0x143   : > { %v852_v2 = vpop.xlane.xlu0 %851 }
 0x144   : > { %v883_v4 = vmul.f32 0.0078125, %v852_v2 }
 0x146   : > { %v899_v6 = vadd.f32 1e-05, %v883_v4 }
 0x147   : > { %v854_v7 = vpop.xlane.xlu1 %853  ;;  %v549_v8 = vpop.xlane.xlu0 %548 }
 0x148   : > { %8259 = vrsqrt.f32 %v899_v6  ;;  %v884_v16 = vmul.f32 0.0078125, %v854_v7  ;;  %v581_v18 = vmul.f32 0.0078125, %v549_v8 }
 0x14a   : > { %v900_v20 = vadd.f32 1e-05, %v884_v16  ;;  %v9216_v21 = vsub.f32 %v9035_v31, %v581_v18  ;;  %v9246_v18 = vld [vmem:[%s11523_s5] ss:$0 sm:$0xff] }
 0x14b   : > { %v551_v9 = vpop.xlane.xlu1 %550  ;;  %v856_v23 = vpop.xlane.xlu0 %855 }
 0x14c   : > { %8261 = vrsqrt.f32 %v900_v20  ;;  %v582_v25 = vmul.f32 0.0078125, %v551_v9  ;;  %v885_v27 = vmul.f32 0.0078125, %v856_v23  ;;  %v613_v29 = vmul.f32 %v9216_v21, %v9216_v21  ;;  %v8104_v23 = vld [vmem:[%s11524_s6 + $0x10] ss:$8 sps:$4 sm:$0xff]  }
 0x14d   : > { %1118 = vmatpush1.bf16.msra.mxu0 %v8104_v23 }
 0x14e   : > { %v901_v10 = vadd.f32 1e-05, %v885_v27  ;;  %629 = vadd.xlane.f32.xlu0 %v613_v29  ;;  %v9221_v32 = vsub.f32 %v9045_v37, %v582_v25 }
 0x14f   : > { %v858_v34 = vpop.xlane.xlu1 %857  ;;  %v553_v38 = vpop.xlane.xlu0 %552 }
 0x150   : > { %8263 = vrsqrt.f32 %v901_v10  ;;  %v886_v39 = vmul.f32 0.0078125, %v858_v34  ;;  %v583_v40 = vmul.f32 0.0078125, %v553_v38  ;;  %v614_v31 = vmul.f32 %v9221_v32, %v9221_v32 }
 0x152   : > { %v8260_v44 = vpop.eup %8259  ;;  %v902_v47 = vadd.f32 1e-05, %v886_v39  ;;  %631 = vadd.xlane.f32.xlu1 %v614_v31  ;;  %v9226_v49 = vsub.f32 %v9053_v42, %v583_v40  ;;  %v8105_v31 = vld [vmem:[%s11524_s6 + $0x24] ss:$8 sps:$4 sm:$0xff]  }
 0x153   : > { %v555_v51 = vpop.xlane.xlu1 %554  ;;  %v860_v52 = vpop.xlane.xlu0 %859  ;;  %v931_v54 = vmul.f32 %v8260_v44, %v9019_v22  ;;  %1119 = vmatprep.subr.bf16.mxu0 %v8105_v31 }
 0x154   : > { %8265 = vrsqrt.f32 %v902_v47  ;;  %v584_v37 = vmul.f32 0.0078125, %v555_v51  ;;  %v887_v13 = vmul.f32 0.0078125, %v860_v52  ;;  %v615_v14 = vmul.f32 %v9226_v49, %v9226_v49 }
 0x155   : > { %v953_v6 = vmul.f32 %v9234_v15, %v931_v54 }
 0x156   : > { %v8262_v0 = vpop.eup %8261  ;;  %v903_v1 = vadd.f32 1e-05, %v887_v13  ;;  %633 = vadd.xlane.f32.xlu0 %v615_v14  ;;  %v9237_v42 = vsub.f32 %v9065_v48, %v584_v37 }
 0x157   : > { %v862_v2 = vpop.xlane.xlu1 %861  ;;  %v557_v4 = vpop.xlane.xlu0 %556  ;;  %v932_v22 = vmul.f32 %v8262_v0, %v9030_v28  ;;  %v975_v29 = vadd.f32 %v9246_v18, %v953_v6  ;;  %v8110_v6 = vld [vmem:[%s11524_s6 + $0x30] ss:$8 sps:$4 sm:$0xff]  }
 0x158   : > { %8267 = vrsqrt.f32 %v903_v1  ;;  %v888_v7 = vmul.f32 0.0078125, %v862_v2  ;;  %v585_v8 = vmul.f32 0.0078125, %v557_v4  ;;  %v616_v16 = vmul.f32 %v9237_v42, %v9237_v42  ;;  %v8108_v2 = vld [vmem:[%s11524_s6 + $0x34] ss:$8 sps:$4 sm:$0xff]  }
 0x159   : > { %v954_v48 = vmul.f32 %v9234_v15, %v932_v22 }
 0x15a   : > { %v8264_v20 = vpop.eup %8263  ;;  %v904_v9 = vadd.f32 1e-05, %v888_v7  ;;  %635 = vadd.xlane.f32.xlu1 %v616_v16  ;;  %v9250_v28 = vsub.f32 %v9080_v55, %v585_v8 }
 0x15b   : > { %v559_v25 = vpop.xlane.xlu1 %558  ;;  %v864_v27 = vpop.xlane.xlu0 %863  ;;  %v976_v10 = vadd.f32 %v9246_v18, %v954_v48  ;;  %v933_v34 = vmul.f32 %v8264_v20, %v9032_v30  ;;  %v8107_v30 = vld [vmem:[%s11524_s6 + $0x20] ss:$8 sps:$4 sm:$0xff]  }
 0x15c   : > { %8269 = vrsqrt.f32 %v904_v9  ;;  %v586_v38 = vmul.f32 0.0078125, %v559_v25  ;;  %v889_v39 = vmul.f32 0.0078125, %v864_v27  ;;  %v617_v40 = vmul.f32 %v9250_v28, %v9250_v28  ;;  %1120 = vmatpush1.bf16.msra.mxu0 %v8107_v30  ;;  %v8111_v27 = vld [vmem:[%s11524_s6 + $0x44] ss:$8 sps:$4 sm:$0xff]   ;;  %v8114_v30 = vld [vmem:[%s11524_s6 + $0x54] ss:$8 sps:$4 sm:$0xff]  }
 0x15d   : > { %v999_v55 = vpack.c.bf16 %v976_v10, %v975_v29  ;;  %v955_v13 = vmul.f32 %v9234_v15, %v933_v34  ;;  %1121 = vmatprep.subr.bf16.mxu0 %v8108_v2 }
 0x15e   : > { %v8266_v44 = vpop.eup %8265  ;;  %v905_v47 = vadd.f32 1e-05, %v889_v39  ;;  %637 = vadd.xlane.f32.xlu0 %v617_v40  ;;  %v9264_v51 = vsub.f32 %v9095_v62, %v586_v38 }
 0x15f   : > { %1369 = vmatmul.mubr.bf16.vlgmr.msra.gmra.mrb[0].mxu1 %v999_v55  ;;  %v866_v52 = vpop.xlane.xlu1 %865  ;;  %v561_v54 = vpop.xlane.xlu0 %560  ;;  %v934_v37 = vmul.f32 %v8266_v44, %v9042_v36  ;;  %v977_v16 = vadd.f32 %v9246_v18, %v955_v13 }
 0x160   : > { %8271 = vrsqrt.f32 %v905_v47  ;;  %v890_v14 = vmul.f32 0.0078125, %v866_v52  ;;  %v587_v0 = vmul.f32 0.0078125, %v561_v54  ;;  %v618_v1 = vmul.f32 %v9264_v51, %v9264_v51  ;;  %1378 = vmatprep.mubr.bf16.mxu1 %v8835_v45  ;;  %1122 = vmatpush1.bf16.msra.mxu0 %v8110_v6  ;;  %v8117_v6 = vld [vmem:[%s11524_s6 + $0x64] ss:$8 sps:$4 sm:$0xff]  }
 0x161   : > { %v956_v62 = vmul.f32 %v9234_v15, %v934_v37  ;;  %1123 = vmatprep.subr.bf16.mxu0 %v8111_v27  ;;  %v8116_v37 = vld [vmem:[%s11524_s6 + $0x50] ss:$8 sps:$4 sm:$0xff]  }
 0x162   : > { %v8268_v4 = vpop.eup %8267  ;;  %v906_v36 = vadd.f32 1e-05, %v890_v14  ;;  %639 = vadd.xlane.f32.xlu1 %v618_v1  ;;  %v9279_v22 = vsub.f32 %v9110_v5, %v587_v0 }
 0x163   : > { %v563_v7 = vpop.xlane.xlu1 %562  ;;  %v868_v8 = vpop.xlane.xlu0 %867  ;;  %v978_v48 = vadd.f32 %v9246_v18, %v956_v62  ;;  %v935_v20 = vmul.f32 %v8268_v4, %v9050_v41  ;;  %v8113_v41 = vld [vmem:[%s11524_s6 + $0x40] ss:$8 sps:$4 sm:$0xff]  }
 0x164   : > { %8273 = vrsqrt.f32 %v906_v36  ;;  %v588_v9 = vmul.f32 0.0078125, %v563_v7  ;;  %v891_v23 = vmul.f32 0.0078125, %v868_v8  ;;  %v619_v5 = vmul.f32 %v9279_v22, %v9279_v22  ;;  %1124 = vmatpush1.bf16.msra.mxu0 %v8113_v41 }
 0x165   : > { %v1000_v25 = vpack.c.bf16 %v978_v48, %v977_v16  ;;  %v957_v55 = vmul.f32 %v9234_v15, %v935_v20  ;;  %1125 = vmatprep.subr.bf16.mxu0 %v8114_v30 }
 0x166   : > { %v8270_v29 = vpop.eup %8269  ;;  %v907_v10 = vadd.f32 1e-05, %v891_v23  ;;  %641 = vadd.xlane.f32.xlu0 %v619_v5  ;;  %v9293_v34 = vsub.f32 %v9125_v19, %v588_v9 }
 0x167   : > { %v870_v38 = vpop.xlane.xlu1 %869  ;;  %1379 = vmatmul.mubr.bf16.gmra.mrb[4].mxu1 %v1000_v25  ;;  %v565_v39 = vpop.xlane.xlu0 %564  ;;  %v936_v40 = vmul.f32 %v8270_v29, %v9059_v46  ;;  %v979_v0 = vadd.f32 %v9246_v18, %v957_v55  ;;  %v8120_v29 = vld [vmem:[%s11524_s6 + $0x74] ss:$8 sps:$4 sm:$0xff]  }
 0x168   : > { %8275 = vrsqrt.f32 %v907_v10  ;;  %v892_v31 = vmul.f32 0.0078125, %v870_v38  ;;  %v589_v44 = vmul.f32 0.0078125, %v565_v39  ;;  %v620_v47 = vmul.f32 %v9293_v34, %v9293_v34  ;;  %1388 = vmatprep.mubr.bf16.mxu1 %v8835_v45  ;;  %1126 = vmatpush1.bf16.msra.mxu0 %v8116_v37  ;;  %v8122_v38 = vld [vmem:[%s11524_s6 + $0x70] ss:$8 sps:$4 sm:$0xff]  }
 0x169   : > { %v958_v19 = vmul.f32 %v9234_v15, %v936_v40  ;;  %1127 = vmatprep.subr.bf16.mxu0 %v8117_v6 }
 0x16a   : > { %v8272_v52 = vpop.eup %8271  ;;  %v908_v46 = vadd.f32 1e-05, %v892_v31  ;;  %643 = vadd.xlane.f32.xlu1 %v620_v47  ;;  %v9308_v54 = vsub.f32 %v9140_v26, %v589_v44 }
 0x16b   : > { %v567_v13 = vpop.xlane.xlu1 %566  ;;  %v872_v14 = vpop.xlane.xlu0 %871  ;;  %v980_v1 = vadd.f32 %v9246_v18, %v958_v19  ;;  %v937_v62 = vmul.f32 %v8272_v52, %v9074_v53  ;;  %v8119_v53 = vld [vmem:[%s11524_s6 + $0x60] ss:$8 sps:$4 sm:$0xff]  }
 0x16c   : > { %8277 = vrsqrt.f32 %v908_v46  ;;  %v590_v2 = vmul.f32 0.0078125, %v567_v13  ;;  %v893_v4 = vmul.f32 0.0078125, %v872_v14  ;;  %v621_v26 = vmul.f32 %v9308_v54, %v9308_v54  ;;  %1128 = vmatpush1.bf16.msra.mxu0 %v8119_v53 }
 0x16d   : > { %v1001_v36 = vpack.c.bf16 %v980_v1, %v979_v0  ;;  %v959_v23 = vmul.f32 %v9234_v15, %v937_v62  ;;  %1129 = vmatprep.subr.bf16.mxu0 %v8120_v29 }
 0x16e   : > { %v8274_v7 = vpop.eup %8273  ;;  %v909_v8 = vadd.f32 1e-05, %v893_v4  ;;  %645 = vadd.xlane.f32.xlu0 %v621_v26  ;;  %v9322_v16 = vsub.f32 %v9155_v35, %v590_v2 }
 0x16f   : > { %v874_v48 = vpop.xlane.xlu1 %873  ;;  %1389 = vmatmul.mubr.bf16.gmra.mrb[8].mxu1 %v1001_v36  ;;  %v569_v20 = vpop.xlane.xlu0 %568  ;;  %v938_v9 = vmul.f32 %v8274_v7, %v9089_v60  ;;  %v981_v55 = vadd.f32 %v9246_v18, %v959_v23 }
 0x170   : > { %8279 = vrsqrt.f32 %v909_v8  ;;  %v894_v5 = vmul.f32 0.0078125, %v874_v48  ;;  %v591_v25 = vmul.f32 0.0078125, %v569_v20  ;;  %v622_v27 = vmul.f32 %v9322_v16, %v9322_v16  ;;  %1398 = vmatprep.mubr.bf16.mxu1 %v8835_v45  ;;  %1130 = vmatpush1.bf16.msra.mxu0 %v8122_v38 }
 0x171   : > { %v960_v35 = vmul.f32 %v9234_v15, %v938_v9 }
 0x172   : > { %v8276_v10 = vpop.eup %8275  ;;  %v910_v60 = vadd.f32 1e-05, %v894_v5  ;;  %647 = vadd.xlane.f32.xlu1 %v622_v27  ;;  %v9337_v41 = vsub.f32 %v9164_v43, %v591_v25 }
 0x173   : > { %v571_v39 = vpop.xlane.xlu1 %570  ;;  %v876_v40 = vpop.xlane.xlu0 %875  ;;  %v982_v31 = vadd.f32 %v9246_v18, %v960_v35  ;;  %v939_v44 = vmul.f32 %v8276_v10, %v9104_v3 }
 0x174   : > { %8281 = vrsqrt.f32 %v910_v60  ;;  %v592_v47 = vmul.f32 0.0078125, %v571_v39  ;;  %v895_v19 = vmul.f32 0.0078125, %v876_v40  ;;  %v623_v43 = vmul.f32 %v9337_v41, %v9337_v41 }
 0x175   : > { %v1002_v30 = vpack.c.bf16 %v982_v31, %v981_v55  ;;  %v961_v0 = vmul.f32 %v9234_v15, %v939_v44 }
 0x176   : > { %v8278_v52 = vpop.eup %8277  ;;  %v911_v46 = vadd.f32 1e-05, %v895_v19  ;;  %649 = vadd.xlane.f32.xlu0 %v623_v43  ;;  %v9348_v37 = vsub.f32 %v9175_v50, %v592_v47 }
 0x177   : > { %v878_v13 = vpop.xlane.xlu1 %877  ;;  %1399 = vmatmul.mubr.bf16.gmra.mrb[12].mxu1 %v1002_v30  ;;  %v573_v14 = vpop.xlane.xlu0 %572  ;;  %v940_v3 = vmul.f32 %v8278_v52, %v9119_v17  ;;  %v983_v7 = vadd.f32 %v9246_v18, %v961_v0 }
 0x178   : > { %8283 = vrsqrt.f32 %v911_v46  ;;  %v896_v1 = vmul.f32 0.0078125, %v878_v13  ;;  %v593_v62 = vmul.f32 0.0078125, %v573_v14  ;;  %v624_v2 = vmul.f32 %v9348_v37, %v9348_v37  ;;  %1408 = vmatprep.mubr.bf16.mxu1 %v8835_v45 }
 0x179   : > { %v962_v4 = vmul.f32 %v9234_v15, %v940_v3 }
 0x17a   : > { %v8280_v26 = vpop.eup %8279  ;;  %v912_v50 = vadd.f32 1e-05, %v896_v1  ;;  %651 = vadd.xlane.f32.xlu1 %v624_v2  ;;  %v9357_v36 = vsub.f32 %v9184_v57, %v593_v62 }
 0x17b   : > { %v575_v6 = vpop.xlane.xlu1 %574  ;;  %v880_v17 = vpop.xlane.xlu0 %879  ;;  %v984_v8 = vadd.f32 %v9246_v18, %v962_v4  ;;  %v941_v53 = vmul.f32 %v8280_v26, %v9134_v24 }
 0x17c   : > { %8285 = vrsqrt.f32 %v912_v50  ;;  %v594_v48 = vmul.f32 0.0078125, %v575_v6  ;;  %v897_v20 = vmul.f32 0.0078125, %v880_v17  ;;  %v625_v9 = vmul.f32 %v9357_v36, %v9357_v36 }
 0x17d   : > { %v1003_v23 = vpack.c.bf16 %v984_v8, %v983_v7  ;;  %v963_v24 = vmul.f32 %v9234_v15, %v941_v53 }
 0x17e   : > { %v8282_v5 = vpop.eup %8281  ;;  %v913_v25 = vadd.f32 1e-05, %v897_v20  ;;  %653 = vadd.xlane.f32.xlu0 %v625_v9  ;;  %v9365_v57 = vsub.f32 %v9193_v59, %v594_v48 }
 0x17f   : > { %v882_v27 = vpop.xlane.xlu1 %881  ;;  %1409 = vmatmul.mubr.bf16.gmra.mrb[16].mxu1 %v1003_v23  ;;  %v577_v35 = vpop.xlane.xlu0 %576  ;;  %v942_v29 = vmul.f32 %v8282_v5, %v9149_v33  ;;  %v985_v33 = vadd.f32 %v9246_v18, %v963_v24 }
 0x180   : > { %8287 = vrsqrt.f32 %v913_v25  ;;  %v898_v10 = vmul.f32 0.0078125, %v882_v27  ;;  %v595_v60 = vmul.f32 0.0078125, %v577_v35  ;;  %v626_v38 = vmul.f32 %v9365_v57, %v9365_v57  ;;  %1418 = vmatprep.mubr.bf16.mxu1 %v8835_v45 }
 0x181   : > { %v964_v39 = vmul.f32 %v9234_v15, %v942_v29  ;;  %v9403_v29 = vld [vmem:[%s11617_s2] ss:$0 sm:$0xff] }
 0x182   : > { %v8284_v40 = vpop.eup %8283  ;;  %v914_v59 = vadd.f32 1e-05, %v898_v10  ;;  %655 = vadd.xlane.f32.xlu1 %v626_v38  ;;  %v9374_v55 = vsub.f32 %v9199_v61, %v595_v60 }
 0x183   : > { %v579_v31 = vpop.xlane.xlu1 %578  ;;  %v986_v44 = vadd.f32 %v9246_v18, %v964_v39  ;;  %v943_v47 = vmul.f32 %v8284_v40, %v9161_v11 }
 0x184   : > { %8289 = vrsqrt.f32 %v914_v59  ;;  %v596_v19 = vmul.f32 0.0078125, %v579_v31  ;;  %v627_v43 = vmul.f32 %v9374_v55, %v9374_v55  ;;  %v9410_v59 = vld [vmem:[%s11521_s3] ss:$0 sm:$0xff] }
 0x185   : > { %v1004_v30 = vpack.c.bf16 %v986_v44, %v985_v33  ;;  %v965_v13 = vmul.f32 %v9234_v15, %v943_v47 }
 0x186   : > { %v8286_v52 = vpop.eup %8285  ;;  %657 = vadd.xlane.f32.xlu0 %v627_v43  ;;  %v9382_v46 = vsub.f32 %v9203_v63, %v596_v19 }
 0x187   : > { %1419 = vmatmul.mubr.bf16.gmra.mrb[20].mxu1 %v1004_v30  ;;  %v944_v61 = vmul.f32 %v8286_v52, %v9172_v12  ;;  %v987_v0 = vadd.f32 %v9246_v18, %v965_v13 }
 0x188   : > { %v628_v14 = vmul.f32 %v9382_v46, %v9382_v46  ;;  %1428 = vmatprep.mubr.bf16.mxu1 %v8835_v45 }
 0x189   : > { %v966_v11 = vmul.f32 %v9234_v15, %v944_v61 }
 0x18a   : > { %v8288_v3 = vpop.eup %8287  ;;  %659 = vadd.xlane.f32.xlu1 %v628_v14 }
 0x18b   : > { %v988_v1 = vadd.f32 %v9246_v18, %v966_v11  ;;  %v945_v63 = vmul.f32 %v8288_v3, %v9181_v56 }
 0x18d   : > { %v1005_v62 = vpack.c.bf16 %v988_v1, %v987_v0  ;;  %v967_v4 = vmul.f32 %v9234_v15, %v945_v63 }
 0x18e   : > { %v8290_v2 = vpop.eup %8289 }
 0x18f   : > { %1429 = vmatmul.mubr.bf16.gmra.mrb[24].mxu1 %v1005_v62  ;;  %v946_v12 = vmul.f32 %v8290_v2, %v9190_v58  ;;  %v989_v50 = vadd.f32 %v9246_v18, %v967_v4 }
 0x190   : > { %1438 = vmatprep.mubr.bf16.mxu1 %v8835_v45 }
 0x191   : > { %v968_v26 = vmul.f32 %v9234_v15, %v946_v12 }
 0x193   : > { %v990_v6 = vadd.f32 %v9246_v18, %v968_v26 }
 0x195   : > { %v1006_v17 = vpack.c.bf16 %v990_v6, %v989_v50 }
 0x197   : > { %1439 = vmatmul.mubr.bf16.gmra.mrb[28].mxu1 %v1006_v17 }
 0x1db   : > { %v630_v7 = vpop.xlane.xlu0 %629 }
 0x1dc   : > { %v661_v8 = vmul.f32 0.0078125, %v630_v7 }
 0x1de   : > { %v677_v56 = vadd.f32 1e-05, %v661_v8 }
 0x1df   : > { %v632_v53 = vpop.xlane.xlu1 %631 }
 0x1e0   : > { %8291 = vrsqrt.f32 %v677_v56  ;;  %v662_v48 = vmul.f32 0.0078125, %v632_v53 }
 0x1e2   : > { %v678_v20 = vadd.f32 1e-05, %v662_v48 }
 0x1e3   : > { %v634_v58 = vpop.xlane.xlu0 %633 }
 0x1e4   : > { %8293 = vrsqrt.f32 %v678_v20  ;;  %v663_v9 = vmul.f32 0.0078125, %v634_v58 }
 0x1e6   : > { %v679_v23 = vadd.f32 1e-05, %v663_v9 }
 0x1e7   : > { %v636_v5 = vpop.xlane.xlu1 %635 }
 0x1e8   : > { %8295 = vrsqrt.f32 %v679_v23  ;;  %v664_v15 = vmul.f32 0.0078125, %v636_v5 }
 0x1ea   : > { %v8292_v25 = vpop.eup %8291  ;;  %v680_v27 = vadd.f32 1e-05, %v664_v15 }
 0x1eb   : > { %v709_v18 = vmul.f32 %v8292_v25, %v9216_v21  ;;  %v638_v35 = vpop.xlane.xlu0 %637 }
 0x1ec   : > { %8297 = vrsqrt.f32 %v680_v27  ;;  %v665_v24 = vmul.f32 0.0078125, %v638_v35 }
 0x1ed   : > { %v731_v38 = vmul.f32 %v9403_v29, %v709_v18 }
 0x1ee   : > { %v8294_v10 = vpop.eup %8293  ;;  %v681_v60 = vadd.f32 1e-05, %v665_v24 }
 0x1ef   : > { %v710_v39 = vmul.f32 %v8294_v10, %v9221_v32  ;;  %v640_v40 = vpop.xlane.xlu1 %639  ;;  %v753_v47 = vadd.f32 %v9410_v59, %v731_v38 }
 0x1f0   : > { %8299 = vrsqrt.f32 %v681_v60  ;;  %v666_v21 = vmul.f32 0.0078125, %v640_v40 }
 0x1f1   : > { %v732_v31 = vmul.f32 %v9403_v29, %v710_v39 }
 0x1f2   : > { %v8296_v33 = vpop.eup %8295  ;;  %v682_v44 = vadd.f32 1e-05, %v666_v21 }
 0x1f3   : > { %v754_v19 = vadd.f32 %v9410_v59, %v732_v31  ;;  %v711_v43 = vmul.f32 %v8296_v33, %v9226_v49  ;;  %v642_v30 = vpop.xlane.xlu0 %641 }
 0x1f4   : > { %8301 = vrsqrt.f32 %v682_v44  ;;  %v667_v32 = vmul.f32 0.0078125, %v642_v30 }
 0x1f5   : > { %v9416_v52 = vpack.c.bf16 %v754_v19, %v753_v47  ;;  %v733_v14 = vmul.f32 %v9403_v29, %v711_v43 }
 0x1f6   : > { %v8298_v61 = vpop.eup %8297  ;;  %v683_v13 = vadd.f32 1e-05, %v667_v32 }
 0x1f7   : > { %v712_v11 = vmul.f32 %v8298_v61, %v9237_v42  ;;  %v644_v3 = vpop.xlane.xlu1 %643  ;;  %1148 = vmatmul.mubr.bf16.vlgmr.msra.gmra.mrb[0].mxu0 %v9416_v52  ;;  %v755_v62 = vadd.f32 %v9410_v59, %v733_v14 }
 0x1f8   : > { %8303 = vrsqrt.f32 %v683_v13  ;;  %v668_v0 = vmul.f32 0.0078125, %v644_v3  ;;  %1157 = vmatprep.mubr.bf16.mxu0 %v8835_v45 }
 0x1f9   : > { %v734_v49 = vmul.f32 %v9403_v29, %v712_v11 }
 0x1fa   : > { %v8300_v1 = vpop.eup %8299  ;;  %v684_v63 = vadd.f32 1e-05, %v668_v0 }
 0x1fb   : > { %v756_v2 = vadd.f32 %v9410_v59, %v734_v49  ;;  %v713_v12 = vmul.f32 %v8300_v1, %v9250_v28  ;;  %v646_v4 = vpop.xlane.xlu0 %645 }
 0x1fc   : > { %8305 = vrsqrt.f32 %v684_v63  ;;  %v669_v42 = vmul.f32 0.0078125, %v646_v4 }
 0x1fd   : > { %v9426_v26 = vpack.c.bf16 %v756_v2, %v755_v62  ;;  %v735_v17 = vmul.f32 %v9403_v29, %v713_v12 }
 0x1fe   : > { %v8302_v50 = vpop.eup %8301  ;;  %v685_v6 = vadd.f32 1e-05, %v669_v42 }
 0x1ff   : > { %v714_v7 = vmul.f32 %v8302_v50, %v9264_v51  ;;  %v648_v8 = vpop.xlane.xlu1 %647  ;;  %1158 = vmatmul.mubr.bf16.gmra.mrb[4].mxu0 %v9426_v26  ;;  %v757_v20 = vadd.f32 %v9410_v59, %v735_v17 }
 0x200   : > { %8307 = vrsqrt.f32 %v685_v6  ;;  %v670_v56 = vmul.f32 0.0078125, %v648_v8  ;;  %1167 = vmatprep.mubr.bf16.mxu0 %v8835_v45 }
 0x201   : > { %v736_v28 = vmul.f32 %v9403_v29, %v714_v7 }
 0x202   : > { %v8304_v53 = vpop.eup %8303  ;;  %v686_v48 = vadd.f32 1e-05, %v670_v56 }
 0x203   : > { %v758_v58 = vadd.f32 %v9410_v59, %v736_v28  ;;  %v715_v9 = vmul.f32 %v8304_v53, %v9279_v22  ;;  %v650_v23 = vpop.xlane.xlu0 %649 }
 0x204   : > { %8309 = vrsqrt.f32 %v686_v48  ;;  %v671_v51 = vmul.f32 0.0078125, %v650_v23 }
 0x205   : > { %v9436_v5 = vpack.c.bf16 %v758_v58, %v757_v20  ;;  %v737_v27 = vmul.f32 %v9403_v29, %v715_v9  ;;  %v1025_v58 = vlaneseq }
 0x206   : > { %v8306_v15 = vpop.eup %8305  ;;  %v687_v25 = vadd.f32 1e-05, %v671_v51 }
 0x207   : > { %v716_v18 = vmul.f32 %v8306_v15, %v9293_v34  ;;  %v652_v35 = vpop.xlane.xlu1 %651  ;;  %1168 = vmatmul.mubr.bf16.gmra.mrb[8].mxu0 %v9436_v5  ;;  %v759_v38 = vadd.f32 %v9410_v59, %v737_v27  ;;  %v9481_v15 = vshrl.u32 %v1025_v58, 7 }
 0x208   : > { %8311 = vrsqrt.f32 %v687_v25  ;;  %v672_v24 = vmul.f32 0.0078125, %v652_v35  ;;  %1177 = vmatprep.mubr.bf16.mxu0 %v8835_v45  ;;  %v1244_v35 = vld [vmem:[%s11527_s9] sm:$0x3] }
 0x209   : > { %v738_v22 = vmul.f32 %v9403_v29, %v716_v18  ;;  %v1027_v18 = vsub.s32 0, %v9481_v15 }
 0x20a   : > { %v8308_v10 = vpop.eup %8307  ;;  %v688_v60 = vadd.f32 1e-05, %v672_v24 }
 0x20b   : > { %v760_v39 = vadd.f32 %v9410_v59, %v738_v22  ;;  %v717_v40 = vmul.f32 %v8308_v10, %v9308_v54  ;;  %v654_v21 = vpop.xlane.xlu0 %653  ;;  %v9497_v22 = vrot.slane %v1244_v35, %v1027_v18 }
 0x20c   : > { %8313 = vrsqrt.f32 %v688_v60  ;;  %v673_v34 = vmul.f32 0.0078125, %v654_v21 }
 0x20d   : > { %v9446_v31 = vpack.c.bf16 %v760_v39, %v759_v38  ;;  %v739_v47 = vmul.f32 %v9403_v29, %v717_v40 }
 0x20e   : > { %v8310_v33 = vpop.eup %8309  ;;  %v689_v44 = vadd.f32 1e-05, %v673_v34 }
 0x20f   : > { %v718_v19 = vmul.f32 %v8310_v33, %v9322_v16  ;;  %v656_v43 = vpop.xlane.xlu1 %655  ;;  %1178 = vmatmul.mubr.bf16.gmra.mrb[12].mxu0 %v9446_v31  ;;  %v761_v13 = vadd.f32 %v9410_v59, %v739_v47 }
 0x210   : > { %8315 = vrsqrt.f32 %v689_v44  ;;  %v674_v30 = vmul.f32 0.0078125, %v656_v43  ;;  %1187 = vmatprep.mubr.bf16.mxu0 %v8835_v45 }
 0x211   : > { %v740_v54 = vmul.f32 %v9403_v29, %v718_v19 }
 0x212   : > { %v8312_v32 = vpop.eup %8311  ;;  %v690_v61 = vadd.f32 1e-05, %v674_v30 }
 0x213   : > { %v762_v14 = vadd.f32 %v9410_v59, %v740_v54  ;;  %v719_v11 = vmul.f32 %v8312_v32, %v9337_v41  ;;  %v658_v3 = vpop.xlane.xlu0 %657 }
 0x214   : > { %8317 = vrsqrt.f32 %v690_v61  ;;  %v675_v16 = vmul.f32 0.0078125, %v658_v3 }
 0x215   : > { %v9456_v0 = vpack.c.bf16 %v762_v14, %v761_v13  ;;  %v741_v63 = vmul.f32 %v9403_v29, %v719_v11 }
 0x216   : > { %v8314_v49 = vpop.eup %8313  ;;  %v691_v1 = vadd.f32 1e-05, %v675_v16 }
 0x217   : > { %v720_v62 = vmul.f32 %v8314_v49, %v9348_v37  ;;  %v660_v2 = vpop.xlane.xlu1 %659  ;;  %1188 = vmatmul.mubr.bf16.gmra.mrb[16].mxu0 %v9456_v0  ;;  %v763_v50 = vadd.f32 %v9410_v59, %v741_v63 }
 0x218   : > { %8319 = vrsqrt.f32 %v691_v1  ;;  %v676_v12 = vmul.f32 0.0078125, %v660_v2  ;;  %1197 = vmatprep.mubr.bf16.mxu0 %v8835_v45 }
 0x219   : > { %v742_v41 = vmul.f32 %v9403_v29, %v720_v62 }
 0x21a   : > { %v8316_v4 = vpop.eup %8315  ;;  %v692_v42 = vadd.f32 1e-05, %v676_v12 }
 0x21b   : > { %v764_v6 = vadd.f32 %v9410_v59, %v742_v41  ;;  %v721_v17 = vmul.f32 %v8316_v4, %v9357_v36 }
 0x21c   : > { %8321 = vrsqrt.f32 %v692_v42 }
 0x21d   : > { %v9466_v7 = vpack.c.bf16 %v764_v6, %v763_v50  ;;  %v743_v8 = vmul.f32 %v9403_v29, %v721_v17 }
 0x21e   : > { %v8318_v37 = vpop.eup %8317 }
 0x21f   : > { %v722_v56 = vmul.f32 %v8318_v37, %v9365_v57  ;;  %1198 = vmatmul.mubr.bf16.gmra.mrb[20].mxu0 %v9466_v7  ;;  %v765_v48 = vadd.f32 %v9410_v59, %v743_v8 }
 0x220   : > { %1207 = vmatprep.mubr.bf16.mxu0 %v8835_v45 }
 0x221   : > { %v744_v28 = vmul.f32 %v9403_v29, %v722_v56 }
 0x222   : > { %v8320_v53 = vpop.eup %8319 }
 0x223   : > { %v766_v20 = vadd.f32 %v9410_v59, %v744_v28  ;;  %v723_v36 = vmul.f32 %v8320_v53, %v9374_v55 }
 0x225   : > { %v9476_v9 = vpack.c.bf16 %v766_v20, %v765_v48  ;;  %v745_v51 = vmul.f32 %v9403_v29, %v723_v36 }
 0x226   : > { %v8322_v23 = vpop.eup %8321 }
 0x227   : > { %v724_v57 = vmul.f32 %v8322_v23, %v9382_v46  ;;  %1208 = vmatmul.mubr.bf16.gmra.mrb[24].mxu0 %v9476_v9  ;;  %v767_v27 = vadd.f32 %v9410_v59, %v745_v51  ;;  %v1031_v46 = vsub.s32 1, %v9481_v15 }
 0x228   : > { %1217 = vmatprep.mubr.bf16.mxu0 %v8835_v45 }
 0x229   : > { %v746_v25 = vmul.f32 %v9403_v29, %v724_v57  ;;  %v9501_v29 = vrot.slane %v1244_v35, %v1031_v46 }
 0x22b   : > { %v768_v55 = vadd.f32 %v9410_v59, %v746_v25 }
 0x22d   : > { %v9492_v24 = vpack.c.bf16 %v768_v55, %v767_v27 }
 0x22f   : > { %1218 = vmatmul.mubr.bf16.gmra.mrb[28].mxu0 %v9492_v24 }
 0x232   : > { %v1370_v59 = vpop.f32.mrb[0].mxu1 }
 0x233   : > { %v1371_v10 = vadd.f32 %v1370_v59, %v9497_v22  ;;  %v1372_v60 = vpop.f32.mrb[1].mxu1 }
 0x234   : > { %v1373_v38 = vadd.f32 %v1372_v60, %v9501_v29  ;;  %v1374_v39 = vpop.f32.mrb[2].mxu1 }
 0x235   : > { %v1481_v40 = vsub.f32 0.0, %v1371_v10  ;;  %v1375_v21 = vadd.f32 %v1374_v39, %v9497_v22  ;;  %v1376_v34 = vpop.f32.mrb[3].mxu1 }
 0x236   : > { %v1482_v33 = vsub.f32 0.0, %v1373_v38  ;;  %v1377_v44 = vadd.f32 %v1376_v34, %v9501_v29 }
 0x237   : > { %v1513_v47 = vmul.f32 1.442695, %v1481_v40  ;;  %v1483_v19 = vsub.f32 0.0, %v1375_v21 }
 0x238   : > { %v1515_v43 = vmul.f32 1.442695, %v1482_v33  ;;  %v1484_v30 = vsub.f32 0.0, %v1377_v44 }
 0x239   : > { %8323 = vpow2.f32 %v1513_v47  ;;  %v1517_v54 = vmul.f32 1.442695, %v1483_v19 }
 0x23a   : > { %8325 = vpow2.f32 %v1515_v43  ;;  %v1519_v32 = vmul.f32 1.442695, %v1484_v30  ;;  %v1380_v61 = vpop.f32.mrb[4].mxu1 }
 0x23b   : > { %8327 = vpow2.f32 %v1517_v54  ;;  %v1381_v13 = vadd.f32 %v1380_v61, %v9497_v22  ;;  %v1382_v14 = vpop.f32.mrb[5].mxu1 }
 0x23c   : > { %8329 = vpow2.f32 %v1519_v32  ;;  %v1383_v11 = vadd.f32 %v1382_v14, %v9501_v29  ;;  %v1384_v3 = vpop.f32.mrb[6].mxu1 }
 0x23d   : > { %v1485_v16 = vsub.f32 0.0, %v1381_v13  ;;  %v1385_v49 = vadd.f32 %v1384_v3, %v9497_v22  ;;  %v1386_v1 = vpop.f32.mrb[7].mxu1 }
 0x23e   : > { %v1486_v63 = vsub.f32 0.0, %v1383_v11  ;;  %v1387_v62 = vadd.f32 %v1386_v1, %v9501_v29 }
 0x23f   : > { %v1521_v2 = vmul.f32 1.442695, %v1485_v16  ;;  %v1487_v12 = vsub.f32 0.0, %v1385_v49 }
 0x240   : > { %v1523_v41 = vmul.f32 1.442695, %v1486_v63  ;;  %v1488_v4 = vsub.f32 0.0, %v1387_v62 }
 0x241   : > { %8331 = vpow2.f32 %v1521_v2  ;;  %v1525_v42 = vmul.f32 1.442695, %v1487_v12 }
 0x242   : > { %8333 = vpow2.f32 %v1523_v41  ;;  %v1527_v50 = vmul.f32 1.442695, %v1488_v4  ;;  %v1390_v6 = vpop.f32.mrb[8].mxu1 }
 0x243   : > { %v8324_v17 = vpop.eup %8323  ;;  %8335 = vpow2.f32 %v1525_v42  ;;  %v1391_v37 = vadd.f32 %v1390_v6, %v9497_v22  ;;  %v1392_v8 = vpop.f32.mrb[9].mxu1 }
 0x244   : > { %v8326_v56 = vpop.eup %8325  ;;  %v1577_v28 = vadd.f32 1.0, %v8324_v17  ;;  %8337 = vpow2.f32 %v1527_v50  ;;  %v1393_v53 = vadd.f32 %v1392_v8, %v9501_v29  ;;  %v1394_v48 = vpop.f32.mrb[10].mxu1 }
 0x245   : > { %v8328_v20 = vpop.eup %8327  ;;  %v1578_v36 = vadd.f32 1.0, %v8326_v56  ;;  %v1489_v58 = vsub.f32 0.0, %v1391_v37  ;;  %v1395_v23 = vadd.f32 %v1394_v48, %v9497_v22  ;;  %v1396_v51 = vpop.f32.mrb[11].mxu1 }
 0x246   : > { %v8330_v57 = vpop.eup %8329  ;;  %8339 = vrcp.f32 %v1577_v28  ;;  %v1579_v25 = vadd.f32 1.0, %v8328_v20  ;;  %v1490_v27 = vsub.f32 0.0, %v1393_v53  ;;  %v1397_v55 = vadd.f32 %v1396_v51, %v9501_v29 }
 0x247   : > { %8341 = vrcp.f32 %v1578_v36  ;;  %v1580_v35 = vadd.f32 1.0, %v8330_v57  ;;  %v1529_v59 = vmul.f32 1.442695, %v1489_v58  ;;  %v1491_v10 = vsub.f32 0.0, %v1395_v23 }
 0x248   : > { %8343 = vrcp.f32 %v1579_v25  ;;  %v1531_v60 = vmul.f32 1.442695, %v1490_v27  ;;  %v1492_v38 = vsub.f32 0.0, %v1397_v55 }
 0x249   : > { %8345 = vrcp.f32 %v1580_v35  ;;  %v1533_v39 = vmul.f32 1.442695, %v1491_v10 }
 0x24a   : > { %8347 = vpow2.f32 %v1529_v59  ;;  %v1535_v40 = vmul.f32 1.442695, %v1492_v38  ;;  %v1400_v21 = vpop.f32.mrb[12].mxu1 }
 0x24b   : > { %v8332_v34 = vpop.eup %8331  ;;  %8349 = vpow2.f32 %v1531_v60  ;;  %v1401_v33 = vadd.f32 %v1400_v21, %v9497_v22  ;;  %v1402_v44 = vpop.f32.mrb[13].mxu1 }
 0x24c   : > { %v8334_v47 = vpop.eup %8333  ;;  %v1581_v19 = vadd.f32 1.0, %v8332_v34  ;;  %8351 = vpow2.f32 %v1533_v39  ;;  %v1403_v43 = vadd.f32 %v1402_v44, %v9501_v29  ;;  %v1404_v30 = vpop.f32.mrb[14].mxu1 }
 0x24d   : > { %v8336_v54 = vpop.eup %8335  ;;  %v1582_v32 = vadd.f32 1.0, %v8334_v47  ;;  %8353 = vpow2.f32 %v1535_v40  ;;  %v1493_v61 = vsub.f32 0.0, %v1401_v33  ;;  %v1405_v13 = vadd.f32 %v1404_v30, %v9497_v22  ;;  %v1406_v14 = vpop.f32.mrb[15].mxu1 }
 0x24e   : > { %v8338_v11 = vpop.eup %8337  ;;  %8355 = vrcp.f32 %v1581_v19  ;;  %v1583_v3 = vadd.f32 1.0, %v8336_v54  ;;  %v1494_v16 = vsub.f32 0.0, %v1403_v43  ;;  %v1407_v49 = vadd.f32 %v1406_v14, %v9501_v29 }
 0x24f   : > { %8357 = vrcp.f32 %v1582_v32  ;;  %v1584_v1 = vadd.f32 1.0, %v8338_v11  ;;  %v1537_v63 = vmul.f32 1.442695, %v1493_v61  ;;  %v1495_v62 = vsub.f32 0.0, %v1405_v13 }
 0x250   : > { %v8340_v2 = vpop.eup %8339  ;;  %8359 = vrcp.f32 %v1583_v3  ;;  %v1539_v12 = vmul.f32 1.442695, %v1494_v16  ;;  %v1496_v41 = vsub.f32 0.0, %v1407_v49 }
 0x251   : > { %v8342_v4 = vpop.eup %8341  ;;  %8361 = vrcp.f32 %v1584_v1  ;;  %v1541_v42 = vmul.f32 1.442695, %v1495_v62 }
 0x252   : > { %v8344_v50 = vpop.eup %8343  ;;  %8363 = vpow2.f32 %v1537_v63  ;;  %v1543_v6 = vmul.f32 1.442695, %v1496_v41  ;;  %v1410_v17 = vpop.f32.mrb[16].mxu1 }
 0x253   : > { %v8346_v37 = vpop.eup %8345  ;;  %8365 = vpow2.f32 %v1539_v12  ;;  %v1411_v8 = vadd.f32 %v1410_v17, %v9497_v22  ;;  %v1412_v56 = vpop.f32.mrb[17].mxu1  ;;  %v9520_v28 = vpack.c.bf16 %v8344_v50, %v8340_v2 }
 0x254   : > { %v8348_v53 = vpop.eup %8347  ;;  %8367 = vpow2.f32 %v1541_v42  ;;  %v1413_v48 = vadd.f32 %v1412_v56, %v9501_v29  ;;  %v1414_v20 = vpop.f32.mrb[18].mxu1  ;;  %v9523_v36 = vpack.c.bf16 %v8346_v37, %v8342_v4 }
 0x255   : > { %v8350_v58 = vpop.eup %8349  ;;  %v1585_v23 = vadd.f32 1.0, %v8348_v53  ;;  %8369 = vpow2.f32 %v1543_v6  ;;  %v1497_v51 = vsub.f32 0.0, %v1411_v8  ;;  %v1415_v57 = vadd.f32 %v1414_v20, %v9497_v22  ;;  %v1416_v25 = vpop.f32.mrb[19].mxu1 }
 0x256   : > { %v8352_v27 = vpop.eup %8351  ;;  %v1586_v55 = vadd.f32 1.0, %v8350_v58  ;;  %v1498_v35 = vsub.f32 0.0, %v1413_v48  ;;  %v1417_v59 = vadd.f32 %v1416_v25, %v9501_v29  ;;  %1705 = vmatprep.subr.bf16.mxu1 %v9523_v36 }
 0x257   : > { %v8354_v10 = vpop.eup %8353  ;;  %8371 = vrcp.f32 %v1585_v23  ;;  %v1587_v60 = vadd.f32 1.0, %v8352_v27  ;;  %v1545_v38 = vmul.f32 1.442695, %v1497_v51  ;;  %v1499_v39 = vsub.f32 0.0, %v1415_v57  ;;  %1706 = vmatpush1.bf16.xpose.msra.mxu1 %v9520_v28 }
 0x258   : > { %v8356_v40 = vpop.eup %8355  ;;  %8373 = vrcp.f32 %v1586_v55  ;;  %v1588_v21 = vadd.f32 1.0, %v8354_v10  ;;  %v1547_v34 = vmul.f32 1.442695, %v1498_v35  ;;  %v1500_v33 = vsub.f32 0.0, %v1417_v59 }
 0x259   : > { %v8358_v44 = vpop.eup %8357  ;;  %8375 = vrcp.f32 %v1587_v60  ;;  %v1549_v47 = vmul.f32 1.442695, %v1499_v39 }
 0x25a   : > { %v8360_v19 = vpop.eup %8359  ;;  %8377 = vrcp.f32 %v1588_v21  ;;  %v1551_v43 = vmul.f32 1.442695, %v1500_v33  ;;  %v1420_v30 = vpop.f32.mrb[20].mxu1 }
 0x25b   : > { %v8362_v54 = vpop.eup %8361  ;;  %8379 = vpow2.f32 %v1545_v38  ;;  %v1421_v32 = vadd.f32 %v1420_v30, %v9497_v22  ;;  %v1422_v61 = vpop.f32.mrb[21].mxu1  ;;  %v9530_v13 = vpack.c.bf16 %v8360_v19, %v8356_v40 }
 0x25c   : > { %v8364_v14 = vpop.eup %8363  ;;  %8381 = vpow2.f32 %v1547_v34  ;;  %v1423_v11 = vadd.f32 %v1422_v61, %v9501_v29  ;;  %v1424_v3 = vpop.f32.mrb[22].mxu1  ;;  %v9533_v16 = vpack.c.bf16 %v8362_v54, %v8358_v44 }
 0x25d   : > { %v8366_v49 = vpop.eup %8365  ;;  %v1589_v1 = vadd.f32 1.0, %v8364_v14  ;;  %8383 = vpow2.f32 %v1549_v47  ;;  %v1501_v63 = vsub.f32 0.0, %v1421_v32  ;;  %v1425_v62 = vadd.f32 %v1424_v3, %v9497_v22  ;;  %v1426_v2 = vpop.f32.mrb[23].mxu1 }
 0x25e   : > { %v8368_v12 = vpop.eup %8367  ;;  %v1590_v41 = vadd.f32 1.0, %v8366_v49  ;;  %8385 = vpow2.f32 %v1551_v43  ;;  %v1502_v4 = vsub.f32 0.0, %v1423_v11  ;;  %v1427_v42 = vadd.f32 %v1426_v2, %v9501_v29  ;;  %1707 = vmatprep.subr.bf16.mxu1 %v9533_v16 }
 0x25f   : > { %v8370_v50 = vpop.eup %8369  ;;  %8387 = vrcp.f32 %v1589_v1  ;;  %v1591_v6 = vadd.f32 1.0, %v8368_v12  ;;  %v1553_v17 = vmul.f32 1.442695, %v1501_v63  ;;  %v1503_v37 = vsub.f32 0.0, %v1425_v62  ;;  %1708 = vmatpush1.bf16.xpose.msra.mxu1 %v9530_v13 }
 0x260   : > { %8389 = vrcp.f32 %v1590_v41  ;;  %v1592_v8 = vadd.f32 1.0, %v8370_v50  ;;  %v1555_v56 = vmul.f32 1.442695, %v1502_v4  ;;  %v1504_v53 = vsub.f32 0.0, %v1427_v42 }
 0x261   : > { %v8372_v48 = vpop.eup %8371  ;;  %8391 = vrcp.f32 %v1591_v6  ;;  %v1557_v20 = vmul.f32 1.442695, %v1503_v37 }
 0x262   : > { %v8374_v58 = vpop.eup %8373  ;;  %8393 = vrcp.f32 %v1592_v8  ;;  %v1559_v23 = vmul.f32 1.442695, %v1504_v53  ;;  %v1430_v51 = vpop.f32.mrb[24].mxu1 }
 0x263   : > { %v8376_v57 = vpop.eup %8375  ;;  %8395 = vpow2.f32 %v1553_v17  ;;  %v1431_v25 = vadd.f32 %v1430_v51, %v9497_v22  ;;  %v1432_v27 = vpop.f32.mrb[25].mxu1 }
 0x264   : > { %v8378_v55 = vpop.eup %8377  ;;  %8397 = vpow2.f32 %v1555_v56  ;;  %v1433_v35 = vadd.f32 %v1432_v27, %v9501_v29  ;;  %v1434_v59 = vpop.f32.mrb[26].mxu1  ;;  %v9541_v10 = vpack.c.bf16 %v8376_v57, %v8372_v48 }
 0x265   : > { %v8380_v60 = vpop.eup %8379  ;;  %8399 = vpow2.f32 %v1557_v20  ;;  %v1505_v38 = vsub.f32 0.0, %v1431_v25  ;;  %v1435_v39 = vadd.f32 %v1434_v59, %v9497_v22  ;;  %v1436_v40 = vpop.f32.mrb[27].mxu1  ;;  %v9544_v21 = vpack.c.bf16 %v8378_v55, %v8374_v58 }
 0x266   : > { %v8382_v34 = vpop.eup %8381  ;;  %v1593_v33 = vadd.f32 1.0, %v8380_v60  ;;  %8401 = vpow2.f32 %v1559_v23  ;;  %v1506_v44 = vsub.f32 0.0, %v1433_v35  ;;  %v1437_v47 = vadd.f32 %v1436_v40, %v9501_v29 }
 0x267   : > { %v8384_v19 = vpop.eup %8383  ;;  %v1594_v43 = vadd.f32 1.0, %v8382_v34  ;;  %v1507_v30 = vsub.f32 0.0, %v1435_v39  ;;  %1709 = vmatprep.subr.bf16.mxu1 %v9544_v21  ;;  %v1561_v61 = vmul.f32 1.442695, %v1505_v38 }
 0x268   : > { %v8386_v54 = vpop.eup %8385  ;;  %8403 = vrcp.f32 %v1593_v33  ;;  %v1595_v32 = vadd.f32 1.0, %v8384_v19  ;;  %v1508_v14 = vsub.f32 0.0, %v1437_v47  ;;  %1710 = vmatpush1.bf16.xpose.msra.mxu1 %v9541_v10  ;;  %v1563_v49 = vmul.f32 1.442695, %v1506_v44 }
 0x269   : > { %v8388_v11 = vpop.eup %8387  ;;  %8405 = vrcp.f32 %v1594_v43  ;;  %v1596_v3 = vadd.f32 1.0, %v8386_v54  ;;  %v1565_v63 = vmul.f32 1.442695, %v1507_v30 }
 0x26a   : > { %v8390_v1 = vpop.eup %8389  ;;  %8407 = vrcp.f32 %v1595_v32  ;;  %v1440_v62 = vpop.f32.mrb[28].mxu1  ;;  %v1567_v12 = vmul.f32 1.442695, %v1508_v14 }
 0x26b   : > { %v8392_v2 = vpop.eup %8391  ;;  %8409 = vrcp.f32 %v1596_v3  ;;  %v1441_v41 = vadd.f32 %v1440_v62, %v9497_v22  ;;  %v1442_v4 = vpop.f32.mrb[29].mxu1 }
 0x26c   : > { %v8394_v42 = vpop.eup %8393  ;;  %8411 = vpow2.f32 %v1561_v61  ;;  %v1443_v50 = vadd.f32 %v1442_v4, %v9501_v29  ;;  %v1444_v6 = vpop.f32.mrb[30].mxu1  ;;  %v9551_v17 = vpack.c.bf16 %v8392_v2, %v8388_v11 }
 0x26d   : > { %v8396_v37 = vpop.eup %8395  ;;  %8413 = vpow2.f32 %v1563_v49  ;;  %v1509_v8 = vsub.f32 0.0, %v1441_v41  ;;  %v1445_v56 = vadd.f32 %v1444_v6, %v9497_v22  ;;  %v1446_v53 = vpop.f32.mrb[31].mxu1  ;;  %v9554_v48 = vpack.c.bf16 %v8394_v42, %v8390_v1 }
 0x26e   : > { %v8398_v20 = vpop.eup %8397  ;;  %v1597_v58 = vadd.f32 1.0, %v8396_v37  ;;  %8415 = vpow2.f32 %v1565_v63  ;;  %v1510_v23 = vsub.f32 0.0, %v1443_v50  ;;  %v1447_v51 = vadd.f32 %v1446_v53, %v9501_v29 }
 0x26f   : > { %v8400_v57 = vpop.eup %8399  ;;  %v1598_v25 = vadd.f32 1.0, %v8398_v20  ;;  %8417 = vpow2.f32 %v1567_v12  ;;  %v1511_v27 = vsub.f32 0.0, %v1445_v56  ;;  %1711 = vmatprep.subr.bf16.mxu1 %v9554_v48  ;;  %v1569_v59 = vmul.f32 1.442695, %v1509_v8 }
 0x270   : > { %v8402_v55 = vpop.eup %8401  ;;  %8419 = vrcp.f32 %v1597_v58  ;;  %v1599_v35 = vadd.f32 1.0, %v8400_v57  ;;  %v1512_v22 = vsub.f32 0.0, %v1447_v51  ;;  %1712 = vmatpush1.bf16.xpose.msra.mxu1 %v9551_v17  ;;  %v1571_v38 = vmul.f32 1.442695, %v1510_v23 }
 0x271   : > { %8421 = vrcp.f32 %v1598_v25  ;;  %v1600_v60 = vadd.f32 1.0, %v8402_v55  ;;  %v1573_v40 = vmul.f32 1.442695, %v1511_v27 }
 0x272   : > { %v8404_v39 = vpop.eup %8403  ;;  %8423 = vrcp.f32 %v1599_v35  ;;  %v1575_v34 = vmul.f32 1.442695, %v1512_v22 }
 0x273   : > { %v8406_v29 = vpop.eup %8405  ;;  %8425 = vrcp.f32 %v1600_v60  ;;  %v1023_v60 = vld [vmem:[%s11525_s7] sm:$0x3] }
 0x274   : > { %v8408_v33 = vpop.eup %8407  ;;  %8427 = vpow2.f32 %v1569_v59 }
 0x275   : > { %v8410_v44 = vpop.eup %8409  ;;  %8429 = vpow2.f32 %v1571_v38  ;;  %v9559_v47 = vpack.c.bf16 %v8408_v33, %v8404_v39  ;;  %v9589_v38 = vrot.slane %v1023_v60, %v1027_v18  ;;  %v9593_v39 = vrot.slane %v1023_v60, %v1031_v46 }
 0x276   : > { %v8412_v19 = vpop.eup %8411  ;;  %8431 = vpow2.f32 %v1573_v40  ;;  %v9561_v43 = vpack.c.bf16 %v8410_v44, %v8406_v29 }
 0x277   : > { %v8414_v30 = vpop.eup %8413  ;;  %v1601_v54 = vadd.f32 1.0, %v8412_v19  ;;  %8433 = vpow2.f32 %v1575_v34 }
 0x278   : > { %v8416_v32 = vpop.eup %8415  ;;  %v1602_v61 = vadd.f32 1.0, %v8414_v30  ;;  %1713 = vmatprep.subr.bf16.mxu1 %v9561_v43 }
 0x279   : > { %v8418_v14 = vpop.eup %8417  ;;  %8435 = vrcp.f32 %v1601_v54  ;;  %v1603_v11 = vadd.f32 1.0, %v8416_v32  ;;  %1714 = vmatpush1.bf16.xpose.msra.mxu1 %v9559_v47 }
 0x27a   : > { %v8420_v3 = vpop.eup %8419  ;;  %8437 = vrcp.f32 %v1602_v61  ;;  %v1604_v49 = vadd.f32 1.0, %v8418_v14 }
 0x27b   : > { %v8422_v1 = vpop.eup %8421  ;;  %8439 = vrcp.f32 %v1603_v11 }
 0x27c   : > { %v8424_v63 = vpop.eup %8423  ;;  %8441 = vrcp.f32 %v1604_v49 }
 0x27d   : > { %v8426_v62 = vpop.eup %8425  ;;  %v9565_v2 = vpack.c.bf16 %v8424_v63, %v8420_v3 }
 0x27e   : > { %v8428_v12 = vpop.eup %8427  ;;  %v9567_v41 = vpack.c.bf16 %v8426_v62, %v8422_v1 }
 0x27f   : > { %v8430_v4 = vpop.eup %8429  ;;  %v1605_v42 = vadd.f32 1.0, %v8428_v12 }
 0x280   : > { %v8432_v50 = vpop.eup %8431  ;;  %v1606_v6 = vadd.f32 1.0, %v8430_v4  ;;  %1715 = vmatprep.subr.bf16.mxu1 %v9567_v41 }
 0x281   : > { %v8434_v37 = vpop.eup %8433  ;;  %8443 = vrcp.f32 %v1605_v42  ;;  %v1607_v8 = vadd.f32 1.0, %v8432_v50  ;;  %1716 = vmatpush1.bf16.xpose.msra.mxu1 %v9565_v2 }
 0x282   : > { %8445 = vrcp.f32 %v1606_v6  ;;  %v1608_v56 = vadd.f32 1.0, %v8434_v37 }
 0x283   : > { %v8436_v53 = vpop.eup %8435  ;;  %8447 = vrcp.f32 %v1607_v8 }
 0x284   : > { %v8438_v20 = vpop.eup %8437  ;;  %8449 = vrcp.f32 %v1608_v56 }
 0x285   : > { %v8440_v58 = vpop.eup %8439 }
 0x286   : > { %v8442_v23 = vpop.eup %8441  ;;  %v9571_v51 = vpack.c.bf16 %v8440_v58, %v8436_v53 }
 0x287   : > { %v9573_v57 = vpack.c.bf16 %v8442_v23, %v8438_v20 }
 0x289   : > { %1717 = vmatprep.subr.bf16.mxu1 %v9573_v57 }
 0x28a   : > { %1718 = vmatpush1.bf16.xpose.msra.mxu1 %v9571_v51 }
 0x28b   : > { %v8444_v25 = vpop.eup %8443 }
 0x28c   : > { %v8446_v27 = vpop.eup %8445 }
 0x28d   : > { %v8448_v55 = vpop.eup %8447 }
 0x28e   : > { %v8450_v35 = vpop.eup %8449  ;;  %v9577_v59 = vpack.c.bf16 %v8448_v55, %v8444_v25 }
 0x28f   : > { %v9579_v22 = vpack.c.bf16 %v8450_v35, %v8446_v27 }
 0x291   : > { %1719 = vmatprep.subr.bf16.mxu1 %v9579_v22 }
 0x292   : > { %1720 = vmatpush1.bf16.xpose.msra.mxu1 %v9577_v59 }
 0x293   : > { %1810 = vmatprep.subr.bf16.mxu1 %v9523_v36 }
 0x2ca   : > { %v1149_v40 = vpop.f32.mrb[0].mxu0 }
 0x2cb   : > { %v1150_v29 = vadd.f32 %v1149_v40, %v9589_v38  ;;  %v1151_v34 = vpop.f32.mrb[1].mxu0 }
 0x2cc   : > { %v1152_v33 = vadd.f32 %v1151_v34, %v9593_v39  ;;  %v1153_v44 = vpop.f32.mrb[2].mxu0 }
 0x2cd   : > { %8451 = vtanh.f32 %v1150_v29  ;;  %v1154_v36 = vadd.f32 %v1153_v44, %v9589_v38  ;;  %v1155_v19 = vpop.f32.mrb[3].mxu0 }
 0x2ce   : > { %8453 = vtanh.f32 %v1152_v33  ;;  %v1156_v30 = vadd.f32 %v1155_v19, %v9593_v39 }
 0x2cf   : > { %8455 = vtanh.f32 %v1154_v36 }
 0x2d0   : > { %8457 = vtanh.f32 %v1156_v30 }
 0x2d2   : > { %v1159_v18 = vpop.f32.mrb[4].mxu0 }
 0x2d3   : > { %v1160_v15 = vadd.f32 %v1159_v18, %v9589_v38  ;;  %v1161_v46 = vpop.f32.mrb[5].mxu0 }
 0x2d4   : > { %v1162_v54 = vadd.f32 %v1161_v46, %v9593_v39  ;;  %v1163_v32 = vpop.f32.mrb[6].mxu0 }
 0x2d5   : > { %8459 = vtanh.f32 %v1160_v15  ;;  %v1164_v61 = vadd.f32 %v1163_v32, %v9589_v38  ;;  %v1165_v14 = vpop.f32.mrb[7].mxu0 }
 0x2d6   : > { %8461 = vtanh.f32 %v1162_v54  ;;  %v1166_v11 = vadd.f32 %v1165_v14, %v9593_v39 }
 0x2d7   : > { %v8452_v3 = vpop.eup %8451  ;;  %8463 = vtanh.f32 %v1164_v61 }
 0x2d8   : > { %v8454_v49 = vpop.eup %8453  ;;  %8465 = vtanh.f32 %v1166_v11 }
 0x2d9   : > { %v8456_v1 = vpop.eup %8455 }
 0x2da   : > { %v8458_v63 = vpop.eup %8457  ;;  %v1169_v62 = vpop.f32.mrb[8].mxu0  ;;  %v1673_v12 = vpack.c.bf16 %v8456_v1, %v8452_v3 }
 0x2db   : > { %v1170_v4 = vadd.f32 %v1169_v62, %v9589_v38  ;;  %v1171_v42 = vpop.f32.mrb[9].mxu0  ;;  %v1674_v50 = vpack.c.bf16 %v8458_v63, %v8454_v49 }
 0x2dc   : > { %v1172_v6 = vadd.f32 %v1171_v42, %v9593_v39  ;;  %v1173_v37 = vpop.f32.mrb[10].mxu0 }
 0x2dd   : > { %8467 = vtanh.f32 %v1170_v4  ;;  %v1174_v8 = vadd.f32 %v1173_v37, %v9589_v38  ;;  %v1175_v56 = vpop.f32.mrb[11].mxu0  ;;  %1737 = vmatprep.mubr.bf16.mxu1 %v1674_v50 }
 0x2de   : > { %8469 = vtanh.f32 %v1172_v6  ;;  %v1176_v53 = vadd.f32 %v1175_v56, %v9593_v39  ;;  %1738 = vmatmul.mubr.bf16.vlgmr.msra.gmra.mrb[32].mxu1 %v1673_v12 }
 0x2df   : > { %v8460_v20 = vpop.eup %8459  ;;  %8471 = vtanh.f32 %v1174_v8  ;;  %1811 = vmatpush1.bf16.msra.mxu1 %v9520_v28 }
 0x2e0   : > { %v8462_v58 = vpop.eup %8461  ;;  %8473 = vtanh.f32 %v1176_v53  ;;  %1812 = vmatprep.subr.bf16.mxu1 %v9533_v16 }
 0x2e1   : > { %v8464_v23 = vpop.eup %8463 }
 0x2e2   : > { %v8466_v25 = vpop.eup %8465  ;;  %v1179_v27 = vpop.f32.mrb[12].mxu0  ;;  %v1675_v55 = vpack.c.bf16 %v8464_v23, %v8460_v20 }
 0x2e3   : > { %v1180_v35 = vadd.f32 %v1179_v27, %v9589_v38  ;;  %1813 = vmatpush1.bf16.msra.mxu1 %v9530_v13  ;;  %v1181_v60 = vpop.f32.mrb[13].mxu0  ;;  %v1676_v40 = vpack.c.bf16 %v8466_v25, %v8462_v58 }
 0x2e4   : > { %v1182_v29 = vadd.f32 %v1181_v60, %v9593_v39  ;;  %1814 = vmatprep.subr.bf16.mxu1 %v9544_v21  ;;  %v1183_v34 = vpop.f32.mrb[14].mxu0 }
 0x2e5   : > { %8475 = vtanh.f32 %v1180_v35  ;;  %v1184_v28 = vadd.f32 %v1183_v34, %v9589_v38  ;;  %v1185_v33 = vpop.f32.mrb[15].mxu0  ;;  %1745 = vmatprep.mubr.bf16.mxu1 %v1676_v40 }
 0x2e6   : > { %8477 = vtanh.f32 %v1182_v29  ;;  %v1186_v16 = vadd.f32 %v1185_v33, %v9593_v39  ;;  %1746 = vmatmul.mubr.bf16.gmra.mrb[36].mxu1 %v1675_v55 }
 0x2e7   : > { %v8468_v44 = vpop.eup %8467  ;;  %8479 = vtanh.f32 %v1184_v28  ;;  %1815 = vmatpush1.bf16.msra.mxu1 %v9541_v10 }
 0x2e8   : > { %v8470_v13 = vpop.eup %8469  ;;  %8481 = vtanh.f32 %v1186_v16  ;;  %1816 = vmatprep.subr.bf16.mxu1 %v9554_v48 }
 0x2e9   : > { %v8472_v36 = vpop.eup %8471 }
 0x2ea   : > { %v8474_v21 = vpop.eup %8473  ;;  %v1189_v19 = vpop.f32.mrb[16].mxu0  ;;  %v1677_v30 = vpack.c.bf16 %v8472_v36, %v8468_v44 }
 0x2eb   : > { %v1190_v18 = vadd.f32 %v1189_v19, %v9589_v38  ;;  %1817 = vmatpush1.bf16.msra.mxu1 %v9551_v17  ;;  %v1191_v15 = vpop.f32.mrb[17].mxu0  ;;  %v1678_v46 = vpack.c.bf16 %v8474_v21, %v8470_v13 }
 0x2ec   : > { %v1192_v54 = vadd.f32 %v1191_v15, %v9593_v39  ;;  %1818 = vmatprep.subr.bf16.mxu1 %v9561_v43  ;;  %v1193_v32 = vpop.f32.mrb[18].mxu0 }
 0x2ed   : > { %8483 = vtanh.f32 %v1190_v18  ;;  %v1194_v10 = vadd.f32 %v1193_v32, %v9589_v38  ;;  %v1195_v61 = vpop.f32.mrb[19].mxu0  ;;  %1753 = vmatprep.mubr.bf16.mxu1 %v1678_v46 }
 0x2ee   : > { %8485 = vtanh.f32 %v1192_v54  ;;  %v1196_v48 = vadd.f32 %v1195_v61, %v9593_v39  ;;  %1754 = vmatmul.mubr.bf16.gmra.mrb[40].mxu1 %v1677_v30 }
 0x2ef   : > { %v8476_v14 = vpop.eup %8475  ;;  %8487 = vtanh.f32 %v1194_v10  ;;  %1819 = vmatpush1.bf16.msra.mxu1 %v9559_v47 }
 0x2f0   : > { %v8478_v17 = vpop.eup %8477  ;;  %8489 = vtanh.f32 %v1196_v48  ;;  %1820 = vmatprep.subr.bf16.mxu1 %v9567_v41 }
 0x2f1   : > { %v8480_v11 = vpop.eup %8479 }
 0x2f2   : > { %v8482_v43 = vpop.eup %8481  ;;  %v1199_v3 = vpop.f32.mrb[20].mxu0  ;;  %v1679_v49 = vpack.c.bf16 %v8480_v11, %v8476_v14  ;;  %v8124_v14 = vld [vmem:[%s11528_s10] sm:$0xff]   ;;  %v8127_v11 = vld [vmem:[%s11528_s10 + $0x48] sm:$0xff]  }
 0x2f3   : > { %v1200_v1 = vadd.f32 %v1199_v3, %v9589_v38  ;;  %1821 = vmatpush1.bf16.msra.mxu1 %v9565_v2  ;;  %v1201_v63 = vpop.f32.mrb[21].mxu0  ;;  %v1680_v62 = vpack.c.bf16 %v8482_v43, %v8478_v17  ;;  %v8125_v17 = vld [vmem:[%s11528_s10 + $0xc0] sm:$0xff]   ;;  %v8128_v43 = vld [vmem:[%s11528_s10 + $0x8] sm:$0xff]   ;;  %v8131_v3 = vld [vmem:[%s11528_s10 + $0x50] sm:$0xff]  }
 0x2f4   : > { %v1202_v12 = vadd.f32 %v1201_v63, %v9593_v39  ;;  %1822 = vmatprep.subr.bf16.mxu1 %v9573_v57  ;;  %v1203_v4 = vpop.f32.mrb[22].mxu0  ;;  %v8136_v63 = vld [vmem:[%s11528_s10 + $0x18] sm:$0xff]  }
 0x2f5   : > { %8491 = vtanh.f32 %v1200_v1  ;;  %v1204_v47 = vadd.f32 %v1203_v4, %v9589_v38  ;;  %v1205_v42 = vpop.f32.mrb[23].mxu0  ;;  %1761 = vmatprep.mubr.bf16.mxu1 %v1680_v62  ;;  %v8135_v1 = vld [vmem:[%s11528_s10 + $0x58] sm:$0xff]   ;;  %v8139_v62 = vld [vmem:[%s11528_s10 + $0x60] sm:$0xff]   ;;  %v8143_v4 = vld [vmem:[%s11528_s10 + $0x68] sm:$0xff]  }
 0x2f6   : > { %8493 = vtanh.f32 %v1202_v12  ;;  %v1206_v41 = vadd.f32 %v1205_v42, %v9593_v39  ;;  %1762 = vmatmul.mubr.bf16.gmra.mrb[44].mxu1 %v1679_v49  ;;  %v8132_v49 = vld [vmem:[%s11528_s10 + $0x10] sm:$0xff]   ;;  %v8140_v12 = vld [vmem:[%s11528_s10 + $0x20] sm:$0xff]  }
 0x2f7   : > { %v8484_v50 = vpop.eup %8483  ;;  %8495 = vtanh.f32 %v1204_v47  ;;  %1823 = vmatpush1.bf16.msra.mxu1 %v9571_v51  ;;  %v8144_v47 = vld [vmem:[%s11528_s10 + $0x28] sm:$0xff]   ;;  %v8147_v42 = vld [vmem:[%s11528_s10 + $0x70] sm:$0xff]  }
 0x2f8   : > { %v8486_v2 = vpop.eup %8485  ;;  %8497 = vtanh.f32 %v1206_v41  ;;  %1824 = vmatprep.subr.bf16.mxu1 %v9579_v22  ;;  %v8148_v41 = vld [vmem:[%s11528_s10 + $0x30] sm:$0xff]  }
 0x2f9   : > { %v8488_v6 = vpop.eup %8487 }
 0x2fa   : > { %v8490_v57 = vpop.eup %8489  ;;  %v1209_v37 = vpop.f32.mrb[24].mxu0  ;;  %v1681_v8 = vpack.c.bf16 %v8488_v6, %v8484_v50  ;;  %v8151_v50 = vld [vmem:[%s11528_s10 + $0x78] sm:$0xff]  }
 0x2fb   : > { %v1210_v56 = vadd.f32 %v1209_v37, %v9589_v38  ;;  %1825 = vmatpush1.bf16.msra.mxu1 %v9577_v59  ;;  %v1211_v53 = vpop.f32.mrb[25].mxu0  ;;  %v1682_v20 = vpack.c.bf16 %v8490_v57, %v8486_v2  ;;  %v8152_v2 = vld [vmem:[%s11528_s10 + $0x38] sm:$0xff]  }
 0x2fc   : > { %v1212_v58 = vadd.f32 %v1211_v53, %v9593_v39  ;;  %v1213_v23 = vpop.f32.mrb[26].mxu0  ;;  %6873 = vmatprep.subr.bf16.mxu1 %v8125_v17 }
 0x2fd   : > { %8499 = vtanh.f32 %v1210_v56  ;;  %v1214_v51 = vadd.f32 %v1213_v23, %v9589_v38  ;;  %v1215_v25 = vpop.f32.mrb[27].mxu0  ;;  %1769 = vmatprep.mubr.bf16.mxu1 %v1682_v20  ;;  %v8129_v20 = vld [vmem:[%s11528_s10 + $0xc8] sm:$0xff]   ;;  %v8133_v23 = vld [vmem:[%s11528_s10 + $0xd0] sm:$0xff]  }
 0x2fe   : > { %8501 = vtanh.f32 %v1212_v58  ;;  %v1216_v22 = vadd.f32 %v1215_v25, %v9593_v39  ;;  %1770 = vmatmul.mubr.bf16.gmra.mrb[48].mxu1 %v1681_v8  ;;  %v8126_v8 = vld [vmem:[%s11528_s10 + $0x80] sm:$0xff]   ;;  %v8130_v58 = vld [vmem:[%s11528_s10 + $0x88] sm:$0xff]  }
 0x2ff   : > { %v8492_v27 = vpop.eup %8491  ;;  %8503 = vtanh.f32 %v1214_v51 }
 0x300   : > { %v8494_v55 = vpop.eup %8493  ;;  %8505 = vtanh.f32 %v1216_v22 }
 0x301   : > { %v8496_v35 = vpop.eup %8495 }
 0x302   : > { %v8498_v59 = vpop.eup %8497  ;;  %v1219_v60 = vpop.f32.mrb[28].mxu0  ;;  %v1683_v40 = vpack.c.bf16 %v8496_v35, %v8492_v27  ;;  %v8134_v27 = vld [vmem:[%s11528_s10 + $0x90] sm:$0xff]  }
 0x303   : > { %v1220_v29 = vadd.f32 %v1219_v60, %v9589_v38  ;;  %v1221_v34 = vpop.f32.mrb[29].mxu0  ;;  %v1684_v28 = vpack.c.bf16 %v8498_v59, %v8494_v55  ;;  %v8137_v59 = vld [vmem:[%s11528_s10 + $0xd8] sm:$0xff]  }
 0x304   : > { %v1222_v33 = vadd.f32 %v1221_v34, %v9593_v39  ;;  %v1223_v16 = vpop.f32.mrb[30].mxu0  ;;  %v8138_v60 = vld [vmem:[%s11528_s10 + $0x98] sm:$0xff]  }
 0x305   : > { %8507 = vtanh.f32 %v1220_v29  ;;  %v1224_v44 = vadd.f32 %v1223_v16, %v9589_v38  ;;  %v1225_v13 = vpop.f32.mrb[31].mxu0  ;;  %1777 = vmatprep.mubr.bf16.mxu1 %v1684_v28 }
 0x306   : > { %8509 = vtanh.f32 %v1222_v33  ;;  %v1226_v36 = vadd.f32 %v1225_v13, %v9593_v39  ;;  %1778 = vmatmul.mubr.bf16.gmra.mrb[52].mxu1 %v1683_v40  ;;  %v8123_v39 = vld [vmem:[%s11528_s10 + $0x40] sm:$0xff]   ;;  %v8145_v13 = vld [vmem:[%s11528_s10 + $0xe8] sm:$0xff]  }
 0x307   : > { %v8500_v21 = vpop.eup %8499  ;;  %8511 = vtanh.f32 %v1224_v44  ;;  %6809 = vmatprep.subr.bf16.mxu0 %v8123_v39  ;;  %v8141_v40 = vld [vmem:[%s11528_s10 + $0xe0] sm:$0xff]  }
 0x308   : > { %v8502_v19 = vpop.eup %8501  ;;  %8513 = vtanh.f32 %v1226_v36  ;;  %6810 = vmatpush3.bf16.msra.mxu0 %v8124_v14  ;;  %v8142_v33 = vld [vmem:[%s11528_s10 + $0xa0] sm:$0xff]   ;;  %v8146_v36 = vld [vmem:[%s11528_s10 + $0xa8] sm:$0xff]  }
 0x309   : > { %v8504_v30 = vpop.eup %8503  ;;  %6811 = vmatprep.subr.bf16.mxu0 %v8127_v11 }
 0x30a   : > { %v8506_v18 = vpop.eup %8505  ;;  %v1685_v15 = vpack.c.bf16 %v8504_v30, %v8500_v21  ;;  %v8149_v21 = vld [vmem:[%s11528_s10 + $0xf0] sm:$0xff]  }
 0x30b   : > { %v1686_v46 = vpack.c.bf16 %v8506_v18, %v8502_v19 }
 0x30c   : > { %6812 = vmatpush3.bf16.msra.mxu0 %v8128_v43 }
 0x30d   : > { %1785 = vmatprep.mubr.bf16.mxu1 %v1686_v46  ;;  %6813 = vmatprep.subr.bf16.mxu0 %v8131_v3 }
 0x30e   : > { %1786 = vmatmul.mubr.bf16.gmra.mrb[56].mxu1 %v1685_v15  ;;  %v8150_v15 = vld [vmem:[%s11528_s10 + $0xb0] sm:$0xff]  }
 0x30f   : > { %v8508_v54 = vpop.eup %8507 }
 0x310   : > { %v8510_v32 = vpop.eup %8509  ;;  %6814 = vmatpush3.bf16.msra.mxu0 %v8132_v49 }
 0x311   : > { %v8512_v10 = vpop.eup %8511  ;;  %6815 = vmatprep.subr.bf16.mxu0 %v8135_v1 }
 0x312   : > { %v8514_v38 = vpop.eup %8513  ;;  %v1687_v61 = vpack.c.bf16 %v8512_v10, %v8508_v54 }
 0x313   : > { %v1688_v48 = vpack.c.bf16 %v8514_v38, %v8510_v32 }
 0x314   : > { %6816 = vmatpush3.bf16.msra.mxu0 %v8136_v63 }
 0x315   : > { %1793 = vmatprep.mubr.bf16.mxu1 %v1688_v48  ;;  %6817 = vmatprep.subr.bf16.mxu0 %v8139_v62 }
 0x316   : > { %1794 = vmatmul.mubr.bf16.gmra.mrb[60].mxu1 %v1687_v61 }
 0x317   : > { %1842 = vmatprep.mubr.bf16.mxu1 %v8835_v45 }
 0x318   : > { %6818 = vmatpush3.bf16.msra.mxu0 %v8140_v12 }
 0x319   : > { %6819 = vmatprep.subr.bf16.mxu0 %v8143_v4 }
 0x31c   : > { %6820 = vmatpush3.bf16.msra.mxu0 %v8144_v47 }
 0x31d   : > { %6821 = vmatprep.subr.bf16.mxu0 %v8147_v42 }
 0x320   : > { %6822 = vmatpush3.bf16.msra.mxu0 %v8148_v41 }
 0x321   : > { %6823 = vmatprep.subr.bf16.mxu0 %v8151_v50  ;;  %v8153_v50 = vld [vmem:[%s11528_s10 + $0xf8] sm:$0xff]  }
 0x324   : > { %6824 = vmatpush3.bf16.msra.mxu0 %v8152_v2  ;;  %v8154_v2 = vld [vmem:[%s11528_s10 + $0xb8] sm:$0xff]  }
 0x3b1   : > { %v1739_v6 = vpop.f32.mrb[32].mxu1 }
 0x3b2   : > { %v1741_v57 = vpop.f32.mrb[33].mxu1 }
 0x3b3   : > { %v1742_v37 = vpop.f32.mrb[34].mxu1 }
 0x3b4   : > { %v1802_v56 = vpack.c.bf16 %v1742_v37, %v1739_v6  ;;  %v1744_v53 = vpop.f32.mrb[35].mxu1  ;;  %v8157_v6 = vld [vmem:[%s11528_s10 + $0x1c0] sm:$0xff]  }
 0x3b6   : > { %1843 = vmatmul.mubr.bf16.vlgmr.msra.gmra.mrb[64].mxu1 %v1802_v56 }
 0x3b7   : > { %1852 = vmatprep.mubr.bf16.mxu1 %v8835_v45  ;;  %6874 = vmatpush3.bf16.msra.mxu1 %v8126_v8 }
 0x3b8   : > { %6875 = vmatprep.subr.bf16.mxu1 %v8129_v20 }
 0x3b9   : > { %v1747_v51 = vpop.f32.mrb[36].mxu1 }
 0x3ba   : > { %v1749_v25 = vpop.f32.mrb[37].mxu1 }
 0x3bb   : > { %v1750_v22 = vpop.f32.mrb[38].mxu1  ;;  %6876 = vmatpush3.bf16.msra.mxu1 %v8130_v58  ;;  %v8156_v58 = vld [vmem:[%s11528_s10 + $0x100] sm:$0xff]   ;;  %v8161_v25 = vld [vmem:[%s11528_s10 + $0x1c8] sm:$0xff]  }
 0x3bc   : > { %v1803_v55 = vpack.c.bf16 %v1750_v22, %v1747_v51  ;;  %v1752_v35 = vpop.f32.mrb[39].mxu1  ;;  %6877 = vmatprep.subr.bf16.mxu1 %v8133_v23  ;;  %v8158_v23 = vld [vmem:[%s11528_s10 + $0x180] sm:$0xff]   ;;  %v8159_v51 = vld [vmem:[%s11528_s10 + $0x148] sm:$0xff]  }
 0x3be   : > { %1853 = vmatmul.mubr.bf16.gmra.mrb[68].mxu1 %v1803_v55  ;;  %v8162_v55 = vld [vmem:[%s11528_s10 + $0x188] sm:$0xff]  }
 0x3bf   : > { %1862 = vmatprep.mubr.bf16.mxu1 %v8835_v45  ;;  %6878 = vmatpush3.bf16.msra.mxu1 %v8134_v27  ;;  %v8160_v27 = vld [vmem:[%s11528_s10 + $0x108] sm:$0xff]  }
 0x3c0   : > { %6879 = vmatprep.subr.bf16.mxu1 %v8137_v59  ;;  %v8163_v59 = vld [vmem:[%s11528_s10 + $0x150] sm:$0xff]  }
 0x3c1   : > { %v1755_v29 = vpop.f32.mrb[40].mxu1 }
 0x3c2   : > { %v1757_v34 = vpop.f32.mrb[41].mxu1 }
 0x3c3   : > { %v1758_v28 = vpop.f32.mrb[42].mxu1  ;;  %6880 = vmatpush3.bf16.msra.mxu1 %v8138_v60  ;;  %v8165_v60 = vld [vmem:[%s11528_s10 + $0x1d0] sm:$0xff]  }
 0x3c4   : > { %v1804_v16 = vpack.c.bf16 %v1758_v28, %v1755_v29  ;;  %v1760_v44 = vpop.f32.mrb[43].mxu1  ;;  %6881 = vmatprep.subr.bf16.mxu1 %v8141_v40 }
 0x3c5   : > { %v8167_v44 = vld [vmem:[%s11528_s10 + $0x158] sm:$0xff]  }
 0x3c6   : > { %1863 = vmatmul.mubr.bf16.gmra.mrb[72].mxu1 %v1804_v16  ;;  %v8166_v16 = vld [vmem:[%s11528_s10 + $0x190] sm:$0xff]  }
 0x3c7   : > { %1872 = vmatprep.mubr.bf16.mxu1 %v8835_v45  ;;  %6882 = vmatpush3.bf16.msra.mxu1 %v8142_v33  ;;  %v8164_v33 = vld [vmem:[%s11528_s10 + $0x110] sm:$0xff]  }
 0x3c8   : > { %6883 = vmatprep.subr.bf16.mxu1 %v8145_v13  ;;  %v8169_v13 = vld [vmem:[%s11528_s10 + $0x1d8] sm:$0xff]  }
 0x3c9   : > { %v1763_v19 = vpop.f32.mrb[44].mxu1 }
 0x3ca   : > { %v1765_v30 = vpop.f32.mrb[45].mxu1 }
 0x3cb   : > { %v1766_v18 = vpop.f32.mrb[46].mxu1  ;;  %6884 = vmatpush3.bf16.msra.mxu1 %v8146_v36 }
 0x3cc   : > { %v1805_v46 = vpack.c.bf16 %v1766_v18, %v1763_v19  ;;  %v1768_v54 = vpop.f32.mrb[47].mxu1  ;;  %6885 = vmatprep.subr.bf16.mxu1 %v8149_v21  ;;  %v8168_v21 = vld [vmem:[%s11528_s10 + $0x118] sm:$0xff]   ;;  %v8171_v18 = vld [vmem:[%s11528_s10 + $0x160] sm:$0xff]  }
 0x3cd   : > { %v8170_v19 = vld [vmem:[%s11528_s10 + $0x198] sm:$0xff]  }
 0x3ce   : > { %1873 = vmatmul.mubr.bf16.gmra.mrb[76].mxu1 %v1805_v46 }
 0x3cf   : > { %1882 = vmatprep.mubr.bf16.mxu1 %v8835_v45  ;;  %6886 = vmatpush3.bf16.msra.mxu1 %v8150_v15  ;;  %v8173_v15 = vld [vmem:[%s11528_s10 + $0x1e0] sm:$0xff]  }
 0x3d0   : > { %6887 = vmatprep.subr.bf16.mxu1 %v8153_v50 }
 0x3d1   : > { %v1771_v32 = vpop.f32.mrb[48].mxu1 }
 0x3d2   : > { %v1773_v10 = vpop.f32.mrb[49].mxu1 }
 0x3d3   : > { %v1774_v38 = vpop.f32.mrb[50].mxu1  ;;  %6888 = vmatpush3.bf16.msra.mxu1 %v8154_v2  ;;  %v8184_v2 = vld [vmem:[%s11528_s10 + $0x138] sm:$0xff]  }
 0x3d4   : > { %v1806_v61 = vpack.c.bf16 %v1774_v38, %v1771_v32  ;;  %v1776_v48 = vpop.f32.mrb[51].mxu1  ;;  %7001 = vmatprep.subr.bf16.mxu1 %v8157_v6  ;;  %v8172_v38 = vld [vmem:[%s11528_s10 + $0x120] sm:$0xff]  }
 0x3d5   : > { %v8175_v48 = vld [vmem:[%s11528_s10 + $0x168] sm:$0xff]  }
 0x3d6   : > { %1883 = vmatmul.mubr.bf16.gmra.mrb[80].mxu1 %v1806_v61  ;;  %v8174_v61 = vld [vmem:[%s11528_s10 + $0x1a0] sm:$0xff]  }
 0x3d7   : > { %1892 = vmatprep.mubr.bf16.mxu1 %v8835_v45 }
 0x3d9   : > { %v1779_v39 = vpop.f32.mrb[52].mxu1 }
 0x3da   : > { %v1781_v14 = vpop.f32.mrb[53].mxu1 }
 0x3db   : > { %v1782_v17 = vpop.f32.mrb[54].mxu1 }
 0x3dc   : > { %v1807_v11 = vpack.c.bf16 %v1782_v17, %v1779_v39  ;;  %v1784_v43 = vpop.f32.mrb[55].mxu1  ;;  %v8177_v39 = vld [vmem:[%s11528_s10 + $0x1e8] sm:$0xff]  }
 0x3dd   : > { %v8176_v17 = vld [vmem:[%s11528_s10 + $0x128] sm:$0xff]  }
 0x3de   : > { %1893 = vmatmul.mubr.bf16.gmra.mrb[84].mxu1 %v1807_v11  ;;  %v8178_v11 = vld [vmem:[%s11528_s10 + $0x1a8] sm:$0xff]  }
 0x3df   : > { %1902 = vmatprep.mubr.bf16.mxu1 %v8835_v45 }
 0x3e1   : > { %v1787_v3 = vpop.f32.mrb[56].mxu1 }
 0x3e2   : > { %v1789_v49 = vpop.f32.mrb[57].mxu1 }
 0x3e3   : > { %v1790_v1 = vpop.f32.mrb[58].mxu1  ;;  %v8181_v49 = vld [vmem:[%s11528_s10 + $0x1f0] sm:$0xff]  }
 0x3e4   : > { %v1808_v63 = vpack.c.bf16 %v1790_v1, %v1787_v3  ;;  %v1792_v62 = vpop.f32.mrb[59].mxu1  ;;  %v8179_v3 = vld [vmem:[%s11528_s10 + $0x170] sm:$0xff]  }
 0x3e6   : > { %1903 = vmatmul.mubr.bf16.gmra.mrb[88].mxu1 %v1808_v63 }
 0x3e7   : > { %1912 = vmatprep.mubr.bf16.mxu1 %v8835_v45  ;;  %v8155_v45 = vld [vmem:[%s11528_s10 + $0x140] sm:$0xff]  }
 0x3e8   : > { %6937 = vmatprep.subr.bf16.mxu0 %v8155_v45  ;;  %v8186_v45 = vld [vmem:[%s11528_s10 + $0x1b8] sm:$0xff]  }
 0x3e9   : > { %v1795_v12 = vpop.f32.mrb[60].mxu1 }
 0x3ea   : > { %v1797_v4 = vpop.f32.mrb[61].mxu1 }
 0x3eb   : > { %v1798_v47 = vpop.f32.mrb[62].mxu1  ;;  %v8180_v4 = vld [vmem:[%s11528_s10 + $0x130] sm:$0xff]  }
 0x3ec   : > { %v1809_v42 = vpack.c.bf16 %v1798_v47, %v1795_v12  ;;  %v1800_v41 = vpop.f32.mrb[63].mxu1  ;;  %v8182_v47 = vld [vmem:[%s11528_s10 + $0x1b0] sm:$0xff]  }
 0x3ed   : > { %v8185_v41 = vld [vmem:[%s11528_s10 + $0x1f8] sm:$0xff]  }
 0x3ee   : > { %1913 = vmatmul.mubr.bf16.gmra.mrb[92].mxu1 %v1809_v42  ;;  %v8183_v42 = vld [vmem:[%s11528_s10 + $0x178] sm:$0xff]  }
 0x489   : > { %v1844_v57 = vpop.f32.mrb[64].mxu1 }
 0x48a   : > { %v1846_v37 = vpop.f32.mrb[65].mxu1 }
 0x48b   : > { %v1848_v8 = vpop.f32.mrb[66].mxu1 }
 0x48c   : > { %v9752_v56 = vpack.c.bf16 %v1848_v8, %v1844_v57  ;;  %v1850_v53 = vpop.f32.mrb[67].mxu1  ;;  %v8187_v57 = vld [vmem:[%s11529_s11] sm:$0xff]  }
 0x48d   : > { %v9754_v20 = vpack.c.bf16 %v1850_v53, %v1846_v37  ;;  %v8188_v37 = vld [vmem:[%s11529_s11 + $0x40] sm:$0xff]  }
 0x48f   : > { %2195 = vmatprep.mubr.bf16.mxu0 %v9754_v20  ;;  %2388 = vmatprep.mubr.bf16.mxu1 %v9754_v20 }
 0x490   : > { %2196 = vmatmul.mubr.bf16.vlgmr.msra.gmra.mrb[32].mxu0 %v9752_v56  ;;  %2389 = vmatmul.mubr.bf16.vlgmr.msra.gmra.mrb[96].mxu1 %v9752_v56 }
 0x491   : > { %6938 = vmatpush3.bf16.msra.mxu0 %v8156_v58  ;;  %v1854_v22 = vpop.f32.mrb[68].mxu1  ;;  %7002 = vmatpush3.bf16.msra.mxu1 %v8158_v23 }
 0x492   : > { %v1856_v35 = vpop.f32.mrb[69].mxu1  ;;  %6939 = vmatprep.subr.bf16.mxu0 %v8159_v51  ;;  %7003 = vmatprep.subr.bf16.mxu1 %v8161_v25 }
 0x493   : > { %v1858_v40 = vpop.f32.mrb[70].mxu1 }
 0x494   : > { %v9784_v29 = vpack.c.bf16 %v1858_v40, %v1854_v22  ;;  %v1860_v34 = vpop.f32.mrb[71].mxu1 }
 0x495   : > { %v9786_v28 = vpack.c.bf16 %v1860_v34, %v1856_v35  ;;  %6940 = vmatpush3.bf16.msra.mxu0 %v8160_v27  ;;  %7004 = vmatpush3.bf16.msra.mxu1 %v8162_v55 }
 0x496   : > { %6941 = vmatprep.subr.bf16.mxu0 %v8163_v59  ;;  %7005 = vmatprep.subr.bf16.mxu1 %v8165_v60 }
 0x497   : > { %2203 = vmatprep.mubr.bf16.mxu0 %v9786_v28  ;;  %2396 = vmatprep.mubr.bf16.mxu1 %v9786_v28 }
 0x498   : > { %2204 = vmatmul.mubr.bf16.gmra.mrb[36].mxu0 %v9784_v29  ;;  %2397 = vmatmul.mubr.bf16.gmra.mrb[100].mxu1 %v9784_v29 }
 0x499   : > { %v1864_v36 = vpop.f32.mrb[72].mxu1  ;;  %6942 = vmatpush3.bf16.msra.mxu0 %v8164_v33  ;;  %7006 = vmatpush3.bf16.msra.mxu1 %v8166_v16 }
 0x49a   : > { %v1866_v30 = vpop.f32.mrb[73].mxu1  ;;  %6943 = vmatprep.subr.bf16.mxu0 %v8167_v44  ;;  %7007 = vmatprep.subr.bf16.mxu1 %v8169_v13 }
 0x49b   : > { %v1868_v46 = vpop.f32.mrb[74].mxu1 }
 0x49c   : > { %v9816_v54 = vpack.c.bf16 %v1868_v46, %v1864_v36  ;;  %v1870_v32 = vpop.f32.mrb[75].mxu1  ;;  %v8192_v46 = vld [vmem:[%s11529_s11 + $0x50] sm:$0xff]  }
 0x49d   : > { %v9818_v10 = vpack.c.bf16 %v1870_v32, %v1866_v30  ;;  %6944 = vmatpush3.bf16.msra.mxu0 %v8168_v21  ;;  %7008 = vmatpush3.bf16.msra.mxu1 %v8170_v19  ;;  %v8195_v32 = vld [vmem:[%s11529_s11 + $0x20] sm:$0xff]  }
 0x49e   : > { %6945 = vmatprep.subr.bf16.mxu0 %v8171_v18  ;;  %7009 = vmatprep.subr.bf16.mxu1 %v8173_v15  ;;  %v8189_v18 = vld [vmem:[%s11529_s11 + $0x8] sm:$0xff]  }
 0x49f   : > { %2211 = vmatprep.mubr.bf16.mxu0 %v9818_v10  ;;  %2404 = vmatprep.mubr.bf16.mxu1 %v9818_v10  ;;  %v8190_v15 = vld [vmem:[%s11529_s11 + $0x48] sm:$0xff]  }
 0x4a0   : > { %2212 = vmatmul.mubr.bf16.gmra.mrb[40].mxu0 %v9816_v54  ;;  %2405 = vmatmul.mubr.bf16.gmra.mrb[104].mxu1 %v9816_v54 }
 0x4a1   : > { %v1874_v14 = vpop.f32.mrb[76].mxu1  ;;  %6946 = vmatpush3.bf16.msra.mxu0 %v8172_v38  ;;  %7010 = vmatpush3.bf16.msra.mxu1 %v8174_v61  ;;  %v8196_v38 = vld [vmem:[%s11529_s11 + $0x60] sm:$0xff]   ;;  %v8199_v61 = vld [vmem:[%s11529_s11 + $0x30] sm:$0xff]  }
 0x4a2   : > { %v1876_v43 = vpop.f32.mrb[77].mxu1  ;;  %6947 = vmatprep.subr.bf16.mxu0 %v8175_v48  ;;  %7011 = vmatprep.subr.bf16.mxu1 %v8177_v39  ;;  %v8200_v48 = vld [vmem:[%s11529_s11 + $0x70] sm:$0xff]   ;;  %v8202_v39 = vld [vmem:[%s11529_s11 + $0x78] sm:$0xff]  }
 0x4a3   : > { %v1878_v1 = vpop.f32.mrb[78].mxu1 }
 0x4a4   : > { %v9848_v63 = vpack.c.bf16 %v1878_v1, %v1874_v14  ;;  %v1880_v62 = vpop.f32.mrb[79].mxu1  ;;  %v8203_v14 = vld [vmem:[%s11529_s11 + $0x80] sm:$0xff]   ;;  %v8209_v1 = vld [vmem:[%s11529_s11 + $0x98] sm:$0xff]  }
 0x4a5   : > { %v9850_v12 = vpack.c.bf16 %v1880_v62, %v1876_v43  ;;  %6948 = vmatpush3.bf16.msra.mxu0 %v8176_v17  ;;  %7012 = vmatpush3.bf16.msra.mxu1 %v8178_v11  ;;  %v8204_v17 = vld [vmem:[%s11529_s11 + $0xc0] sm:$0xff]   ;;  %v8205_v11 = vld [vmem:[%s11529_s11 + $0x88] sm:$0xff]  }
 0x4a6   : > { %6949 = vmatprep.subr.bf16.mxu0 %v8179_v3  ;;  %7013 = vmatprep.subr.bf16.mxu1 %v8181_v49  ;;  %v8206_v43 = vld [vmem:[%s11529_s11 + $0xc8] sm:$0xff]   ;;  %v8207_v3 = vld [vmem:[%s11529_s11 + $0x90] sm:$0xff]   ;;  %v8211_v62 = vld [vmem:[%s11529_s11 + $0xa0] sm:$0xff]  }
 0x4a7   : > { %2219 = vmatprep.mubr.bf16.mxu0 %v9850_v12  ;;  %2412 = vmatprep.mubr.bf16.mxu1 %v9850_v12  ;;  %v8208_v49 = vld [vmem:[%s11529_s11 + $0xd0] sm:$0xff]  }
 0x4a8   : > { %2220 = vmatmul.mubr.bf16.gmra.mrb[44].mxu0 %v9848_v63  ;;  %2413 = vmatmul.mubr.bf16.gmra.mrb[108].mxu1 %v9848_v63 }
 0x4a9   : > { %v1884_v50 = vpop.f32.mrb[80].mxu1  ;;  %6950 = vmatpush3.bf16.msra.mxu0 %v8180_v4  ;;  %7014 = vmatpush3.bf16.msra.mxu1 %v8182_v47  ;;  %v8213_v4 = vld [vmem:[%s11529_s11 + $0xa8] sm:$0xff]  }
 0x4aa   : > { %v1886_v6 = vpop.f32.mrb[81].mxu1  ;;  %6951 = vmatprep.subr.bf16.mxu0 %v8183_v42  ;;  %7015 = vmatprep.subr.bf16.mxu1 %v8185_v41  ;;  %v8214_v47 = vld [vmem:[%s11529_s11 + $0xe8] sm:$0xff]   ;;  %v8215_v42 = vld [vmem:[%s11529_s11 + $0xb0] sm:$0xff]  }
 0x4ab   : > { %v1888_v8 = vpop.f32.mrb[82].mxu1  ;;  %v8216_v41 = vld [vmem:[%s11529_s11 + $0xf0] sm:$0xff]  }
 0x4ac   : > { %v9880_v53 = vpack.c.bf16 %v1888_v8, %v1884_v50  ;;  %v1890_v58 = vpop.f32.mrb[83].mxu1  ;;  %v8217_v50 = vld [vmem:[%s11529_s11 + $0xb8] sm:$0xff]   ;;  %v8223_v8 = vld [vmem:[%s11530_s12 + $0x10] sm:$0xff]  }
 0x4ad   : > { %v9882_v23 = vpack.c.bf16 %v1890_v58, %v1886_v6  ;;  %6952 = vmatpush3.bf16.msra.mxu0 %v8184_v2  ;;  %7016 = vmatpush3.bf16.msra.mxu1 %v8186_v45  ;;  %v8218_v2 = vld [vmem:[%s11529_s11 + $0xf8] sm:$0xff]   ;;  %v8219_v45 = vld [vmem:[%s11530_s12] sm:$0xff]  }
 0x4ae   : > { %7361 = vmatprep.subr.bf16.mxu0 %v8187_v57  ;;  %7393 = vmatprep.subr.bf16.mxu1 %v8188_v37  ;;  %v8220_v6 = vld [vmem:[%s11530_s12 + $0x40] sm:$0xff]   ;;  %v8225_v58 = vld [vmem:[%s11530_s12 + $0x18] sm:$0xff]  }
 0x4af   : > { %2227 = vmatprep.mubr.bf16.mxu0 %v9882_v23  ;;  %2420 = vmatprep.mubr.bf16.mxu1 %v9882_v23 }
 0x4b0   : > { %2228 = vmatmul.mubr.bf16.gmra.mrb[48].mxu0 %v9880_v53  ;;  %2421 = vmatmul.mubr.bf16.gmra.mrb[112].mxu1 %v9880_v53 }
 0x4b1   : > { %v1894_v51 = vpop.f32.mrb[84].mxu1 }
 0x4b2   : > { %v1896_v25 = vpop.f32.mrb[85].mxu1 }
 0x4b3   : > { %v1898_v22 = vpop.f32.mrb[86].mxu1 }
 0x4b4   : > { %v9888_v27 = vpack.c.bf16 %v1898_v22, %v1894_v51  ;;  %v1900_v55 = vpop.f32.mrb[87].mxu1  ;;  %v8227_v51 = vld [vmem:[%s11530_s12 + $0x20] sm:$0xff]   ;;  %v8229_v22 = vld [vmem:[%s11530_s12 + $0x28] sm:$0xff]  }
 0x4b5   : > { %v9890_v35 = vpack.c.bf16 %v1900_v55, %v1896_v25  ;;  %v8228_v25 = vld [vmem:[%s11530_s12 + $0x60] sm:$0xff]   ;;  %v8231_v55 = vld [vmem:[%s11530_s12 + $0x30] sm:$0xff]  }
 0x4b7   : > { %2235 = vmatprep.mubr.bf16.mxu0 %v9890_v35  ;;  %2428 = vmatprep.mubr.bf16.mxu1 %v9890_v35 }
 0x4b8   : > { %2236 = vmatmul.mubr.bf16.gmra.mrb[52].mxu0 %v9888_v27  ;;  %2429 = vmatmul.mubr.bf16.gmra.mrb[116].mxu1 %v9888_v27 }
 0x4b9   : > { %v1904_v59 = vpop.f32.mrb[88].mxu1 }
 0x4ba   : > { %v1906_v60 = vpop.f32.mrb[89].mxu1 }
 0x4bb   : > { %v1908_v40 = vpop.f32.mrb[90].mxu1 }
 0x4bc   : > { %v9896_v34 = vpack.c.bf16 %v1908_v40, %v1904_v59  ;;  %v1910_v33 = vpop.f32.mrb[91].mxu1  ;;  %v8233_v59 = vld [vmem:[%s11530_s12 + $0x38] sm:$0xff]   ;;  %v8235_v40 = vld [vmem:[%s11530_s12 + $0x80] sm:$0xff]  }
 0x4bd   : > { %v9898_v16 = vpack.c.bf16 %v1910_v33, %v1906_v60  ;;  %v8234_v60 = vld [vmem:[%s11530_s12 + $0x78] sm:$0xff]   ;;  %v8237_v33 = vld [vmem:[%s11530_s12 + $0x88] sm:$0xff]  }
 0x4bf   : > { %2243 = vmatprep.mubr.bf16.mxu0 %v9898_v16  ;;  %2436 = vmatprep.mubr.bf16.mxu1 %v9898_v16 }
 0x4c0   : > { %2244 = vmatmul.mubr.bf16.gmra.mrb[56].mxu0 %v9896_v34  ;;  %2437 = vmatmul.mubr.bf16.gmra.mrb[120].mxu1 %v9896_v34 }
 0x4c1   : > { %v1914_v44 = vpop.f32.mrb[92].mxu1 }
 0x4c2   : > { %v1916_v13 = vpop.f32.mrb[93].mxu1 }
 0x4c3   : > { %v1918_v36 = vpop.f32.mrb[94].mxu1 }
 0x4c4   : > { %v9904_v21 = vpack.c.bf16 %v1918_v36, %v1914_v44  ;;  %v1920_v19 = vpop.f32.mrb[95].mxu1  ;;  %v8239_v44 = vld [vmem:[%s11530_s12 + $0x90] sm:$0xff]   ;;  %v8241_v36 = vld [vmem:[%s11530_s12 + $0x98] sm:$0xff]  }
 0x4c5   : > { %v9906_v30 = vpack.c.bf16 %v1920_v19, %v1916_v13  ;;  %v8240_v13 = vld [vmem:[%s11530_s12 + $0xd0] sm:$0xff]   ;;  %v8243_v19 = vld [vmem:[%s11530_s12 + $0xa0] sm:$0xff]  }
 0x4c7   : > { %2251 = vmatprep.mubr.bf16.mxu0 %v9906_v30  ;;  %2444 = vmatprep.mubr.bf16.mxu1 %v9906_v30 }
 0x4c8   : > { %2252 = vmatmul.mubr.bf16.gmra.mrb[60].mxu0 %v9904_v21  ;;  %2445 = vmatmul.mubr.bf16.gmra.mrb[124].mxu1 %v9904_v21 }
 0x4c9   : > { %2581 = vmatprep.mubr.bf16.mxu0 %v9754_v20  ;;  %2774 = vmatprep.mubr.bf16.mxu1 %v9754_v20  ;;  %v8191_v20 = vld [vmem:[%s11529_s11 + $0x10] sm:$0xff]  }
 0x4d0   : > { %2582 = vmatmul.mubr.bf16.vlgmr.msra.gmra.mrb[64].mxu0 %v9752_v56  ;;  %2775 = vmatmul.mubr.bf16.vlgmr.msra.gmra.mrb[128].mxu1 %v9752_v56  ;;  %v8193_v56 = vld [vmem:[%s11529_s11 + $0x18] sm:$0xff]  }
 0x4d1   : > { %7362 = vmatpush3.bf16.msra.mxu0 %v8187_v57  ;;  %2589 = vmatprep.mubr.bf16.mxu0 %v9786_v28  ;;  %v8221_v57 = vld [vmem:[%s11530_s12 + $0x8] sm:$0xff]  }
 0x4d2   : > { %2782 = vmatprep.mubr.bf16.mxu1 %v9786_v28  ;;  %7394 = vmatpush3.bf16.msra.mxu1 %v8188_v37  ;;  %v8194_v28 = vld [vmem:[%s11529_s11 + $0x58] sm:$0xff]   ;;  %v8222_v37 = vld [vmem:[%s11530_s12 + $0x48] sm:$0xff]  }
 0x4d3   : > { %7363 = vmatprep.subr.bf16.mxu0 %v8189_v18  ;;  %7395 = vmatprep.subr.bf16.mxu1 %v8190_v15 }
 0x4d5   : > { %7364 = vmatpush3.bf16.msra.mxu0 %v8189_v18  ;;  %v8245_v18 = vld [vmem:[%s11530_s12 + $0xa8] sm:$0xff]  }
 0x4d6   : > { %7396 = vmatpush3.bf16.msra.mxu1 %v8190_v15  ;;  %7365 = vmatprep.subr.bf16.mxu0 %v8191_v20  ;;  %v8246_v15 = vld [vmem:[%s11530_s12 + $0xe8] sm:$0xff]  }
 0x4d7   : > { %7397 = vmatprep.subr.bf16.mxu1 %v8192_v46 }
 0x4d8   : > { %2590 = vmatmul.mubr.bf16.gmra.mrb[68].mxu0 %v9784_v29  ;;  %2783 = vmatmul.mubr.bf16.gmra.mrb[132].mxu1 %v9784_v29  ;;  %v8197_v29 = vld [vmem:[%s11529_s11 + $0x28] sm:$0xff]  }
 0x4d9   : > { %2597 = vmatprep.mubr.bf16.mxu0 %v9818_v10  ;;  %2790 = vmatprep.mubr.bf16.mxu1 %v9818_v10  ;;  %v8198_v10 = vld [vmem:[%s11529_s11 + $0x68] sm:$0xff]  }
 0x4da   : > { %7366 = vmatpush3.bf16.msra.mxu0 %v8191_v20  ;;  %7398 = vmatpush3.bf16.msra.mxu1 %v8192_v46 }
 0x4db   : > { %7367 = vmatprep.subr.bf16.mxu0 %v8193_v56  ;;  %7399 = vmatprep.subr.bf16.mxu1 %v8194_v28 }
 0x4de   : > { %7368 = vmatpush3.bf16.msra.mxu0 %v8193_v56  ;;  %7400 = vmatpush3.bf16.msra.mxu1 %v8194_v28 }
 0x4df   : > { %7369 = vmatprep.subr.bf16.mxu0 %v8195_v32  ;;  %7401 = vmatprep.subr.bf16.mxu1 %v8196_v38 }
 0x4e0   : > { %2598 = vmatmul.mubr.bf16.gmra.mrb[72].mxu0 %v9816_v54  ;;  %2791 = vmatmul.mubr.bf16.gmra.mrb[136].mxu1 %v9816_v54  ;;  %v8201_v54 = vld [vmem:[%s11529_s11 + $0x38] sm:$0xff]  }
 0x4e1   : > { %2605 = vmatprep.mubr.bf16.mxu0 %v9850_v12  ;;  %2798 = vmatprep.mubr.bf16.mxu1 %v9850_v12  ;;  %v8212_v12 = vld [vmem:[%s11529_s11 + $0xe0] sm:$0xff]  }
 0x4e2   : > { %7370 = vmatpush3.bf16.msra.mxu0 %v8195_v32  ;;  %7402 = vmatpush3.bf16.msra.mxu1 %v8196_v38 }
 0x4e3   : > { %7371 = vmatprep.subr.bf16.mxu0 %v8197_v29  ;;  %7403 = vmatprep.subr.bf16.mxu1 %v8198_v10 }
 0x4e6   : > { %7372 = vmatpush3.bf16.msra.mxu0 %v8197_v29  ;;  %7404 = vmatpush3.bf16.msra.mxu1 %v8198_v10 }
 0x4e7   : > { %7373 = vmatprep.subr.bf16.mxu0 %v8199_v61  ;;  %7405 = vmatprep.subr.bf16.mxu1 %v8200_v48 }
 0x4e8   : > { %2606 = vmatmul.mubr.bf16.gmra.mrb[76].mxu0 %v9848_v63  ;;  %2799 = vmatmul.mubr.bf16.gmra.mrb[140].mxu1 %v9848_v63  ;;  %v8210_v63 = vld [vmem:[%s11529_s11 + $0xd8] sm:$0xff]  }
 0x4e9   : > { %2613 = vmatprep.mubr.bf16.mxu0 %v9882_v23  ;;  %2806 = vmatprep.mubr.bf16.mxu1 %v9882_v23  ;;  %v8226_v23 = vld [vmem:[%s11530_s12 + $0x58] sm:$0xff]  }
 0x4ea   : > { %7374 = vmatpush3.bf16.msra.mxu0 %v8199_v61  ;;  %7406 = vmatpush3.bf16.msra.mxu1 %v8200_v48  ;;  %v8247_v61 = vld [vmem:[%s11530_s12 + $0xb0] sm:$0xff]  }
 0x4eb   : > { %7375 = vmatprep.subr.bf16.mxu0 %v8201_v54  ;;  %7407 = vmatprep.subr.bf16.mxu1 %v8202_v39  ;;  %v8248_v48 = vld [vmem:[%s11530_s12 + $0xf0] sm:$0xff]  }
 0x4ee   : > { %7376 = vmatpush3.bf16.msra.mxu0 %v8201_v54  ;;  %7408 = vmatpush3.bf16.msra.mxu1 %v8202_v39 }
 0x4ef   : > { %7425 = vmatprep.subr.bf16.mxu0 %v8203_v14  ;;  %7457 = vmatprep.subr.bf16.mxu1 %v8204_v17 }
 0x4f0   : > { %2614 = vmatmul.mubr.bf16.gmra.mrb[80].mxu0 %v9880_v53  ;;  %2807 = vmatmul.mubr.bf16.gmra.mrb[144].mxu1 %v9880_v53  ;;  %v8224_v53 = vld [vmem:[%s11530_s12 + $0x50] sm:$0xff]  }
 0x4f1   : > { %2621 = vmatprep.mubr.bf16.mxu0 %v9890_v35  ;;  %2814 = vmatprep.mubr.bf16.mxu1 %v9890_v35  ;;  %v8232_v35 = vld [vmem:[%s11530_s12 + $0x70] sm:$0xff]  }
 0x4f8   : > { %2622 = vmatmul.mubr.bf16.gmra.mrb[84].mxu0 %v9888_v27  ;;  %2815 = vmatmul.mubr.bf16.gmra.mrb[148].mxu1 %v9888_v27  ;;  %v8230_v27 = vld [vmem:[%s11530_s12 + $0x68] sm:$0xff]  }
 0x4f9   : > { %2629 = vmatprep.mubr.bf16.mxu0 %v9898_v16  ;;  %2822 = vmatprep.mubr.bf16.mxu1 %v9898_v16  ;;  %v8238_v16 = vld [vmem:[%s11530_s12 + $0xc8] sm:$0xff]  }
 0x500   : > { %2630 = vmatmul.mubr.bf16.gmra.mrb[88].mxu0 %v9896_v34  ;;  %2823 = vmatmul.mubr.bf16.gmra.mrb[152].mxu1 %v9896_v34  ;;  %v8236_v34 = vld [vmem:[%s11530_s12 + $0xc0] sm:$0xff]  }
 0x501   : > { %2637 = vmatprep.mubr.bf16.mxu0 %v9906_v30  ;;  %2830 = vmatprep.mubr.bf16.mxu1 %v9906_v30  ;;  %v8244_v30 = vld [vmem:[%s11530_s12 + $0xe0] sm:$0xff]  }
 0x508   : > { %2638 = vmatmul.mubr.bf16.gmra.mrb[92].mxu0 %v9904_v21  ;;  %2831 = vmatmul.mubr.bf16.gmra.mrb[156].mxu1 %v9904_v21  ;;  %v8242_v21 = vld [vmem:[%s11530_s12 + $0xd8] sm:$0xff]  }
 0x509   : > { %7377 = vmatprep.mubr.bf16.mxu0 %v9416_v52  ;;  %7409 = vmatprep.mubr.bf16.mxu1 %v9416_v52 }
 0x510   : > { %7378 = vmatmul.mubr.bf16.vlgmr.msra.gmra.mrb[96].mxu0 %v9426_v26  ;;  %7410 = vmatmul.mubr.bf16.vlgmr.msra.gmra.mrb[160].mxu1 %v9426_v26 }
 0x511   : > { %7381 = vmatprep.mubr.bf16.mxu0 %v9436_v5  ;;  %7413 = vmatprep.mubr.bf16.mxu1 %v9436_v5 }
 0x512   : > { %7426 = vmatpush3.bf16.msra.mxu0 %v8203_v14  ;;  %7458 = vmatpush3.bf16.msra.mxu1 %v8204_v17 }
 0x513   : > { %7427 = vmatprep.subr.bf16.mxu0 %v8205_v11  ;;  %7459 = vmatprep.subr.bf16.mxu1 %v8206_v43 }
 0x516   : > { %7428 = vmatpush3.bf16.msra.mxu0 %v8205_v11  ;;  %7460 = vmatpush3.bf16.msra.mxu1 %v8206_v43 }
 0x517   : > { %7429 = vmatprep.subr.bf16.mxu0 %v8207_v3  ;;  %7461 = vmatprep.subr.bf16.mxu1 %v8208_v49 }
 0x518   : > { %7382 = vmatmul.mubr.bf16.gmra.mrb[100].mxu0 %v9446_v31  ;;  %7414 = vmatmul.mubr.bf16.gmra.mrb[164].mxu1 %v9446_v31 }
 0x519   : > { %7385 = vmatprep.mubr.bf16.mxu0 %v9456_v0  ;;  %7417 = vmatprep.mubr.bf16.mxu1 %v9456_v0 }
 0x51a   : > { %7430 = vmatpush3.bf16.msra.mxu0 %v8207_v3  ;;  %7462 = vmatpush3.bf16.msra.mxu1 %v8208_v49  ;;  %v8249_v3 = vld [vmem:[%s11530_s12 + $0xb8] sm:$0xff]  }
 0x51b   : > { %7431 = vmatprep.subr.bf16.mxu0 %v8209_v1  ;;  %7463 = vmatprep.subr.bf16.mxu1 %v8210_v63  ;;  %v8250_v49 = vld [vmem:[%s11530_s12 + $0xf8] sm:$0xff]  }
 0x51e   : > { %7432 = vmatpush3.bf16.msra.mxu0 %v8209_v1  ;;  %7464 = vmatpush3.bf16.msra.mxu1 %v8210_v63 }
 0x51f   : > { %7433 = vmatprep.subr.bf16.mxu0 %v8211_v62  ;;  %7465 = vmatprep.subr.bf16.mxu1 %v8212_v12 }
 0x520   : > { %7386 = vmatmul.mubr.bf16.gmra.mrb[104].mxu0 %v9466_v7  ;;  %7418 = vmatmul.mubr.bf16.gmra.mrb[168].mxu1 %v9466_v7 }
 0x521   : > { %7389 = vmatprep.mubr.bf16.mxu0 %v9476_v9  ;;  %7421 = vmatprep.mubr.bf16.mxu1 %v9476_v9 }
 0x522   : > { %7434 = vmatpush3.bf16.msra.mxu0 %v8211_v62  ;;  %7466 = vmatpush3.bf16.msra.mxu1 %v8212_v12 }
 0x523   : > { %7435 = vmatprep.subr.bf16.mxu0 %v8213_v4  ;;  %7467 = vmatprep.subr.bf16.mxu1 %v8214_v47 }
 0x526   : > { %7436 = vmatpush3.bf16.msra.mxu0 %v8213_v4  ;;  %7468 = vmatpush3.bf16.msra.mxu1 %v8214_v47 }
 0x527   : > { %7437 = vmatprep.subr.bf16.mxu0 %v8215_v42  ;;  %7469 = vmatprep.subr.bf16.mxu1 %v8216_v41 }
 0x528   : > { %7390 = vmatmul.mubr.bf16.gmra.mrb[108].mxu0 %v9492_v24  ;;  %7422 = vmatmul.mubr.bf16.gmra.mrb[172].mxu1 %v9492_v24 }
 0x529   : > { %7441 = vmatprep.mubr.bf16.mxu0 %v9416_v52  ;;  %7473 = vmatprep.mubr.bf16.mxu1 %v9416_v52 }
 0x52a   : > { %7438 = vmatpush3.bf16.msra.mxu0 %v8215_v42  ;;  %7470 = vmatpush3.bf16.msra.mxu1 %v8216_v41 }
 0x52b   : > { %7439 = vmatprep.subr.bf16.mxu0 %v8217_v50  ;;  %7471 = vmatprep.subr.bf16.mxu1 %v8218_v2 }
 0x52e   : > { %7440 = vmatpush3.bf16.msra.mxu0 %v8217_v50  ;;  %7472 = vmatpush3.bf16.msra.mxu1 %v8218_v2 }
 0x52f   : > { %7489 = vmatprep.subr.bf16.mxu0 %v8219_v45  ;;  %7521 = vmatprep.subr.bf16.mxu1 %v8220_v6 }
 0x531   : > { %7442 = vmatmul.mubr.bf16.vlgmr.msra.gmra.mrb[112].mxu0 %v9426_v26  ;;  %7474 = vmatmul.mubr.bf16.vlgmr.msra.gmra.mrb[176].mxu1 %v9426_v26 }
 0x532   : > { %7445 = vmatprep.mubr.bf16.mxu0 %v9436_v5  ;;  %7477 = vmatprep.mubr.bf16.mxu1 %v9436_v5 }
 0x533   : > { %7490 = vmatpush3.bf16.msra.mxu0 %v8219_v45  ;;  %7522 = vmatpush3.bf16.msra.mxu1 %v8220_v6 }
 0x534   : > { %7491 = vmatprep.subr.bf16.mxu0 %v8221_v57  ;;  %7523 = vmatprep.subr.bf16.mxu1 %v8222_v37 }
 0x537   : > { %7492 = vmatpush3.bf16.msra.mxu0 %v8221_v57  ;;  %7524 = vmatpush3.bf16.msra.mxu1 %v8222_v37 }
 0x538   : > { %7493 = vmatprep.subr.bf16.mxu0 %v8223_v8  ;;  %7525 = vmatprep.subr.bf16.mxu1 %v8224_v53 }
 0x539   : > { %7446 = vmatmul.mubr.bf16.gmra.mrb[116].mxu0 %v9446_v31  ;;  %7478 = vmatmul.mubr.bf16.gmra.mrb[180].mxu1 %v9446_v31 }
 0x53a   : > { %7449 = vmatprep.mubr.bf16.mxu0 %v9456_v0  ;;  %7481 = vmatprep.mubr.bf16.mxu1 %v9456_v0 }
 0x53b   : > { %7494 = vmatpush3.bf16.msra.mxu0 %v8223_v8  ;;  %7526 = vmatpush3.bf16.msra.mxu1 %v8224_v53 }
 0x53c   : > { %7495 = vmatprep.subr.bf16.mxu0 %v8225_v58  ;;  %7527 = vmatprep.subr.bf16.mxu1 %v8226_v23 }
 0x53f   : > { %7496 = vmatpush3.bf16.msra.mxu0 %v8225_v58  ;;  %7528 = vmatpush3.bf16.msra.mxu1 %v8226_v23 }
 0x540   : > { %7497 = vmatprep.subr.bf16.mxu0 %v8227_v51  ;;  %7529 = vmatprep.subr.bf16.mxu1 %v8228_v25 }
 0x541   : > { %7450 = vmatmul.mubr.bf16.gmra.mrb[120].mxu0 %v9466_v7  ;;  %7482 = vmatmul.mubr.bf16.gmra.mrb[184].mxu1 %v9466_v7 }
 0x542   : > { %7453 = vmatprep.mubr.bf16.mxu0 %v9476_v9  ;;  %7485 = vmatprep.mubr.bf16.mxu1 %v9476_v9 }
 0x543   : > { %7498 = vmatpush3.bf16.msra.mxu0 %v8227_v51  ;;  %7530 = vmatpush3.bf16.msra.mxu1 %v8228_v25 }
 0x544   : > { %7499 = vmatprep.subr.bf16.mxu0 %v8229_v22  ;;  %7531 = vmatprep.subr.bf16.mxu1 %v8230_v27 }
 0x547   : > { %7500 = vmatpush3.bf16.msra.mxu0 %v8229_v22  ;;  %7532 = vmatpush3.bf16.msra.mxu1 %v8230_v27 }
 0x548   : > { %7501 = vmatprep.subr.bf16.mxu0 %v8231_v55  ;;  %7533 = vmatprep.subr.bf16.mxu1 %v8232_v35 }
 0x549   : > { %7454 = vmatmul.mubr.bf16.gmra.mrb[124].mxu0 %v9492_v24  ;;  %7486 = vmatmul.mubr.bf16.gmra.mrb[188].mxu1 %v9492_v24 }
 0x54a   : > { %7505 = vmatprep.mubr.bf16.mxu0 %v9416_v52  ;;  %7537 = vmatprep.mubr.bf16.mxu1 %v9416_v52 }
 0x54b   : > { %7502 = vmatpush3.bf16.msra.mxu0 %v8231_v55  ;;  %7534 = vmatpush3.bf16.msra.mxu1 %v8232_v35 }
 0x54c   : > { %7503 = vmatprep.subr.bf16.mxu0 %v8233_v59  ;;  %7535 = vmatprep.subr.bf16.mxu1 %v8234_v60 }
 0x54f   : > { %7504 = vmatpush3.bf16.msra.mxu0 %v8233_v59  ;;  %7536 = vmatpush3.bf16.msra.mxu1 %v8234_v60 }
 0x550   : > { %7553 = vmatprep.subr.bf16.mxu0 %v8235_v40  ;;  %7585 = vmatprep.subr.bf16.mxu1 %v8236_v34 }
 0x552   : > { %7506 = vmatmul.mubr.bf16.vlgmr.msra.gmra.mrb[128].mxu0 %v9426_v26  ;;  %7538 = vmatmul.mubr.bf16.vlgmr.msra.gmra.mrb[192].mxu1 %v9426_v26 }
 0x553   : > { %7509 = vmatprep.mubr.bf16.mxu0 %v9436_v5  ;;  %7541 = vmatprep.mubr.bf16.mxu1 %v9436_v5 }
 0x554   : > { %7554 = vmatpush3.bf16.msra.mxu0 %v8235_v40  ;;  %7586 = vmatpush3.bf16.msra.mxu1 %v8236_v34 }
 0x555   : > { %7555 = vmatprep.subr.bf16.mxu0 %v8237_v33  ;;  %7587 = vmatprep.subr.bf16.mxu1 %v8238_v16 }
 0x558   : > { %7556 = vmatpush3.bf16.msra.mxu0 %v8237_v33  ;;  %7588 = vmatpush3.bf16.msra.mxu1 %v8238_v16 }
 0x559   : > { %7557 = vmatprep.subr.bf16.mxu0 %v8239_v44  ;;  %7589 = vmatprep.subr.bf16.mxu1 %v8240_v13 }
 0x55a   : > { %7510 = vmatmul.mubr.bf16.gmra.mrb[132].mxu0 %v9446_v31  ;;  %7542 = vmatmul.mubr.bf16.gmra.mrb[196].mxu1 %v9446_v31 }
 0x55b   : > { %7513 = vmatprep.mubr.bf16.mxu0 %v9456_v0  ;;  %7545 = vmatprep.mubr.bf16.mxu1 %v9456_v0 }
 0x55c   : > { %7558 = vmatpush3.bf16.msra.mxu0 %v8239_v44  ;;  %7590 = vmatpush3.bf16.msra.mxu1 %v8240_v13 }
 0x55d   : > { %7559 = vmatprep.subr.bf16.mxu0 %v8241_v36  ;;  %7591 = vmatprep.subr.bf16.mxu1 %v8242_v21 }
 0x560   : > { %7560 = vmatpush3.bf16.msra.mxu0 %v8241_v36  ;;  %7592 = vmatpush3.bf16.msra.mxu1 %v8242_v21 }
 0x561   : > { %7561 = vmatprep.subr.bf16.mxu0 %v8243_v19  ;;  %7593 = vmatprep.subr.bf16.mxu1 %v8244_v30 }
 0x562   : > { %7514 = vmatmul.mubr.bf16.gmra.mrb[136].mxu0 %v9466_v7  ;;  %7546 = vmatmul.mubr.bf16.gmra.mrb[200].mxu1 %v9466_v7 }
 0x563   : > { %7517 = vmatprep.mubr.bf16.mxu0 %v9476_v9  ;;  %7549 = vmatprep.mubr.bf16.mxu1 %v9476_v9  ;;  %v6825_v20 = vpop.f32.mrb[32].mxu0  ;;  %v6889_v46 = vpop.f32.mrb[96].mxu1 }
 0x564   : > { %7562 = vmatpush3.bf16.msra.mxu0 %v8243_v19  ;;  %7594 = vmatpush3.bf16.msra.mxu1 %v8244_v30  ;;  %v6826_v56 = vpop.f32.mrb[33].mxu0  ;;  %v6890_v28 = vpop.f32.mrb[97].mxu1 }
 0x565   : > { %v10164_v32 = vadd.f32 %v6826_v56, %v6825_v20  ;;  %v10166_v38 = vadd.f32 %v6890_v28, %v6889_v46  ;;  %7563 = vmatprep.subr.bf16.mxu0 %v8245_v18  ;;  %7595 = vmatprep.subr.bf16.mxu1 %v8246_v15  ;;  %v6828_v29 = vpop.f32.mrb[34].mxu0  ;;  %v6892_v10 = vpop.f32.mrb[98].mxu1 }
 0x566   : > { %v6829_v54 = vpop.f32.mrb[35].mxu0  ;;  %v6893_v39 = vpop.f32.mrb[99].mxu1 }
 0x567   : > { %v10174_v14 = vadd.f32 %v6829_v54, %v6828_v29  ;;  %v10176_v17 = vadd.f32 %v6893_v39, %v6892_v10 }
 0x568   : > { %7564 = vmatpush3.bf16.msra.mxu0 %v8245_v18  ;;  %7596 = vmatpush3.bf16.msra.mxu1 %v8246_v15 }
 0x569   : > { %v4127_v11 = vpack.c.bf16 %v10174_v14, %v10164_v32  ;;  %v4135_v43 = vpack.c.bf16 %v10176_v17, %v10166_v38  ;;  %7565 = vmatprep.subr.bf16.mxu0 %v8247_v61  ;;  %7597 = vmatprep.subr.bf16.mxu1 %v8248_v48 }
 0x56a   : > { %7518 = vmatmul.mubr.bf16.gmra.mrb[140].mxu0 %v9492_v24  ;;  %7550 = vmatmul.mubr.bf16.gmra.mrb[204].mxu1 %v9492_v24 }
 0x56b   : > { %7569 = vmatprep.mubr.bf16.mxu0 %v9416_v52  ;;  %7601 = vmatprep.mubr.bf16.mxu1 %v9416_v52  ;;  %v6831_v1 = vpop.f32.mrb[36].mxu0  ;;  %v6895_v63 = vpop.f32.mrb[100].mxu1 }
 0x56c   : > { %7566 = vmatpush3.bf16.msra.mxu0 %v8247_v61  ;;  %7598 = vmatpush3.bf16.msra.mxu1 %v8248_v48  ;;  %v6832_v62 = vpop.f32.mrb[37].mxu0  ;;  %v6896_v12 = vpop.f32.mrb[101].mxu1 }
 0x56d   : > { %v10192_v4 = vadd.f32 %v6832_v62, %v6831_v1  ;;  %v10194_v47 = vadd.f32 %v6896_v12, %v6895_v63  ;;  %7567 = vmatprep.subr.bf16.mxu0 %v8249_v3  ;;  %7599 = vmatprep.subr.bf16.mxu1 %v8250_v49  ;;  %v6834_v42 = vpop.f32.mrb[38].mxu0  ;;  %v6898_v41 = vpop.f32.mrb[102].mxu1 }
 0x56e   : > { %v6835_v50 = vpop.f32.mrb[39].mxu0  ;;  %v6899_v2 = vpop.f32.mrb[103].mxu1 }
 0x56f   : > { %v10196_v45 = vadd.f32 %v6835_v50, %v6834_v42  ;;  %v10198_v6 = vadd.f32 %v6899_v2, %v6898_v41 }
 0x570   : > { %7568 = vmatpush3.bf16.msra.mxu0 %v8249_v3  ;;  %7600 = vmatpush3.bf16.msra.mxu1 %v8250_v49 }
 0x573   : > { %7570 = vmatmul.mubr.bf16.vlgmr.msra.gmra.mrb[144].mxu0 %v9426_v26  ;;  %7602 = vmatmul.mubr.bf16.vlgmr.msra.gmra.mrb[208].mxu1 %v9426_v26  ;;  %v6837_v37 = vpop.f32.mrb[40].mxu0  ;;  %v6901_v8 = vpop.f32.mrb[104].mxu1 }
 0x574   : > { %7573 = vmatprep.mubr.bf16.mxu0 %v9436_v5  ;;  %7605 = vmatprep.mubr.bf16.mxu1 %v9436_v5  ;;  %v6838_v53 = vpop.f32.mrb[41].mxu0  ;;  %v6902_v58 = vpop.f32.mrb[105].mxu1 }
 0x575   : > { %v10208_v23 = vadd.f32 %v6838_v53, %v6837_v37  ;;  %v10210_v51 = vadd.f32 %v6902_v58, %v6901_v8  ;;  %v6840_v25 = vpop.f32.mrb[42].mxu0  ;;  %v6904_v22 = vpop.f32.mrb[106].mxu1 }
 0x576   : > { %v6841_v27 = vpop.f32.mrb[43].mxu0  ;;  %v6905_v55 = vpop.f32.mrb[107].mxu1 }
 0x577   : > { %v10212_v35 = vadd.f32 %v6841_v27, %v6840_v25  ;;  %v10214_v59 = vadd.f32 %v6905_v55, %v6904_v22 }
 0x57b   : > { %7574 = vmatmul.mubr.bf16.gmra.mrb[148].mxu0 %v9446_v31  ;;  %7606 = vmatmul.mubr.bf16.gmra.mrb[212].mxu1 %v9446_v31  ;;  %v6843_v60 = vpop.f32.mrb[44].mxu0  ;;  %v6907_v40 = vpop.f32.mrb[108].mxu1 }
 0x57c   : > { %7577 = vmatprep.mubr.bf16.mxu0 %v9456_v0  ;;  %7609 = vmatprep.mubr.bf16.mxu1 %v9456_v0  ;;  %v6844_v34 = vpop.f32.mrb[45].mxu0  ;;  %v6908_v33 = vpop.f32.mrb[109].mxu1 }
 0x57d   : > { %v10224_v16 = vadd.f32 %v6844_v34, %v6843_v60  ;;  %v10226_v44 = vadd.f32 %v6908_v33, %v6907_v40  ;;  %v6846_v13 = vpop.f32.mrb[46].mxu0  ;;  %v6910_v36 = vpop.f32.mrb[110].mxu1 }
 0x57e   : > { %v6847_v21 = vpop.f32.mrb[47].mxu0  ;;  %v6911_v19 = vpop.f32.mrb[111].mxu1 }
 0x57f   : > { %v10228_v30 = vadd.f32 %v6847_v21, %v6846_v13  ;;  %v10230_v18 = vadd.f32 %v6911_v19, %v6910_v36 }
 0x583   : > { %7578 = vmatmul.mubr.bf16.gmra.mrb[152].mxu0 %v9466_v7  ;;  %7610 = vmatmul.mubr.bf16.gmra.mrb[216].mxu1 %v9466_v7  ;;  %v6849_v15 = vpop.f32.mrb[48].mxu0  ;;  %v6913_v20 = vpop.f32.mrb[112].mxu1 }
 0x584   : > { %7581 = vmatprep.mubr.bf16.mxu0 %v9476_v9  ;;  %7613 = vmatprep.mubr.bf16.mxu1 %v9476_v9  ;;  %v6850_v46 = vpop.f32.mrb[49].mxu0  ;;  %v6914_v56 = vpop.f32.mrb[113].mxu1 }
 0x585   : > { %v10240_v28 = vadd.f32 %v6850_v46, %v6849_v15  ;;  %v10242_v29 = vadd.f32 %v6914_v56, %v6913_v20  ;;  %v6852_v10 = vpop.f32.mrb[50].mxu0  ;;  %v6916_v61 = vpop.f32.mrb[114].mxu1 }
 0x586   : > { %v6853_v48 = vpop.f32.mrb[51].mxu0  ;;  %v6917_v54 = vpop.f32.mrb[115].mxu1 }
 0x587   : > { %v10244_v39 = vadd.f32 %v6853_v48, %v6852_v10  ;;  %v10246_v3 = vadd.f32 %v6917_v54, %v6916_v61 }
 0x58b   : > { %7582 = vmatmul.mubr.bf16.gmra.mrb[156].mxu0 %v9492_v24  ;;  %7614 = vmatmul.mubr.bf16.gmra.mrb[220].mxu1 %v9492_v24  ;;  %v6855_v49 = vpop.f32.mrb[52].mxu0  ;;  %v6919_v1 = vpop.f32.mrb[116].mxu1 }
 0x58c   : > { %7633 = vmatprep.mubr.msk.bf16.mxu0 %vm4191_vm0, %v4127_v11  ;;  %7665 = vmatprep.mubr.msk.bf16.mxu1 %vm4191_vm0, %v4135_v43  ;;  %v6856_v63 = vpop.f32.mrb[53].mxu0  ;;  %v6920_v62 = vpop.f32.mrb[117].mxu1 }
 0x58d   : > { %v10262_v12 = vadd.f32 %v6856_v63, %v6855_v49  ;;  %v10264_v42 = vadd.f32 %v6920_v62, %v6919_v1  ;;  %v6858_v41 = vpop.f32.mrb[54].mxu0  ;;  %v6922_v24 = vpop.f32.mrb[118].mxu1 }
 0x58e   : > { %v6859_v50 = vpop.f32.mrb[55].mxu0  ;;  %v6923_v2 = vpop.f32.mrb[119].mxu1 }
 0x58f   : > { %v10266_v37 = vadd.f32 %v6859_v50, %v6858_v41  ;;  %v10268_v32 = vadd.f32 %v6923_v2, %v6922_v24 }
 0x593   : > { %v6861_v17 = vpop.f32.mrb[56].mxu0  ;;  %v6925_v11 = vpop.f32.mrb[120].mxu1 }
 0x594   : > { %v6862_v43 = vpop.f32.mrb[57].mxu0  ;;  %v6926_v8 = vpop.f32.mrb[121].mxu1 }
 0x595   : > { %v10274_v53 = vadd.f32 %v6862_v43, %v6861_v17  ;;  %v10276_v58 = vadd.f32 %v6926_v8, %v6925_v11  ;;  %v6864_v25 = vpop.f32.mrb[58].mxu0  ;;  %v6928_v22 = vpop.f32.mrb[122].mxu1 }
 0x596   : > { %v6865_v27 = vpop.f32.mrb[59].mxu0  ;;  %v6929_v55 = vpop.f32.mrb[123].mxu1 }
 0x597   : > { %v10278_v60 = vadd.f32 %v6865_v27, %v6864_v25  ;;  %v10280_v40 = vadd.f32 %v6929_v55, %v6928_v22 }
 0x59b   : > { %v6867_v13 = vpop.f32.mrb[60].mxu0  ;;  %v6931_v36 = vpop.f32.mrb[124].mxu1 }
 0x59c   : > { %v6868_v21 = vpop.f32.mrb[61].mxu0  ;;  %v6932_v19 = vpop.f32.mrb[125].mxu1 }
 0x59d   : > { %v10286_v15 = vadd.f32 %v6868_v21, %v6867_v13  ;;  %v10288_v20 = vadd.f32 %v6932_v19, %v6931_v36  ;;  %v6870_v46 = vpop.f32.mrb[62].mxu0  ;;  %v6934_v56 = vpop.f32.mrb[126].mxu1 }
 0x59e   : > { %v6871_v10 = vpop.f32.mrb[63].mxu0  ;;  %v6935_v61 = vpop.f32.mrb[127].mxu1 }
 0x59f   : > { %v10290_v48 = vadd.f32 %v6871_v10, %v6870_v46  ;;  %v10292_v54 = vadd.f32 %v6935_v61, %v6934_v56 }
 0x5a3   : > { %v6953_v63 = vpop.f32.mrb[64].mxu0  ;;  %v7017_v62 = vpop.f32.mrb[128].mxu1 }
 0x5a4   : > { %v6954_v41 = vpop.f32.mrb[65].mxu0  ;;  %v7018_v24 = vpop.f32.mrb[129].mxu1 }
 0x5a5   : > { %v10298_v50 = vadd.f32 %v6954_v41, %v6953_v63  ;;  %v10300_v2 = vadd.f32 %v7018_v24, %v7017_v62  ;;  %v6956_v17 = vpop.f32.mrb[66].mxu0  ;;  %v7020_v11 = vpop.f32.mrb[130].mxu1 }
 0x5a6   : > { %v6957_v43 = vpop.f32.mrb[67].mxu0  ;;  %v7021_v8 = vpop.f32.mrb[131].mxu1 }
 0x5a7   : > { %v10302_v25 = vadd.f32 %v6957_v43, %v6956_v17  ;;  %v10304_v22 = vadd.f32 %v7021_v8, %v7020_v11 }
 0x5ab   : > { %v6959_v13 = vpop.f32.mrb[68].mxu0  ;;  %v7023_v36 = vpop.f32.mrb[132].mxu1 }
 0x5ac   : > { %v6960_v21 = vpop.f32.mrb[69].mxu0  ;;  %v7024_v19 = vpop.f32.mrb[133].mxu1 }
 0x5ad   : > { %v10310_v46 = vadd.f32 %v6960_v21, %v6959_v13  ;;  %v10312_v56 = vadd.f32 %v7024_v19, %v7023_v36  ;;  %v6962_v10 = vpop.f32.mrb[70].mxu0  ;;  %v7026_v61 = vpop.f32.mrb[134].mxu1 }
 0x5ae   : > { %v6963_v63 = vpop.f32.mrb[71].mxu0  ;;  %v7027_v62 = vpop.f32.mrb[135].mxu1 }
 0x5af   : > { %11618 = vst [vmem:[#allocation6_spill] sm:$0xff] %v10312_v56  ;;  %v10314_v41 = vadd.f32 %v6963_v63, %v6962_v10  ;;  %v10316_v24 = vadd.f32 %v7027_v62, %v7026_v61  ;;  %v11644_v56 = vpack.c.bf16 %v10196_v45, %v10192_v4  ;;  %v11647_v4 = vpack.c.bf16 %v10214_v59, %v10210_v51 }
 0x5b1   : > { %11619 = vst [vmem:[#allocation7_spill] sm:$0xff] %v10316_v24  ;;  %v11645_v24 = vpack.c.bf16 %v10198_v6, %v10194_v47 }
 0x5b3   : > { %v6965_v43 = vpop.f32.mrb[72].mxu0  ;;  %v7029_v8 = vpop.f32.mrb[136].mxu1 }
 0x5b4   : > { %v6966_v13 = vpop.f32.mrb[73].mxu0  ;;  %v7030_v21 = vpop.f32.mrb[137].mxu1 }
 0x5b5   : > { %v10322_v36 = vadd.f32 %v6966_v13, %v6965_v43  ;;  %v10324_v19 = vadd.f32 %v7030_v21, %v7029_v8  ;;  %v6968_v55 = vpop.f32.mrb[74].mxu0  ;;  %v7032_v27 = vpop.f32.mrb[138].mxu1 }
 0x5b6   : > { %v6969_v10 = vpop.f32.mrb[75].mxu0  ;;  %v7033_v63 = vpop.f32.mrb[139].mxu1 }
 0x5b7   : > { %11620 = vst [vmem:[#allocation8_spill] sm:$0xff] %v10322_v36  ;;  %11621 = vst [vmem:[#allocation9_spill] sm:$0xff] %v10324_v19  ;;  %v10326_v61 = vadd.f32 %v6969_v10, %v6968_v55  ;;  %v10328_v62 = vadd.f32 %v7033_v63, %v7032_v27 }
 0x5b9   : > { %11622 = vst [vmem:[#allocation10_spill] sm:$0xff] %v10326_v61  ;;  %11623 = vst [vmem:[#allocation11_spill] sm:$0xff] %v10328_v62 }
 0x5bb   : > { %v6971_v1 = vpop.f32.mrb[76].mxu0  ;;  %v7035_v49 = vpop.f32.mrb[140].mxu1 }
 0x5bc   : > { %v6972_v43 = vpop.f32.mrb[77].mxu0  ;;  %v7036_v13 = vpop.f32.mrb[141].mxu1 }
 0x5bd   : > { %v10334_v8 = vadd.f32 %v6972_v43, %v6971_v1  ;;  %v10336_v21 = vadd.f32 %v7036_v13, %v7035_v49  ;;  %v6974_v33 = vpop.f32.mrb[78].mxu0  ;;  %v7038_v34 = vpop.f32.mrb[142].mxu1 }
 0x5be   : > { %v6975_v55 = vpop.f32.mrb[79].mxu0  ;;  %v7039_v10 = vpop.f32.mrb[143].mxu1 }
 0x5bf   : > { %11624 = vst [vmem:[#allocation12_spill] sm:$0xff] %v10334_v8  ;;  %11625 = vst [vmem:[#allocation13_spill] sm:$0xff] %v10336_v21  ;;  %v10338_v27 = vadd.f32 %v6975_v55, %v6974_v33  ;;  %v10340_v63 = vadd.f32 %v7039_v10, %v7038_v34 }
 0x5c1   : > { %11626 = vst [vmem:[#allocation14_spill] sm:$0xff] %v10338_v27  ;;  %11627 = vst [vmem:[#allocation15_spill] sm:$0xff] %v10340_v63 }
 0x5c3   : > { %v6977_v38 = vpop.f32.mrb[80].mxu0  ;;  %v7041_v14 = vpop.f32.mrb[144].mxu1 }
 0x5c4   : > { %v6978_v1 = vpop.f32.mrb[81].mxu0  ;;  %v7042_v43 = vpop.f32.mrb[145].mxu1 }
 0x5c5   : > { %v10346_v49 = vadd.f32 %v6978_v1, %v6977_v38  ;;  %v10348_v13 = vadd.f32 %v7042_v43, %v7041_v14  ;;  %v6980_v9 = vpop.f32.mrb[82].mxu0  ;;  %v7044_v7 = vpop.f32.mrb[146].mxu1 }
 0x5c6   : > { %v6981_v33 = vpop.f32.mrb[83].mxu0  ;;  %v7045_v55 = vpop.f32.mrb[147].mxu1 }
 0x5c7   : > { %11628 = vst [vmem:[#allocation16_spill] sm:$0xff] %v10346_v49  ;;  %11629 = vst [vmem:[#allocation17_spill] sm:$0xff] %v10348_v13  ;;  %v10350_v34 = vadd.f32 %v6981_v33, %v6980_v9  ;;  %v10352_v10 = vadd.f32 %v7045_v55, %v7044_v7 }
 0x5c9   : > { %11630 = vst [vmem:[#allocation18_spill] sm:$0xff] %v10350_v34  ;;  %11631 = vst [vmem:[#allocation19_spill] sm:$0xff] %v10352_v10 }
 0x5cb   : > { %v6983_v0 = vpop.f32.mrb[84].mxu0  ;;  %v7047_v31 = vpop.f32.mrb[148].mxu1 }
 0x5cc   : > { %v6984_v38 = vpop.f32.mrb[85].mxu0  ;;  %v7048_v1 = vpop.f32.mrb[149].mxu1 }
 0x5cd   : > { %v10358_v14 = vadd.f32 %v6984_v38, %v6983_v0  ;;  %v10360_v43 = vadd.f32 %v7048_v1, %v7047_v31  ;;  %v6986_v5 = vpop.f32.mrb[86].mxu0  ;;  %v7050_v26 = vpop.f32.mrb[150].mxu1 }
 0x5ce   : > { %v6987_v9 = vpop.f32.mrb[87].mxu0  ;;  %v7051_v33 = vpop.f32.mrb[151].mxu1 }
 0x5cf   : > { %11632 = vst [vmem:[#allocation20_spill] sm:$0xff] %v10358_v14  ;;  %11633 = vst [vmem:[#allocation21_spill] sm:$0xff] %v10360_v43  ;;  %v10362_v7 = vadd.f32 %v6987_v9, %v6986_v5  ;;  %v10364_v55 = vadd.f32 %v7051_v33, %v7050_v26 }
 0x5d1   : > { %11634 = vst [vmem:[#allocation22_spill] sm:$0xff] %v10362_v7  ;;  %11635 = vst [vmem:[#allocation23_spill] sm:$0xff] %v10364_v55 }
 0x5d3   : > { %v6989_v57 = vpop.f32.mrb[88].mxu0  ;;  %v7053_v52 = vpop.f32.mrb[152].mxu1 }
 0x5d4   : > { %v6990_v0 = vpop.f32.mrb[89].mxu0  ;;  %v7054_v38 = vpop.f32.mrb[153].mxu1 }
 0x5d5   : > { %v10370_v31 = vadd.f32 %v6990_v0, %v6989_v57  ;;  %v10372_v1 = vadd.f32 %v7054_v38, %v7053_v52  ;;  %v6992_v13 = vpop.f32.mrb[90].mxu0  ;;  %v7056_v10 = vpop.f32.mrb[154].mxu1 }
 0x5d6   : > { %v6993_v5 = vpop.f32.mrb[91].mxu0  ;;  %v7057_v9 = vpop.f32.mrb[155].mxu1 }
 0x5d7   : > { %11636 = vst [vmem:[#allocation24_spill] sm:$0xff] %v10370_v31  ;;  %11637 = vst [vmem:[#allocation25_spill] sm:$0xff] %v10372_v1  ;;  %v10374_v26 = vadd.f32 %v6993_v5, %v6992_v13  ;;  %v10376_v33 = vadd.f32 %v7057_v9, %v7056_v10 }
 0x5d9   : > { %11638 = vst [vmem:[#allocation26_spill] sm:$0xff] %v10374_v26  ;;  %11639 = vst [vmem:[#allocation27_spill] sm:$0xff] %v10376_v33 }
 0x5db   : > { %v6995_v43 = vpop.f32.mrb[92].mxu0  ;;  %v7059_v55 = vpop.f32.mrb[156].mxu1 }
 0x5dc   : > { %v6996_v57 = vpop.f32.mrb[93].mxu0  ;;  %v7060_v0 = vpop.f32.mrb[157].mxu1 }
 0x5dd   : > { %v10382_v52 = vadd.f32 %v6996_v57, %v6995_v43  ;;  %v10384_v38 = vadd.f32 %v7060_v0, %v7059_v55  ;;  %v6998_v14 = vpop.f32.mrb[94].mxu0  ;;  %v7062_v7 = vpop.f32.mrb[158].mxu1 }
 0x5de   : > { %v6999_v13 = vpop.f32.mrb[95].mxu0  ;;  %v7063_v5 = vpop.f32.mrb[159].mxu1 }
 0x5df   : > { %11640 = vst [vmem:[#allocation28_spill] sm:$0xff] %v10382_v52  ;;  %11641 = vst [vmem:[#allocation29_spill] sm:$0xff] %v10384_v38  ;;  %v10386_v10 = vadd.f32 %v6999_v13, %v6998_v14  ;;  %v10388_v9 = vadd.f32 %v7063_v5, %v7062_v7 }
 0x5e1   : > { %11642 = vst [vmem:[#allocation30_spill] sm:$0xff] %v10386_v10  ;;  %11643 = vst [vmem:[#allocation31_spill] sm:$0xff] %v10388_v9 }
 0x5e3   : > { %v7379_v1 = vpop.f32.mrb[96].mxu0  ;;  %v7411_v33 = vpop.f32.mrb[160].mxu1 }
 0x5e4   : > { %v2985_v43 = vpop.f32.mrb[97].mxu0  ;;  %v3130_v57 = vpop.f32.mrb[161].mxu1 }
 0x5e5   : > { %v7380_v55 = vpop.f32.mrb[98].mxu0  ;;  %v7412_v0 = vpop.f32.mrb[162].mxu1 }
 0x5e6   : > { %v4160_v31 = vpack.c.bf16 %v7380_v55, %v7379_v1  ;;  %v4168_v26 = vpack.c.bf16 %v7412_v0, %v7411_v33  ;;  %v2988_v49 = vpop.f32.mrb[99].mxu0  ;;  %v3133_v34 = vpop.f32.mrb[163].mxu1 }
 0x5e7   : > { %v4159_v14 = vpack.c.bf16 %v2988_v49, %v2985_v43  ;;  %v4167_v13 = vpack.c.bf16 %v3133_v34, %v3130_v57 }
 0x5e9   : > { %v4217_v7 = vsel %vm4191_vm0, %v4159_v14, 0  ;;  %v4362_v5 = vsel %vm4191_vm0, %v4167_v13, 0  ;;  %8001 = vmatprep.subr.msk.bf16.mxu0 %vm4191_vm0, %v4159_v14  ;;  %8009 = vmatprep.subr.msk.bf16.mxu1 %vm4191_vm0, %v4167_v13  ;;  %v4220_v13 = vsel %vm4191_vm0, %v4160_v31, 0 }
 0x5ea   : > { %7618 = vmatpush3.bf16.xpose.msra.mxu0 %v4217_v7  ;;  %7650 = vmatpush3.bf16.xpose.msra.mxu1 %v4362_v5  ;;  %v4365_v7 = vsel %vm4191_vm0, %v4168_v26, 0 }
 0x5eb   : > { %v7383_v11 = vpop.f32.mrb[100].mxu0  ;;  %v7415_v17 = vpop.f32.mrb[164].mxu1  ;;  %8002 = vmatprep.subr.msk.bf16.mxu0 %vm4191_vm0, %v4160_v31  ;;  %8010 = vmatprep.subr.msk.bf16.mxu1 %vm4191_vm0, %v4168_v26 }
 0x5ec   : > { %v3001_v1 = vpop.f32.mrb[101].mxu0  ;;  %v3146_v33 = vpop.f32.mrb[165].mxu1 }
 0x5ed   : > { %v7384_v49 = vpop.f32.mrb[102].mxu0  ;;  %v7416_v34 = vpop.f32.mrb[166].mxu1 }
 0x5ee   : > { %v4162_v43 = vpack.c.bf16 %v7384_v49, %v7383_v11  ;;  %v4170_v57 = vpack.c.bf16 %v7416_v34, %v7415_v17  ;;  %v3004_v55 = vpop.f32.mrb[103].mxu0  ;;  %v3149_v0 = vpop.f32.mrb[167].mxu1 }
 0x5ef   : > { %v4161_v38 = vpack.c.bf16 %v3004_v55, %v3001_v1  ;;  %v4169_v14 = vpack.c.bf16 %v3149_v0, %v3146_v33 }
 0x5f1   : > { %v4223_v26 = vsel %vm4191_vm0, %v4161_v38, 0  ;;  %v4368_v0 = vsel %vm4191_vm0, %v4169_v14, 0 }
 0x5f2   : > { %7620 = vmatpush3.bf16.xpose.msra.mxu0 %v4220_v13  ;;  %7652 = vmatpush3.bf16.xpose.msra.mxu1 %v4365_v7 }
 0x5f3   : > { %v7387_v5 = vpop.f32.mrb[104].mxu0  ;;  %v7419_v9 = vpop.f32.mrb[168].mxu1  ;;  %8003 = vmatprep.subr.msk.bf16.mxu0 %vm4191_vm0, %v4161_v38  ;;  %8011 = vmatprep.subr.msk.bf16.mxu1 %vm4191_vm0, %v4169_v14 }
 0x5f4   : > { %v3017_v52 = vpop.f32.mrb[105].mxu0  ;;  %v3162_v10 = vpop.f32.mrb[169].mxu1 }
 0x5f5   : > { %v7388_v11 = vpop.f32.mrb[106].mxu0  ;;  %v7420_v17 = vpop.f32.mrb[170].mxu1 }
 0x5f6   : > { %v4164_v49 = vpack.c.bf16 %v7388_v11, %v7387_v5  ;;  %v4172_v34 = vpack.c.bf16 %v7420_v17, %v7419_v9  ;;  %v3020_v1 = vpop.f32.mrb[107].mxu0  ;;  %v3165_v33 = vpop.f32.mrb[171].mxu1 }
 0x5f7   : > { %v4163_v55 = vpack.c.bf16 %v3020_v1, %v3017_v52  ;;  %v4171_v31 = vpack.c.bf16 %v3165_v33, %v3162_v10  ;;  %v4226_v1 = vsel %vm4191_vm0, %v4162_v43, 0  ;;  %v4371_v33 = vsel %vm4191_vm0, %v4170_v57, 0 }
 0x5fa   : > { %7622 = vmatpush3.bf16.xpose.msra.mxu0 %v4223_v26  ;;  %7654 = vmatpush3.bf16.xpose.msra.mxu1 %v4368_v0 }
 0x5fb   : > { %v7391_v13 = vpop.f32.mrb[108].mxu0  ;;  %v7423_v7 = vpop.f32.mrb[172].mxu1  ;;  %8004 = vmatprep.subr.msk.bf16.mxu0 %vm4191_vm0, %v4162_v43  ;;  %8012 = vmatprep.subr.msk.bf16.mxu1 %vm4191_vm0, %v4170_v57 }
 0x5fc   : > { %v3033_v21 = vpop.f32.mrb[109].mxu0  ;;  %v3178_v63 = vpop.f32.mrb[173].mxu1 }
 0x5fd   : > { %v7392_v5 = vpop.f32.mrb[110].mxu0  ;;  %v7424_v9 = vpop.f32.mrb[174].mxu1 }
 0x5fe   : > { %v10408_v11 = vpack.c.bf16 %v7392_v5, %v7391_v13  ;;  %v10410_v52 = vpack.c.bf16 %v7424_v9, %v7423_v7  ;;  %v3036_v10 = vpop.f32.mrb[111].mxu0  ;;  %v3181_v38 = vpop.f32.mrb[175].mxu1 }
 0x5ff   : > { %v4165_v17 = vpack.c.bf16 %v3036_v10, %v3033_v21  ;;  %v4173_v14 = vpack.c.bf16 %v3181_v38, %v3178_v63  ;;  %v4229_v38 = vsel %vm4191_vm0, %v4163_v55, 0 }
 0x600   : > { %v4238_v36 = vsel %vm4191_vm0, %v10408_v11, 0  ;;  %v4383_v61 = vsel %vm4191_vm0, %v10410_v52, 0 }
 0x602   : > { %7624 = vmatpush3.bf16.xpose.msra.mxu0 %v4226_v1  ;;  %7656 = vmatpush3.bf16.xpose.msra.mxu1 %v4371_v33  ;;  %v4374_v1 = vsel %vm4191_vm0, %v4171_v31, 0 }
 0x603   : > { %8005 = vmatprep.subr.msk.bf16.mxu0 %vm4191_vm0, %v4163_v55  ;;  %8013 = vmatprep.subr.msk.bf16.mxu1 %vm4191_vm0, %v4171_v31 }
 0x604   : > { %v7443_v26 = vpop.f32.mrb[112].mxu0  ;;  %v7475_v0 = vpop.f32.mrb[176].mxu1 }
 0x605   : > { %v3275_v13 = vpop.f32.mrb[113].mxu0  ;;  %v3420_v5 = vpop.f32.mrb[177].mxu1 }
 0x606   : > { %v7444_v7 = vpop.f32.mrb[114].mxu0  ;;  %v7476_v9 = vpop.f32.mrb[178].mxu1 }
 0x607   : > { %v10416_v8 = vpack.c.bf16 %v7444_v7, %v7443_v26  ;;  %v10418_v21 = vpack.c.bf16 %v7476_v9, %v7475_v0  ;;  %v3278_v63 = vpop.f32.mrb[115].mxu0  ;;  %v3423_v43 = vpop.f32.mrb[179].mxu1 }
 0x608   : > { %v10420_v10 = vpack.c.bf16 %v3278_v63, %v3275_v13  ;;  %v10422_v57 = vpack.c.bf16 %v3423_v43, %v3420_v5 }
 0x60a   : > { %7626 = vmatpush3.bf16.xpose.msra.mxu0 %v4229_v38  ;;  %7658 = vmatpush3.bf16.xpose.msra.mxu1 %v4374_v1  ;;  %v4232_v38 = vsel %vm4191_vm0, %v4164_v49, 0  ;;  %v4377_v1 = vsel %vm4191_vm0, %v4172_v34, 0 }
 0x60b   : > { %8006 = vmatprep.subr.msk.bf16.mxu0 %vm4191_vm0, %v4164_v49  ;;  %8014 = vmatprep.subr.msk.bf16.mxu1 %vm4191_vm0, %v4172_v34 }
 0x60c   : > { %v7447_v33 = vpop.f32.mrb[116].mxu0  ;;  %v7479_v26 = vpop.f32.mrb[180].mxu1 }
 0x60d   : > { %v3291_v0 = vpop.f32.mrb[117].mxu0  ;;  %v3436_v7 = vpop.f32.mrb[181].mxu1 }
 0x60e   : > { %v7448_v9 = vpop.f32.mrb[118].mxu0  ;;  %v7480_v27 = vpop.f32.mrb[182].mxu1 }
 0x60f   : > { %v10428_v13 = vpack.c.bf16 %v7448_v9, %v7447_v33  ;;  %v10430_v5 = vpack.c.bf16 %v7480_v27, %v7479_v26  ;;  %v3294_v63 = vpop.f32.mrb[119].mxu0  ;;  %v3439_v55 = vpop.f32.mrb[183].mxu1 }
 0x610   : > { %v10432_v43 = vpack.c.bf16 %v3294_v63, %v3291_v0  ;;  %v10434_v31 = vpack.c.bf16 %v3439_v55, %v3436_v7 }
 0x612   : > { %7628 = vmatpush3.bf16.xpose.msra.mxu0 %v4232_v38  ;;  %7660 = vmatpush3.bf16.xpose.msra.mxu1 %v4377_v1  ;;  %v4235_v38 = vsel %vm4191_vm0, %v4165_v17, 0  ;;  %v4380_v1 = vsel %vm4191_vm0, %v4173_v14, 0 }
 0x613   : > { %8007 = vmatprep.subr.msk.bf16.mxu0 %vm4191_vm0, %v4165_v17  ;;  %8015 = vmatprep.subr.msk.bf16.mxu1 %vm4191_vm0, %v4173_v14 }
 0x614   : > { %v7451_v33 = vpop.f32.mrb[120].mxu0  ;;  %v7483_v9 = vpop.f32.mrb[184].mxu1 }
 0x615   : > { %v3307_v27 = vpop.f32.mrb[121].mxu0  ;;  %v3452_v26 = vpop.f32.mrb[185].mxu1 }
 0x616   : > { %v7452_v19 = vpop.f32.mrb[122].mxu0  ;;  %v7484_v62 = vpop.f32.mrb[186].mxu1 }
 0x617   : > { %v10440_v0 = vpack.c.bf16 %v7452_v19, %v7451_v33  ;;  %v10442_v7 = vpack.c.bf16 %v7484_v62, %v7483_v9  ;;  %v3310_v63 = vpop.f32.mrb[123].mxu0  ;;  %v3455_v49 = vpop.f32.mrb[187].mxu1 }
 0x618   : > { %v10444_v55 = vpack.c.bf16 %v3310_v63, %v3307_v27  ;;  %v10446_v34 = vpack.c.bf16 %v3455_v49, %v3452_v26 }
 0x61a   : > { %7630 = vmatpush3.bf16.xpose.msra.mxu0 %v4235_v38  ;;  %7662 = vmatpush3.bf16.xpose.msra.mxu1 %v4380_v1 }
 0x61b   : > { %8008 = vmatprep.subr.msk.bf16.mxu0 %vm4191_vm0, %v10408_v11  ;;  %8016 = vmatprep.subr.msk.bf16.mxu1 %vm4191_vm0, %v10410_v52 }
 0x61c   : > { %v7455_v19 = vpop.f32.mrb[124].mxu0  ;;  %v7487_v62 = vpop.f32.mrb[188].mxu1 }
 0x61d   : > { %v3323_v33 = vpop.f32.mrb[125].mxu0  ;;  %v3468_v9 = vpop.f32.mrb[189].mxu1 }
 0x61e   : > { %v7456_v27 = vpop.f32.mrb[126].mxu0  ;;  %v7488_v63 = vpop.f32.mrb[190].mxu1 }
 0x61f   : > { %v10454_v26 = vpack.c.bf16 %v7456_v27, %v7455_v19  ;;  %v10456_v49 = vpack.c.bf16 %v7488_v63, %v7487_v62  ;;  %v3326_v17 = vpop.f32.mrb[127].mxu0  ;;  %v3471_v14 = vpop.f32.mrb[191].mxu1 }
 0x620   : > { %v10458_v38 = vpack.c.bf16 %v3326_v17, %v3323_v33  ;;  %v10460_v1 = vpack.c.bf16 %v3471_v14, %v3468_v9 }
 0x622   : > { %7632 = vmatpush3.bf16.xpose.msra.mxu0 %v4238_v36  ;;  %7664 = vmatpush3.bf16.xpose.msra.mxu1 %v4383_v61 }
 0x623   : > { %8017 = vmatprep.subr.msk.bf16.mxu0 %vm4191_vm0, %v10420_v10  ;;  %8025 = vmatprep.subr.msk.bf16.mxu1 %vm4191_vm0, %v10422_v57 }
 0x625   : > { %v7507_v19 = vpop.f32.mrb[128].mxu0  ;;  %v7539_v62 = vpop.f32.mrb[192].mxu1 }
 0x626   : > { %v3629_v33 = vpop.f32.mrb[129].mxu0  ;;  %v3774_v27 = vpop.f32.mrb[193].mxu1 }
 0x627   : > { %v7508_v9 = vpop.f32.mrb[130].mxu0  ;;  %v7540_v63 = vpop.f32.mrb[194].mxu1 }
 0x628   : > { %v10470_v17 = vpack.c.bf16 %v7508_v9, %v7507_v19  ;;  %v10472_v11 = vpack.c.bf16 %v7540_v63, %v7539_v62  ;;  %v3632_v14 = vpop.f32.mrb[131].mxu0  ;;  %v3777_v52 = vpop.f32.mrb[195].mxu1  ;;  %v4507_v19 = vsel %vm4191_vm0, %v10420_v10, 0  ;;  %v4652_v62 = vsel %vm4191_vm0, %v10422_v57, 0 }
 0x629   : > { %v10474_v36 = vpack.c.bf16 %v3632_v14, %v3629_v33  ;;  %v10476_v61 = vpack.c.bf16 %v3777_v52, %v3774_v27  ;;  %7634 = vmatmul.mubr.msk.bf16.vlgmr.msra.gmra.mrb[160].mxu0 %vm4191_vm0, %v11644_v56  ;;  %7666 = vmatmul.mubr.msk.bf16.vlgmr.msra.gmra.mrb[224].mxu1 %vm4191_vm0, %v11645_v24  ;;  %v11646_v33 = vpack.c.bf16 %v10212_v35, %v10208_v23  ;;  %v4510_v14 = vsel %vm4191_vm0, %v10416_v8, 0 }
 0x62a   : > { %7669 = vmatprep.mubr.msk.bf16.mxu1 %vm4191_vm0, %v11647_v4  ;;  %7682 = vmatpush3.bf16.xpose.msra.mxu0 %v4507_v19  ;;  %v11648_v9 = vpack.c.bf16 %v10228_v30, %v10224_v16  ;;  %v11649_v63 = vpack.c.bf16 %v10230_v18, %v10226_v44  ;;  %v4655_v52 = vsel %vm4191_vm0, %v10418_v21, 0  ;;  %v11650_v19 = vpack.c.bf16 %v10244_v39, %v10240_v28 }
 0x62b   : > { %7637 = vmatprep.mubr.msk.bf16.mxu0 %vm4191_vm0, %v11646_v33  ;;  %7714 = vmatpush3.bf16.xpose.msra.mxu1 %v4652_v62  ;;  %v11651_v16 = vpack.c.bf16 %v10246_v3, %v10242_v29 }
 0x62c   : > { %8018 = vmatprep.subr.msk.bf16.mxu0 %vm4191_vm0, %v10416_v8  ;;  %8026 = vmatprep.subr.msk.bf16.mxu1 %vm4191_vm0, %v10418_v21 }
 0x62d   : > { %v7511_v47 = vpop.f32.mrb[132].mxu0  ;;  %v7543_v45 = vpop.f32.mrb[196].mxu1 }
 0x62e   : > { %v3645_v6 = vpop.f32.mrb[133].mxu0  ;;  %v3790_v56 = vpop.f32.mrb[197].mxu1 }
 0x62f   : > { %v7512_v23 = vpop.f32.mrb[134].mxu0  ;;  %v7544_v35 = vpop.f32.mrb[198].mxu1 }
 0x630   : > { %v10502_v24 = vpack.c.bf16 %v7512_v23, %v7511_v47  ;;  %v10504_v10 = vpack.c.bf16 %v7544_v35, %v7543_v45  ;;  %v3648_v51 = vpop.f32.mrb[135].mxu0  ;;  %v3793_v59 = vpop.f32.mrb[199].mxu1  ;;  %v11652_v47 = vpack.c.bf16 %v10266_v37, %v10262_v12  ;;  %v11653_v45 = vpack.c.bf16 %v10268_v32, %v10264_v42 }
 0x631   : > { %v10506_v57 = vpack.c.bf16 %v3648_v51, %v3645_v6  ;;  %v10508_v27 = vpack.c.bf16 %v3793_v59, %v3790_v56  ;;  %7638 = vmatmul.mubr.msk.bf16.gmra.mrb[164].mxu0 %vm4191_vm0, %v11648_v9  ;;  %7670 = vmatmul.mubr.msk.bf16.gmra.mrb[228].mxu1 %vm4191_vm0, %v11649_v63  ;;  %v4513_v6 = vsel %vm4191_vm0, %v10432_v43, 0  ;;  %v4658_v56 = vsel %vm4191_vm0, %v10434_v31, 0 }
 0x632   : > { %7641 = vmatprep.mubr.msk.bf16.mxu0 %vm4191_vm0, %v11650_v19  ;;  %7673 = vmatprep.mubr.msk.bf16.mxu1 %vm4191_vm0, %v11651_v16  ;;  %v11654_v23 = vpack.c.bf16 %v10278_v60, %v10274_v53  ;;  %v11655_v12 = vpack.c.bf16 %v10280_v40, %v10276_v58  ;;  %v11656_v9 = vpack.c.bf16 %v10290_v48, %v10286_v15 }
 0x633   : > { %7684 = vmatpush3.bf16.xpose.msra.mxu0 %v4510_v14  ;;  %7716 = vmatpush3.bf16.xpose.msra.mxu1 %v4655_v52  ;;  %v11657_v63 = vpack.c.bf16 %v10292_v54, %v10288_v20  ;;  %v4516_v14 = vsel %vm4191_vm0, %v10428_v13, 0  ;;  %v4661_v52 = vsel %vm4191_vm0, %v10430_v5, 0  ;;  %v11658_v19 = vpack.c.bf16 %v10302_v25, %v10298_v50 }
 0x634   : > { %8019 = vmatprep.subr.msk.bf16.mxu0 %vm4191_vm0, %v10432_v43  ;;  %8027 = vmatprep.subr.msk.bf16.mxu1 %vm4191_vm0, %v10434_v31  ;;  %v11659_v15 = vpack.c.bf16 %v10304_v22, %v10300_v2 }
 0x635   : > { %v7515_v44 = vpop.f32.mrb[136].mxu0  ;;  %v7547_v30 = vpop.f32.mrb[200].mxu1 }
 0x636   : > { %v3661_v18 = vpop.f32.mrb[137].mxu0  ;;  %v3806_v8 = vpop.f32.mrb[201].mxu1 }
 0x637   : > { %v7516_v28 = vpop.f32.mrb[138].mxu0  ;;  %v7548_v39 = vpop.f32.mrb[202].mxu1 }
 0x638   : > { %v10534_v21 = vpack.c.bf16 %v7516_v28, %v7515_v44  ;;  %v10536_v62 = vpack.c.bf16 %v7548_v39, %v7547_v30  ;;  %v3664_v29 = vpop.f32.mrb[139].mxu0  ;;  %v3809_v3 = vpop.f32.mrb[203].mxu1  ;;  %v4519_v44 = vsel %vm4191_vm0, %v10444_v55, 0  ;;  %v4664_v30 = vsel %vm4191_vm0, %v10446_v34, 0 }
 0x639   : > { %v10538_v33 = vpack.c.bf16 %v3664_v29, %v3661_v18  ;;  %v10540_v4 = vpack.c.bf16 %v3809_v3, %v3806_v8  ;;  %7642 = vmatmul.mubr.msk.bf16.gmra.mrb[168].mxu0 %vm4191_vm0, %v11652_v47  ;;  %7674 = vmatmul.mubr.msk.bf16.gmra.mrb[232].mxu1 %vm4191_vm0, %v11653_v45 }
 0x63a   : > { %7645 = vmatprep.mubr.msk.bf16.mxu0 %vm4191_vm0, %v11654_v23  ;;  %7677 = vmatprep.mubr.msk.bf16.mxu1 %vm4191_vm0, %v11655_v12  ;;  %v4522_v23 = vsel %vm4191_vm0, %v10440_v0, 0  ;;  %v4667_v12 = vsel %vm4191_vm0, %v10442_v7, 0 }
 0x63b   : > { %7686 = vmatpush3.bf16.xpose.msra.mxu0 %v4513_v6  ;;  %7718 = vmatpush3.bf16.xpose.msra.mxu1 %v4658_v56 }
 0x63c   : > { %8020 = vmatprep.subr.msk.bf16.mxu0 %vm4191_vm0, %v10428_v13  ;;  %8028 = vmatprep.subr.msk.bf16.mxu1 %vm4191_vm0, %v10430_v5 }
 0x63d   : > { %v7519_v42 = vpop.f32.mrb[140].mxu0  ;;  %v7551_v37 = vpop.f32.mrb[204].mxu1 }
 0x63e   : > { %v3677_v32 = vpop.f32.mrb[141].mxu0  ;;  %v3822_v43 = vpop.f32.mrb[205].mxu1 }
 0x63f   : > { %v7520_v53 = vpop.f32.mrb[142].mxu0  ;;  %v7552_v60 = vpop.f32.mrb[206].mxu1 }
 0x640   : > { %v10566_v31 = vpack.c.bf16 %v7520_v53, %v7519_v42  ;;  %v10568_v35 = vpack.c.bf16 %v7552_v60, %v7551_v37  ;;  %v3680_v58 = vpop.f32.mrb[143].mxu0  ;;  %v3825_v40 = vpop.f32.mrb[207].mxu1 }
 0x641   : > { %v10570_v51 = vpack.c.bf16 %v3680_v58, %v3677_v32  ;;  %v10572_v59 = vpack.c.bf16 %v3825_v40, %v3822_v43  ;;  %7646 = vmatmul.mubr.msk.bf16.gmra.mrb[172].mxu0 %vm4191_vm0, %v11656_v9  ;;  %7678 = vmatmul.mubr.msk.bf16.gmra.mrb[236].mxu1 %vm4191_vm0, %v11657_v63 }
 0x642   : > { %7697 = vmatprep.mubr.msk.bf16.mxu0 %vm4191_vm0, %v11658_v19  ;;  %7729 = vmatprep.mubr.msk.bf16.mxu1 %vm4191_vm0, %v11659_v15 }
 0x643   : > { %7688 = vmatpush3.bf16.xpose.msra.mxu0 %v4516_v14  ;;  %7720 = vmatpush3.bf16.xpose.msra.mxu1 %v4661_v52  ;;  %v4525_v14 = vsel %vm4191_vm0, %v10458_v38, 0  ;;  %v4670_v52 = vsel %vm4191_vm0, %v10460_v1, 0 }
 0x644   : > { %8021 = vmatprep.subr.msk.bf16.mxu0 %vm4191_vm0, %v10444_v55  ;;  %8029 = vmatprep.subr.msk.bf16.mxu1 %vm4191_vm0, %v10446_v34 }
 0x646   : > { %v7571_v20 = vpop.f32.mrb[144].mxu0  ;;  %v7603_v48 = vpop.f32.mrb[208].mxu1 }
 0x647   : > { %v3919_v54 = vpop.f32.mrb[145].mxu0  ;;  %v4064_v13 = vpop.f32.mrb[209].mxu1 }
 0x648   : > { %v7572_v50 = vpop.f32.mrb[146].mxu0  ;;  %v7604_v25 = vpop.f32.mrb[210].mxu1 }
 0x649   : > { %v10598_v5 = vpack.c.bf16 %v7572_v50, %v7571_v20  ;;  %v10600_v16 = vpack.c.bf16 %v7604_v25, %v7603_v48  ;;  %v3922_v2 = vpop.f32.mrb[147].mxu0  ;;  %v4067_v22 = vpop.f32.mrb[211].mxu1 }
 0x64a   : > { %v10606_v18 = vpack.c.bf16 %v3922_v2, %v3919_v54  ;;  %v10608_v8 = vpack.c.bf16 %v4067_v22, %v4064_v13 }
 0x64b   : > { %11660 = vst [vmem:[#allocation32_spill] sm:$0xff] %v10598_v5  ;;  %11661 = vst [vmem:[#allocation33_spill] sm:$0xff] %v10600_v16  ;;  %7690 = vmatpush3.bf16.xpose.msra.mxu0 %v4519_v44  ;;  %7722 = vmatpush3.bf16.xpose.msra.mxu1 %v4664_v30  ;;  %v4528_v44 = vsel %vm4191_vm0, %v10454_v26, 0  ;;  %v4673_v30 = vsel %vm4191_vm0, %v10456_v49, 0 }
 0x64c   : > { %11662 = vst [vmem:[#allocation34_spill] sm:$0xff] %v10606_v18  ;;  %11663 = vst [vmem:[#allocation35_spill] sm:$0xff] %v10608_v8  ;;  %8022 = vmatprep.subr.msk.bf16.mxu0 %vm4191_vm0, %v10440_v0  ;;  %8030 = vmatprep.subr.msk.bf16.mxu1 %vm4191_vm0, %v10442_v7 }
 0x64e   : > { %v7575_v28 = vpop.f32.mrb[148].mxu0  ;;  %v7607_v39 = vpop.f32.mrb[212].mxu1 }
 0x64f   : > { %v3935_v29 = vpop.f32.mrb[149].mxu0  ;;  %v4080_v3 = vpop.f32.mrb[213].mxu1 }
 0x650   : > { %v7576_v55 = vpop.f32.mrb[150].mxu0  ;;  %v7608_v47 = vpop.f32.mrb[214].mxu1 }
 0x651   : > { %v10614_v45 = vpack.c.bf16 %v7576_v55, %v7575_v28  ;;  %v10616_v34 = vpack.c.bf16 %v7608_v47, %v7607_v39  ;;  %v3938_v6 = vpop.f32.mrb[151].mxu0  ;;  %v4083_v56 = vpop.f32.mrb[215].mxu1  ;;  %v11681_v47 = vld [vmem:[#allocation8_spill] sm:$0xff] }
 0x652   : > { %v10622_v42 = vpack.c.bf16 %v3938_v6, %v3935_v29  ;;  %v10624_v37 = vpack.c.bf16 %v4083_v56, %v4080_v3  ;;  %v11676_v29 = vpack.c.bf16 %v10314_v41, %v10310_v46  ;;  %v11677_v3 = vld [vmem:[#allocation7_spill] sm:$0xff]  ;;  %v11686_v46 = vld [vmem:[#allocation14_spill] sm:$0xff]  ;;  %v11687_v41 = vld [vmem:[#allocation12_spill] sm:$0xff] }
 0x653   : > { %11664 = vst [vmem:[#allocation36_spill] sm:$0xff] %v10614_v45  ;;  %11665 = vst [vmem:[#allocation37_spill] sm:$0xff] %v10616_v34  ;;  %7692 = vmatpush3.bf16.xpose.msra.mxu0 %v4522_v23  ;;  %7724 = vmatpush3.bf16.xpose.msra.mxu1 %v4667_v12  ;;  %v11683_v56 = vld [vmem:[#allocation11_spill] sm:$0xff]  ;;  %v11684_v23 = vld [vmem:[#allocation9_spill] sm:$0xff] }
 0x654   : > { %11666 = vst [vmem:[#allocation38_spill] sm:$0xff] %v10622_v42  ;;  %11667 = vst [vmem:[#allocation39_spill] sm:$0xff] %v10624_v37  ;;  %8023 = vmatprep.subr.msk.bf16.mxu0 %vm4191_vm0, %v10458_v38  ;;  %8031 = vmatprep.subr.msk.bf16.mxu1 %vm4191_vm0, %v10460_v1  ;;  %v11685_v12 = vpack.c.bf16 %v11683_v56, %v11684_v23 }
 0x656   : > { %v7579_v32 = vpop.f32.mrb[152].mxu0  ;;  %v7611_v43 = vpop.f32.mrb[216].mxu1 }
 0x657   : > { %v3951_v53 = vpop.f32.mrb[153].mxu0  ;;  %v4096_v60 = vpop.f32.mrb[217].mxu1 }
 0x658   : > { %v7580_v0 = vpop.f32.mrb[154].mxu0  ;;  %v7612_v58 = vpop.f32.mrb[218].mxu1 }
 0x659   : > { %v10630_v40 = vpack.c.bf16 %v7580_v0, %v7579_v32  ;;  %v10632_v7 = vpack.c.bf16 %v7612_v58, %v7611_v43  ;;  %v3954_v9 = vpop.f32.mrb[155].mxu0  ;;  %v4099_v63 = vpop.f32.mrb[219].mxu1  ;;  %v11688_v32 = vpack.c.bf16 %v11686_v46, %v11687_v41  ;;  %v11690_v43 = vld [vmem:[#allocation13_spill] sm:$0xff] }
 0x65a   : > { %v10638_v19 = vpack.c.bf16 %v3954_v9, %v3951_v53  ;;  %v10640_v15 = vpack.c.bf16 %v4099_v63, %v4096_v60  ;;  %v11692_v53 = vld [vmem:[#allocation18_spill] sm:$0xff]  ;;  %v11693_v60 = vld [vmem:[#allocation16_spill] sm:$0xff] }
 0x65b   : > { %11668 = vst [vmem:[#allocation40_spill] sm:$0xff] %v10630_v40  ;;  %11669 = vst [vmem:[#allocation41_spill] sm:$0xff] %v10632_v7  ;;  %7694 = vmatpush3.bf16.xpose.msra.mxu0 %v4525_v14  ;;  %7726 = vmatpush3.bf16.xpose.msra.mxu1 %v4670_v52  ;;  %v11694_v0 = vpack.c.bf16 %v11692_v53, %v11693_v60  ;;  %v11698_v9 = vld [vmem:[#allocation22_spill] sm:$0xff]  ;;  %v11699_v63 = vld [vmem:[#allocation20_spill] sm:$0xff] }
 0x65c   : > { %11670 = vst [vmem:[#allocation42_spill] sm:$0xff] %v10638_v19  ;;  %11671 = vst [vmem:[#allocation43_spill] sm:$0xff] %v10640_v15  ;;  %8024 = vmatprep.subr.msk.bf16.mxu0 %vm4191_vm0, %v10454_v26  ;;  %8032 = vmatprep.subr.msk.bf16.mxu1 %vm4191_vm0, %v10456_v49  ;;  %v11678_v26 = vld [vmem:[#allocation6_spill] sm:$0xff]  ;;  %v11700_v14 = vpack.c.bf16 %v11698_v9, %v11699_v63  ;;  %v11702_v52 = vld [vmem:[#allocation21_spill] sm:$0xff] }
 0x65d   : > { %v11679_v55 = vpack.c.bf16 %v11677_v3, %v11678_v26  ;;  %v11680_v49 = vld [vmem:[#allocation10_spill] sm:$0xff] }
 0x65e   : > { %v7583_v20 = vpop.f32.mrb[156].mxu0  ;;  %v7615_v48 = vpop.f32.mrb[220].mxu1  ;;  %v11682_v6 = vpack.c.bf16 %v11680_v49, %v11681_v47 }
 0x65f   : > { %v3967_v54 = vpop.f32.mrb[157].mxu0  ;;  %v4112_v13 = vpop.f32.mrb[221].mxu1 }
 0x660   : > { %v7584_v38 = vpop.f32.mrb[158].mxu0  ;;  %v7616_v50 = vpop.f32.mrb[222].mxu1 }
 0x661   : > { %v10646_v25 = vpack.c.bf16 %v7584_v38, %v7583_v20  ;;  %v10648_v1 = vpack.c.bf16 %v7616_v50, %v7615_v48  ;;  %v3970_v2 = vpop.f32.mrb[159].mxu0  ;;  %v4115_v22 = vpop.f32.mrb[223].mxu1  ;;  %v11704_v20 = vld [vmem:[#allocation26_spill] sm:$0xff]  ;;  %v11705_v48 = vld [vmem:[#allocation24_spill] sm:$0xff] }
 0x662   : > { %v10654_v28 = vpack.c.bf16 %v3970_v2, %v3967_v54  ;;  %v10656_v39 = vpack.c.bf16 %v4115_v22, %v4112_v13  ;;  %v11706_v54 = vpack.c.bf16 %v11704_v20, %v11705_v48  ;;  %v11710_v38 = vld [vmem:[#allocation30_spill] sm:$0xff]  ;;  %v11711_v50 = vld [vmem:[#allocation28_spill] sm:$0xff]  ;;  %v11714_v22 = vld [vmem:[#allocation29_spill] sm:$0xff] }
 0x663   : > { %11672 = vst [vmem:[#allocation44_spill] sm:$0xff] %v10646_v25  ;;  %11673 = vst [vmem:[#allocation45_spill] sm:$0xff] %v10648_v1  ;;  %7696 = vmatpush3.bf16.xpose.msra.mxu0 %v4528_v44  ;;  %7728 = vmatpush3.bf16.xpose.msra.mxu1 %v4673_v30  ;;  %v11712_v2 = vpack.c.bf16 %v11710_v38, %v11711_v50 }
 0x664   : > { %11674 = vst [vmem:[#allocation46_spill] sm:$0xff] %v10654_v28  ;;  %11675 = vst [vmem:[#allocation47_spill] sm:$0xff] %v10656_v39  ;;  %7745 = vmatprep.subr.bf16.mxu0 %v10474_v36  ;;  %7777 = vmatprep.subr.bf16.mxu1 %v10476_v61 }
 0x66a   : > { %7698 = vmatmul.mubr.msk.bf16.vlgmr.msra.gmra.mrb[176].mxu0 %vm4191_vm0, %v11676_v29  ;;  %7730 = vmatmul.mubr.msk.bf16.vlgmr.msra.gmra.mrb[240].mxu1 %vm4191_vm0, %v11679_v55 }
 0x66b   : > { %7701 = vmatprep.mubr.msk.bf16.mxu0 %vm4191_vm0, %v11682_v6  ;;  %7733 = vmatprep.mubr.msk.bf16.mxu1 %vm4191_vm0, %v11685_v12 }
 0x66c   : > { %7746 = vmatpush3.bf16.msra.mxu0 %v10474_v36  ;;  %7778 = vmatpush3.bf16.msra.mxu1 %v10476_v61  ;;  %v11689_v36 = vld [vmem:[#allocation15_spill] sm:$0xff] }
 0x66d   : > { %7747 = vmatprep.subr.bf16.mxu0 %v10470_v17  ;;  %7779 = vmatprep.subr.bf16.mxu1 %v10472_v11  ;;  %v11691_v61 = vpack.c.bf16 %v11689_v36, %v11690_v43 }
 0x670   : > { %7748 = vmatpush3.bf16.msra.mxu0 %v10470_v17  ;;  %7780 = vmatpush3.bf16.msra.mxu1 %v10472_v11  ;;  %v11695_v17 = vld [vmem:[#allocation19_spill] sm:$0xff]  ;;  %v11696_v11 = vld [vmem:[#allocation17_spill] sm:$0xff] }
 0x671   : > { %7749 = vmatprep.subr.bf16.mxu0 %v10506_v57  ;;  %7781 = vmatprep.subr.bf16.mxu1 %v10508_v27  ;;  %v11697_v58 = vpack.c.bf16 %v11695_v17, %v11696_v11 }
 0x672   : > { %7702 = vmatmul.mubr.msk.bf16.gmra.mrb[180].mxu0 %vm4191_vm0, %v11688_v32  ;;  %7734 = vmatmul.mubr.msk.bf16.gmra.mrb[244].mxu1 %vm4191_vm0, %v11691_v61 }
 0x673   : > { %7705 = vmatprep.mubr.msk.bf16.mxu0 %vm4191_vm0, %v11694_v0  ;;  %7737 = vmatprep.mubr.msk.bf16.mxu1 %vm4191_vm0, %v11697_v58 }
 0x674   : > { %7750 = vmatpush3.bf16.msra.mxu0 %v10506_v57  ;;  %7782 = vmatpush3.bf16.msra.mxu1 %v10508_v27  ;;  %v11701_v57 = vld [vmem:[#allocation23_spill] sm:$0xff] }
 0x675   : > { %7751 = vmatprep.subr.bf16.mxu0 %v10502_v24  ;;  %7783 = vmatprep.subr.bf16.mxu1 %v10504_v10  ;;  %v11703_v27 = vpack.c.bf16 %v11701_v57, %v11702_v52 }
 0x678   : > { %7752 = vmatpush3.bf16.msra.mxu0 %v10502_v24  ;;  %7784 = vmatpush3.bf16.msra.mxu1 %v10504_v10  ;;  %v11707_v24 = vld [vmem:[#allocation27_spill] sm:$0xff]  ;;  %v11708_v10 = vld [vmem:[#allocation25_spill] sm:$0xff] }
 0x679   : > { %7753 = vmatprep.subr.bf16.mxu0 %v10538_v33  ;;  %7785 = vmatprep.subr.bf16.mxu1 %v10540_v4  ;;  %v11709_v13 = vpack.c.bf16 %v11707_v24, %v11708_v10 }
 0x67a   : > { %7706 = vmatmul.mubr.msk.bf16.gmra.mrb[184].mxu0 %vm4191_vm0, %v11700_v14  ;;  %7738 = vmatmul.mubr.msk.bf16.gmra.mrb[248].mxu1 %vm4191_vm0, %v11703_v27 }
 0x67b   : > { %7709 = vmatprep.mubr.msk.bf16.mxu0 %vm4191_vm0, %v11706_v54  ;;  %7741 = vmatprep.mubr.msk.bf16.mxu1 %vm4191_vm0, %v11709_v13 }
 0x67c   : > { %7754 = vmatpush3.bf16.msra.mxu0 %v10538_v33  ;;  %7786 = vmatpush3.bf16.msra.mxu1 %v10540_v4  ;;  %v11713_v33 = vld [vmem:[#allocation31_spill] sm:$0xff] }
 0x67d   : > { %7755 = vmatprep.subr.bf16.mxu0 %v10534_v21  ;;  %7787 = vmatprep.subr.bf16.mxu1 %v10536_v62  ;;  %v11715_v4 = vpack.c.bf16 %v11713_v33, %v11714_v22 }
 0x680   : > { %7756 = vmatpush3.bf16.msra.mxu0 %v10534_v21  ;;  %7788 = vmatpush3.bf16.msra.mxu1 %v10536_v62 }
 0x681   : > { %7757 = vmatprep.subr.bf16.mxu0 %v10570_v51  ;;  %7789 = vmatprep.subr.bf16.mxu1 %v10572_v59 }
 0x682   : > { %7710 = vmatmul.mubr.msk.bf16.gmra.mrb[188].mxu0 %vm4191_vm0, %v11712_v2  ;;  %7742 = vmatmul.mubr.msk.bf16.gmra.mrb[252].mxu1 %vm4191_vm0, %v11715_v4 }
 0x684   : > { %7758 = vmatpush3.bf16.msra.mxu0 %v10570_v51  ;;  %7790 = vmatpush3.bf16.msra.mxu1 %v10572_v59 }
 0x685   : > { %7759 = vmatprep.subr.bf16.mxu0 %v10566_v31  ;;  %7791 = vmatprep.subr.bf16.mxu1 %v10568_v35 }
 0x688   : > { %7760 = vmatpush3.bf16.msra.mxu0 %v10566_v31  ;;  %7792 = vmatpush3.bf16.msra.mxu1 %v10568_v35 }
 0x689   : > { %7809 = vmatprep.subr.bf16.mxu0 %v10606_v18  ;;  %7841 = vmatprep.subr.bf16.mxu1 %v10608_v8 }
 0x6fc   : > { %v10748_v21 = vpop.f32.mrb[160].mxu0  ;;  %v10750_v62 = vpop.f32.mrb[224].mxu1 }
 0x6fd   : > { %v10752_v44 = vpop.f32.mrb[225].mxu1  ;;  %4776 = vmax.xlane.f32.xlu0 %v10748_v21  ;;  %v10755_v51 = vpop.f32.mrb[161].mxu0 }
 0x6fe   : > { %v10757_v59 = vpop.f32.mrb[162].mxu0  ;;  %v10759_v30 = vpop.f32.mrb[226].mxu1 }
 0x6ff   : > { %v10761_v31 = vpop.f32.mrb[227].mxu1  ;;  %4778 = vmax.xlane.f32.xlu1 %v10757_v59  ;;  %v10764_v35 = vpop.f32.mrb[163].mxu0 }
 0x701   : > { %4808 = vmax.xlane.f32.xlu0 %v10750_v62 }
 0x703   : > { %4810 = vmax.xlane.f32.xlu1 %v10759_v30 }
 0x704   : > { %v10768_v29 = vpop.f32.mrb[164].mxu0  ;;  %v10770_v3 = vpop.f32.mrb[228].mxu1 }
 0x705   : > { %v10772_v26 = vpop.f32.mrb[229].mxu1  ;;  %4772 = vmax.xlane.f32.xlu0 %v10755_v51  ;;  %v10775_v55 = vpop.f32.mrb[165].mxu0 }
 0x706   : > { %v10777_v49 = vpop.f32.mrb[166].mxu0  ;;  %v10779_v47 = vpop.f32.mrb[230].mxu1 }
 0x707   : > { %v10781_v6 = vpop.f32.mrb[231].mxu1  ;;  %4774 = vmax.xlane.f32.xlu1 %v10764_v35  ;;  %v10784_v56 = vpop.f32.mrb[167].mxu0 }
 0x709   : > { %4804 = vmax.xlane.f32.xlu0 %v10752_v44 }
 0x70b   : > { %4806 = vmax.xlane.f32.xlu1 %v10761_v31 }
 0x70c   : > { %v10788_v23 = vpop.f32.mrb[168].mxu0  ;;  %v10790_v12 = vpop.f32.mrb[232].mxu1 }
 0x70d   : > { %v10792_v46 = vpop.f32.mrb[233].mxu1  ;;  %4784 = vmax.xlane.f32.xlu0 %v10768_v29  ;;  %v10795_v41 = vpop.f32.mrb[169].mxu0 }
 0x70e   : > { %v10797_v32 = vpop.f32.mrb[170].mxu0  ;;  %v10799_v36 = vpop.f32.mrb[234].mxu1 }
 0x70f   : > { %v10801_v43 = vpop.f32.mrb[235].mxu1  ;;  %4786 = vmax.xlane.f32.xlu1 %v10777_v49  ;;  %v10804_v61 = vpop.f32.mrb[171].mxu0 }
 0x711   : > { %4816 = vmax.xlane.f32.xlu0 %v10770_v3 }
 0x713   : > { %4818 = vmax.xlane.f32.xlu1 %v10779_v47 }
 0x714   : > { %v10808_v53 = vpop.f32.mrb[172].mxu0  ;;  %v10810_v60 = vpop.f32.mrb[236].mxu1 }
 0x715   : > { %v10812_v0 = vpop.f32.mrb[237].mxu1  ;;  %4780 = vmax.xlane.f32.xlu0 %v10775_v55  ;;  %v10815_v17 = vpop.f32.mrb[173].mxu0 }
 0x716   : > { %v10817_v11 = vpop.f32.mrb[174].mxu0  ;;  %v10819_v58 = vpop.f32.mrb[238].mxu1 }
 0x717   : > { %v10821_v9 = vpop.f32.mrb[239].mxu1  ;;  %4782 = vmax.xlane.f32.xlu1 %v10784_v56  ;;  %v10824_v63 = vpop.f32.mrb[175].mxu0 }
 0x719   : > { %4812 = vmax.xlane.f32.xlu0 %v10772_v26 }
 0x71b   : > { %4814 = vmax.xlane.f32.xlu1 %v10781_v6 }
 0x71d   : > { %4792 = vmax.xlane.f32.xlu0 %v10788_v23 }
 0x71f   : > { %4794 = vmax.xlane.f32.xlu1 %v10797_v32 }
 0x721   : > { %4824 = vmax.xlane.f32.xlu0 %v10790_v12 }
 0x723   : > { %4826 = vmax.xlane.f32.xlu1 %v10799_v36 }
 0x725   : > { %4788 = vmax.xlane.f32.xlu0 %v10795_v41 }
 0x727   : > { %4790 = vmax.xlane.f32.xlu1 %v10804_v61 }
 0x729   : > { %4820 = vmax.xlane.f32.xlu0 %v10792_v46 }
 0x72b   : > { %4822 = vmax.xlane.f32.xlu1 %v10801_v43 }
 0x72d   : > { %4800 = vmax.xlane.f32.xlu0 %v10808_v53 }
 0x72f   : > { %4802 = vmax.xlane.f32.xlu1 %v10817_v11 }
 0x731   : > { %4832 = vmax.xlane.f32.xlu0 %v10810_v60 }
 0x733   : > { %4834 = vmax.xlane.f32.xlu1 %v10819_v58 }
 0x735   : > { %4796 = vmax.xlane.f32.xlu0 %v10815_v17 }
 0x737   : > { %4798 = vmax.xlane.f32.xlu1 %v10824_v63 }
 0x739   : > { %4828 = vmax.xlane.f32.xlu0 %v10812_v0 }
 0x73b   : > { %4830 = vmax.xlane.f32.xlu1 %v10821_v9 }
 0x73d   : > { %v10844_v14 = vpop.f32.mrb[176].mxu0  ;;  %v10846_v57 = vpop.f32.mrb[240].mxu1 }
 0x73e   : > { %11716 = vst [vmem:[#allocation7_spill] sm:$0xff] %v10846_v57  ;;  %v10848_v52 = vpop.f32.mrb[241].mxu1  ;;  %4840 = vmax.xlane.f32.xlu0 %v10844_v14  ;;  %v10851_v27 = vpop.f32.mrb[177].mxu0 }
 0x73f   : > { %11717 = vst [vmem:[#allocation6_spill] sm:$0xff] %v10848_v52  ;;  %v10853_v20 = vpop.f32.mrb[178].mxu0  ;;  %v10855_v48 = vpop.f32.mrb[242].mxu1 }
 0x740   : > { %11718 = vst [vmem:[#allocation10_spill] sm:$0xff] %v10855_v48  ;;  %v10857_v54 = vpop.f32.mrb[243].mxu1  ;;  %4842 = vmax.xlane.f32.xlu1 %v10853_v20  ;;  %v10860_v24 = vpop.f32.mrb[179].mxu0 }
 0x741   : > { %11719 = vst [vmem:[#allocation8_spill] sm:$0xff] %v10857_v54 }
 0x742   : > { %4872 = vmax.xlane.f32.xlu0 %v10846_v57 }
 0x744   : > { %4874 = vmax.xlane.f32.xlu1 %v10855_v48 }
 0x745   : > { %v10864_v10 = vpop.f32.mrb[180].mxu0  ;;  %v10866_v13 = vpop.f32.mrb[244].mxu1 }
 0x746   : > { %11720 = vst [vmem:[#allocation11_spill] sm:$0xff] %v10866_v13  ;;  %v10868_v38 = vpop.f32.mrb[245].mxu1  ;;  %4836 = vmax.xlane.f32.xlu0 %v10851_v27  ;;  %v10871_v50 = vpop.f32.mrb[181].mxu0 }
 0x747   : > { %11721 = vst [vmem:[#allocation9_spill] sm:$0xff] %v10868_v38  ;;  %v10873_v2 = vpop.f32.mrb[182].mxu0  ;;  %v10875_v33 = vpop.f32.mrb[246].mxu1 }
 0x748   : > { %11722 = vst [vmem:[#allocation14_spill] sm:$0xff] %v10875_v33  ;;  %v10877_v22 = vpop.f32.mrb[247].mxu1  ;;  %4838 = vmax.xlane.f32.xlu1 %v10860_v24  ;;  %v10880_v4 = vpop.f32.mrb[183].mxu0 }
 0x749   : > { %11723 = vst [vmem:[#allocation12_spill] sm:$0xff] %v10877_v22 }
 0x74a   : > { %4868 = vmax.xlane.f32.xlu0 %v10848_v52 }
 0x74c   : > { %4870 = vmax.xlane.f32.xlu1 %v10857_v54 }
 0x74d   : > { %v10884_v1 = vpop.f32.mrb[184].mxu0  ;;  %v10886_v39 = vpop.f32.mrb[248].mxu1 }
 0x74e   : > { %11724 = vst [vmem:[#allocation15_spill] sm:$0xff] %v10886_v39  ;;  %v10888_v7 = vpop.f32.mrb[249].mxu1  ;;  %4848 = vmax.xlane.f32.xlu0 %v10864_v10  ;;  %v10891_v15 = vpop.f32.mrb[185].mxu0 }
 0x74f   : > { %11725 = vst [vmem:[#allocation13_spill] sm:$0xff] %v10888_v7  ;;  %v10893_v34 = vpop.f32.mrb[186].mxu0  ;;  %v10895_v37 = vpop.f32.mrb[250].mxu1 }
 0x750   : > { %11726 = vst [vmem:[#allocation18_spill] sm:$0xff] %v10895_v37  ;;  %v10897_v16 = vpop.f32.mrb[251].mxu1  ;;  %4850 = vmax.xlane.f32.xlu1 %v10873_v2  ;;  %v10900_v8 = vpop.f32.mrb[187].mxu0 }
 0x751   : > { %11727 = vst [vmem:[#allocation16_spill] sm:$0xff] %v10897_v16 }
 0x752   : > { %4880 = vmax.xlane.f32.xlu0 %v10866_v13 }
 0x754   : > { %4882 = vmax.xlane.f32.xlu1 %v10875_v33 }
 0x755   : > { %v10904_v25 = vpop.f32.mrb[188].mxu0  ;;  %v10906_v28 = vpop.f32.mrb[252].mxu1 }
 0x756   : > { %11728 = vst [vmem:[#allocation19_spill] sm:$0xff] %v10904_v25  ;;  %v10908_v40 = vpop.f32.mrb[253].mxu1  ;;  %4844 = vmax.xlane.f32.xlu0 %v10871_v50  ;;  %v10911_v19 = vpop.f32.mrb[189].mxu0 }
 0x757   : > { %v10913_v45 = vpop.f32.mrb[190].mxu0  ;;  %v10915_v42 = vpop.f32.mrb[254].mxu1 }
 0x758   : > { %11729 = vst [vmem:[#allocation17_spill] sm:$0xff] %v10913_v45  ;;  %v10917_v5 = vpop.f32.mrb[255].mxu1  ;;  %4846 = vmax.xlane.f32.xlu1 %v10880_v4  ;;  %v10920_v18 = vpop.f32.mrb[191].mxu0 }
 0x75a   : > { %4876 = vmax.xlane.f32.xlu0 %v10868_v38 }
 0x75c   : > { %4878 = vmax.xlane.f32.xlu1 %v10877_v22 }
 0x75e   : > { %4856 = vmax.xlane.f32.xlu0 %v10884_v1 }
 0x760   : > { %4858 = vmax.xlane.f32.xlu1 %v10893_v34 }
 0x762   : > { %4888 = vmax.xlane.f32.xlu0 %v10886_v39 }
 0x764   : > { %4890 = vmax.xlane.f32.xlu1 %v10895_v37 }
 0x766   : > { %4852 = vmax.xlane.f32.xlu0 %v10891_v15 }
 0x768   : > { %4854 = vmax.xlane.f32.xlu1 %v10900_v8 }
 0x76a   : > { %4884 = vmax.xlane.f32.xlu0 %v10888_v7 }
 0x76c   : > { %4886 = vmax.xlane.f32.xlu1 %v10897_v16 }
 0x76e   : > { %4864 = vmax.xlane.f32.xlu0 %v10904_v25 }
 0x770   : > { %4866 = vmax.xlane.f32.xlu1 %v10913_v45 }
 0x772   : > { %4860 = vmax.xlane.f32.xlu0 %v10911_v19 }
 0x774   : > { %4862 = vmax.xlane.f32.xlu1 %v10920_v18 }
 0x78a   : > { %v4777_v33 = vpop.xlane.xlu0 %4776 }
 0x78b   : > { %v4902_v39 = vsub.f32 %v10748_v21, %v4777_v33 }
 0x78c   : > { %v4779_v37 = vpop.xlane.xlu1 %4778 }
 0x78d   : > { %v4968_v13 = vmul.f32 1.442695, %v4902_v39  ;;  %v4903_v22 = vsub.f32 %v10757_v59, %v4779_v37 }
 0x78e   : > { %v10938_v38 = vpop.xlane.xlu0 %4808 }
 0x78f   : > { %8515 = vpow2.f32 %v4968_v13  ;;  %v4970_v7 = vmul.f32 1.442695, %v4903_v22 }
 0x790   : > { %v10940_v16 = vpop.xlane.xlu1 %4810 }
 0x791   : > { %8517 = vpow2.f32 %v4970_v7 }
 0x792   : > { %v4773_v48 = vpop.xlane.xlu0 %4772 }
 0x793   : > { %v4900_v57 = vsub.f32 %v10755_v51, %v4773_v48 }
 0x794   : > { %v4775_v54 = vpop.xlane.xlu1 %4774 }
 0x795   : > { %v4964_v52 = vmul.f32 1.442695, %v4900_v57  ;;  %v4901_v45 = vsub.f32 %v10764_v35, %v4775_v54 }
 0x796   : > { %v4805_v25 = vpop.xlane.xlu0 %4804 }
 0x797   : > { %8519 = vpow2.f32 %v4964_v52  ;;  %v4966_v21 = vmul.f32 1.442695, %v4901_v45  ;;  %v4916_v39 = vsub.f32 %v10752_v44, %v4805_v25 }
 0x798   : > { %v4807_v37 = vpop.xlane.xlu1 %4806 }
 0x799   : > { %v10945_v59 = vpop.eup %8515  ;;  %8521 = vpow2.f32 %v4966_v21  ;;  %v4996_v13 = vmul.f32 1.442695, %v4916_v39  ;;  %v4917_v33 = vsub.f32 %v10761_v31, %v4807_v37 }
 0x79a   : > { %v4785_v7 = vpop.xlane.xlu0 %4784  ;;  %5096 = vadd.xlane.f32.xlu0 %v10945_v59 }
 0x79b   : > { %v10949_v51 = vpop.eup %8517  ;;  %8523 = vpow2.f32 %v4996_v13  ;;  %v4998_v57 = vmul.f32 1.442695, %v4917_v33  ;;  %v4906_v35 = vsub.f32 %v10768_v29, %v4785_v7 }
 0x79c   : > { %v4787_v52 = vpop.xlane.xlu1 %4786  ;;  %5098 = vadd.xlane.f32.xlu1 %v10949_v51 }
 0x79d   : > { %8525 = vpow2.f32 %v4998_v57  ;;  %v4976_v45 = vmul.f32 1.442695, %v4906_v35  ;;  %v4907_v25 = vsub.f32 %v10777_v49, %v4787_v52 }
 0x79e   : > { %v10954_v44 = vpop.xlane.xlu0 %4816 }
 0x79f   : > { %8527 = vpow2.f32 %v4976_v45  ;;  %v4978_v31 = vmul.f32 1.442695, %v4907_v25 }
 0x7a0   : > { %v10956_v48 = vpop.xlane.xlu1 %4818 }
 0x7a1   : > { %v10958_v54 = vpop.eup %8519  ;;  %8529 = vpow2.f32 %v4978_v31 }
 0x7a2   : > { %v4781_v22 = vpop.xlane.xlu0 %4780  ;;  %5092 = vadd.xlane.f32.xlu0 %v10958_v54 }
 0x7a3   : > { %v10961_v29 = vpop.eup %8521  ;;  %v4904_v21 = vsub.f32 %v10775_v55, %v4781_v22 }
 0x7a4   : > { %v4783_v39 = vpop.xlane.xlu1 %4782  ;;  %5094 = vadd.xlane.f32.xlu1 %v10961_v29 }
 0x7a5   : > { %v10965_v49 = vpop.eup %8523  ;;  %v4972_v37 = vmul.f32 1.442695, %v4904_v21  ;;  %v4905_v13 = vsub.f32 %v10784_v56, %v4783_v39 }
 0x7a6   : > { %v10968_v33 = vpop.xlane.xlu0 %4812  ;;  %5124 = vadd.xlane.f32.xlu0 %v10965_v49 }
 0x7a7   : > { %v10971_v7 = vpop.eup %8525  ;;  %8531 = vpow2.f32 %v4972_v37  ;;  %v4974_v57 = vmul.f32 1.442695, %v4905_v13 }
 0x7a8   : > { %v10973_v35 = vpop.xlane.xlu1 %4814  ;;  %5126 = vadd.xlane.f32.xlu1 %v10971_v7 }
 0x7a9   : > { %v10976_v55 = vpop.eup %8527  ;;  %8533 = vpow2.f32 %v4974_v57 }
 0x7aa   : > { %11730 = vst [vmem:[#allocation22_spill] sm:$0xff] %v10976_v55  ;;  %v4793_v52 = vpop.xlane.xlu0 %4792  ;;  %5104 = vadd.xlane.f32.xlu0 %v10976_v55 }
 0x7ab   : > { %v10979_v45 = vpop.eup %8529  ;;  %v4910_v56 = vsub.f32 %v10788_v23, %v4793_v52 }
 0x7ac   : > { %11731 = vst [vmem:[#allocation20_spill] sm:$0xff] %v10979_v45  ;;  %v4795_v25 = vpop.xlane.xlu1 %4794  ;;  %5106 = vadd.xlane.f32.xlu1 %v10979_v45 }
 0x7ad   : > { %v4984_v31 = vmul.f32 1.442695, %v4910_v56  ;;  %v4911_v22 = vsub.f32 %v10797_v32, %v4795_v25 }
 0x7ae   : > { %v10984_v21 = vpop.xlane.xlu0 %4824 }
 0x7af   : > { %8535 = vpow2.f32 %v4984_v31  ;;  %v4986_v39 = vmul.f32 1.442695, %v4911_v22 }
 0x7b0   : > { %v10986_v37 = vpop.xlane.xlu1 %4826 }
 0x7b1   : > { %v10988_v13 = vpop.eup %8531  ;;  %8537 = vpow2.f32 %v4986_v39 }
 0x7b2   : > { %11732 = vst [vmem:[#allocation23_spill] sm:$0xff] %v10988_v13  ;;  %v4789_v57 = vpop.xlane.xlu0 %4788  ;;  %5100 = vadd.xlane.f32.xlu0 %v10988_v13 }
 0x7b3   : > { %v10991_v55 = vpop.eup %8533  ;;  %v4908_v23 = vsub.f32 %v10795_v41, %v4789_v57 }
 0x7b4   : > { %11733 = vst [vmem:[#allocation21_spill] sm:$0xff] %v10991_v55  ;;  %v4791_v52 = vpop.xlane.xlu1 %4790  ;;  %5102 = vadd.xlane.f32.xlu1 %v10991_v55 }
 0x7b5   : > { %v4980_v32 = vmul.f32 1.442695, %v4908_v23  ;;  %v4909_v56 = vsub.f32 %v10804_v61, %v4791_v52 }
 0x7b6   : > { %v10996_v25 = vpop.xlane.xlu0 %4820 }
 0x7b7   : > { %8539 = vpow2.f32 %v4980_v32  ;;  %v4982_v31 = vmul.f32 1.442695, %v4909_v56 }
 0x7b8   : > { %v10998_v22 = vpop.xlane.xlu1 %4822 }
 0x7b9   : > { %v11000_v39 = vpop.eup %8535  ;;  %8541 = vpow2.f32 %v4982_v31 }
 0x7ba   : > { %11734 = vst [vmem:[#allocation26_spill] sm:$0xff] %v11000_v39  ;;  %v4801_v13 = vpop.xlane.xlu0 %4800  ;;  %5112 = vadd.xlane.f32.xlu0 %v11000_v39 }
 0x7bb   : > { %v11003_v45 = vpop.eup %8537  ;;  %v4914_v41 = vsub.f32 %v10808_v53, %v4801_v13 }
 0x7bc   : > { %v4803_v57 = vpop.xlane.xlu1 %4802  ;;  %5114 = vadd.xlane.f32.xlu1 %v11003_v45 }
 0x7bd   : > { %v4992_v61 = vmul.f32 1.442695, %v4914_v41  ;;  %v4915_v23 = vsub.f32 %v10817_v11, %v4803_v57 }
 0x7be   : > { %v11008_v52 = vpop.xlane.xlu0 %4832 }
 0x7bf   : > { %8543 = vpow2.f32 %v4992_v61  ;;  %v4994_v32 = vmul.f32 1.442695, %v4915_v23  ;;  %v4918_v61 = vsub.f32 %v10750_v62, %v10938_v38 }
 0x7c0   : > { %v11010_v56 = vpop.xlane.xlu1 %4834 }
 0x7c1   : > { %v11012_v31 = vpop.eup %8539  ;;  %8545 = vpow2.f32 %v4994_v32 }
 0x7c2   : > { %11735 = vst [vmem:[#allocation24_spill] sm:$0xff] %v11012_v31  ;;  %v4797_v39 = vpop.xlane.xlu0 %4796  ;;  %5108 = vadd.xlane.f32.xlu0 %v11012_v31 }
 0x7c3   : > { %v11015_v55 = vpop.eup %8541  ;;  %v4912_v53 = vsub.f32 %v10815_v17, %v4797_v39  ;;  %v4919_v17 = vsub.f32 %v10759_v30, %v10940_v16  ;;  %v4921_v30 = vsub.f32 %v10781_v6, %v10973_v35  ;;  %v4924_v35 = vsub.f32 %v10792_v46, %v10996_v25 }
 0x7c4   : > { %v4799_v13 = vpop.xlane.xlu1 %4798  ;;  %5110 = vadd.xlane.f32.xlu1 %v11015_v55  ;;  %v4926_v46 = vsub.f32 %v10790_v12, %v10984_v21 }
 0x7c5   : > { %v4988_v11 = vmul.f32 1.442695, %v4912_v53  ;;  %v4913_v41 = vsub.f32 %v10824_v63, %v4799_v13  ;;  %v5000_v63 = vmul.f32 1.442695, %v4918_v61  ;;  %v5002_v62 = vmul.f32 1.442695, %v4919_v17 }
 0x7c6   : > { %v11020_v57 = vpop.xlane.xlu0 %4828  ;;  %v4920_v13 = vsub.f32 %v10772_v26, %v10968_v33  ;;  %v4923_v26 = vsub.f32 %v10779_v47, %v10956_v48  ;;  %v5006_v33 = vmul.f32 1.442695, %v4921_v30  ;;  %v4925_v47 = vsub.f32 %v10801_v43, %v10998_v22 }
 0x7c7   : > { %8547 = vpow2.f32 %v4988_v11  ;;  %v4990_v23 = vmul.f32 1.442695, %v4913_v41  ;;  %v5012_v25 = vmul.f32 1.442695, %v4924_v35 }
 0x7c8   : > { %v11024_v32 = vpop.xlane.xlu1 %4830  ;;  %v5004_v17 = vmul.f32 1.442695, %v4920_v13  ;;  %v5014_v43 = vmul.f32 1.442695, %v4925_v47 }
 0x7c9   : > { %v11026_v31 = vpop.eup %8543  ;;  %8549 = vpow2.f32 %v4990_v23  ;;  %v4922_v23 = vsub.f32 %v10770_v3, %v10954_v44  ;;  %v5010_v44 = vmul.f32 1.442695, %v4923_v26  ;;  %v4928_v26 = vsub.f32 %v10812_v0, %v11020_v57 }
 0x7ca   : > { %11736 = vst [vmem:[#allocation27_spill] sm:$0xff] %v11026_v31  ;;  %5120 = vadd.xlane.f32.xlu0 %v11026_v31  ;;  %8551 = vpow2.f32 %v5000_v63  ;;  %v4930_v0 = vsub.f32 %v10810_v60, %v11008_v52 }
 0x7cb   : > { %v11031_v39 = vpop.eup %8545  ;;  %v11033_v53 = vpop.xlane.xlu0 %4840  ;;  %8553 = vpow2.f32 %v5002_v62  ;;  %v5008_v6 = vmul.f32 1.442695, %v4922_v23  ;;  %v4927_v23 = vsub.f32 %v10799_v36, %v10986_v37  ;;  %v4929_v36 = vsub.f32 %v10821_v9, %v11024_v32 }
 0x7cc   : > { %5122 = vadd.xlane.f32.xlu1 %v11031_v39  ;;  %8555 = vpow2.f32 %v5004_v17  ;;  %v5016_v17 = vmul.f32 1.442695, %v4926_v46  ;;  %v5020_v57 = vmul.f32 1.442695, %v4928_v26  ;;  %v4931_v9 = vsub.f32 %v10819_v58, %v11010_v56 }
 0x7cd   : > { %v11036_v38 = vpop.xlane.xlu1 %4842  ;;  %8557 = vpow2.f32 %v5006_v33  ;;  %v5018_v33 = vmul.f32 1.442695, %v4927_v23  ;;  %v5022_v32 = vmul.f32 1.442695, %v4929_v36 }
 0x7ce   : > { %8559 = vpow2.f32 %v5008_v6 }
 0x7cf   : > { %v11040_v11 = vpop.xlane.xlu0 %4872  ;;  %8561 = vpow2.f32 %v5010_v44 }
 0x7d0   : > { %8563 = vpow2.f32 %v5012_v25  ;;  %v5024_v25 = vmul.f32 1.442695, %v4930_v0 }
 0x7d1   : > { %v11042_v16 = vpop.eup %8547  ;;  %v11046_v41 = vpop.xlane.xlu1 %4874  ;;  %8565 = vpow2.f32 %v5014_v43  ;;  %v5026_v43 = vmul.f32 1.442695, %v4931_v9 }
 0x7d2   : > { %5116 = vadd.xlane.f32.xlu0 %v11042_v16  ;;  %8567 = vpow2.f32 %v5016_v17 }
 0x7d3   : > { %v11049_v61 = vpop.eup %8549  ;;  %v11053_v63 = vpop.xlane.xlu0 %4836  ;;  %8569 = vpow2.f32 %v5018_v33 }
 0x7d4   : > { %5118 = vadd.xlane.f32.xlu1 %v11049_v61  ;;  %v11066_v3 = vpop.eup %8551  ;;  %8571 = vpow2.f32 %v5020_v57  ;;  %v4932_v60 = vsub.f32 %v10851_v27, %v11053_v63  ;;  %v4934_v27 = vsub.f32 %v10844_v14, %v11033_v53 }
 0x7d5   : > { %v11058_v62 = vpop.xlane.xlu1 %4838  ;;  %v11073_v13 = vpop.eup %8553  ;;  %8573 = vpow2.f32 %v5022_v32 }
 0x7d6   : > { %4892 = vmax.xlane.f32.xlu0 %v10908_v40  ;;  %v11090_v21 = vpop.eup %8555  ;;  %v4933_v58 = vsub.f32 %v10860_v24, %v11058_v62  ;;  %8575 = vpow2.f32 %v5024_v25  ;;  %v5028_v63 = vmul.f32 1.442695, %v4932_v60  ;;  %v4935_v24 = vsub.f32 %v10853_v20, %v11036_v38 }
 0x7d7   : > { %v11063_v31 = vpop.xlane.xlu0 %4868  ;;  %v11097_v6 = vpop.eup %8557  ;;  %8577 = vpow2.f32 %v5026_v43  ;;  %v5032_v57 = vmul.f32 1.442695, %v4934_v27 }
 0x7d8   : > { %4894 = vmax.xlane.f32.xlu1 %v10917_v5  ;;  %v11102_v44 = vpop.eup %8559  ;;  %v5030_v62 = vmul.f32 1.442695, %v4933_v58  ;;  %8579 = vpow2.f32 %v5028_v63  ;;  %v5034_v32 = vmul.f32 1.442695, %v4935_v24 }
 0x7d9   : > { %v11070_v48 = vpop.xlane.xlu1 %4870  ;;  %v11107_v46 = vpop.eup %8561 }
 0x7da   : > { %5128 = vadd.xlane.f32.xlu0 %v11066_v3  ;;  %v11114_v23 = vpop.eup %8563  ;;  %8581 = vpow2.f32 %v5030_v62 }
 0x7db   : > { %v11077_v30 = vpop.xlane.xlu0 %4848  ;;  %v11121_v17 = vpop.eup %8565  ;;  %8583 = vpow2.f32 %v5032_v57 }
 0x7dc   : > { %5130 = vadd.xlane.f32.xlu1 %v11073_v13  ;;  %v11126_v33 = vpop.eup %8567  ;;  %8585 = vpow2.f32 %v5034_v32 }
 0x7dd   : > { %v11082_v22 = vpop.xlane.xlu1 %4850  ;;  %v11131_v0 = vpop.eup %8569 }
 0x7de   : > { %4896 = vmax.xlane.f32.xlu0 %v10906_v28  ;;  %v11137_v9 = vpop.eup %8571 }
 0x7df   : > { %v11087_v12 = vpop.xlane.xlu0 %4880  ;;  %v11143_v25 = vpop.eup %8573 }
 0x7e0   : > { %4898 = vmax.xlane.f32.xlu1 %v10915_v42  ;;  %v11148_v43 = vpop.eup %8575 }
 0x7e1   : > { %v11094_v37 = vpop.xlane.xlu1 %4882  ;;  %v11153_v27 = vpop.eup %8577 }
 0x7e2   : > { %5132 = vadd.xlane.f32.xlu0 %v11090_v21  ;;  %v11159_v24 = vpop.eup %8579 }
 0x7e3   : > { %v4845_v35 = vpop.xlane.xlu0 %4844 }
 0x7e4   : > { %5134 = vadd.xlane.f32.xlu1 %v11097_v6  ;;  %v4936_v14 = vsub.f32 %v10871_v50, %v4845_v35  ;;  %v4938_v50 = vsub.f32 %v10864_v10, %v11077_v30  ;;  %v11165_v57 = vpop.eup %8581 }
 0x7e5   : > { %v4847_v47 = vpop.xlane.xlu1 %4846 }
 0x7e6   : > { %5136 = vadd.xlane.f32.xlu0 %v11102_v44  ;;  %v4937_v20 = vsub.f32 %v10880_v4, %v4847_v47  ;;  %v5036_v35 = vmul.f32 1.442695, %v4936_v14  ;;  %v4939_v4 = vsub.f32 %v10873_v2, %v11082_v22  ;;  %v5040_v63 = vmul.f32 1.442695, %v4938_v50 }
 0x7e7   : > { %v11111_v52 = vpop.xlane.xlu0 %4876 }
 0x7e8   : > { %5138 = vadd.xlane.f32.xlu1 %v11107_v46  ;;  %v5038_v47 = vmul.f32 1.442695, %v4937_v20  ;;  %8587 = vpow2.f32 %v5036_v35  ;;  %v5042_v62 = vmul.f32 1.442695, %v4939_v4  ;;  %v11169_v20 = vpop.eup %8583 }
 0x7e9   : > { %v11118_v56 = vpop.xlane.xlu1 %4878 }
 0x7ea   : > { %5140 = vadd.xlane.f32.xlu0 %v11114_v23  ;;  %8589 = vpow2.f32 %v5038_v47 }
 0x7eb   : > { %v4857_v26 = vpop.xlane.xlu0 %4856  ;;  %8591 = vpow2.f32 %v5040_v63 }
 0x7ec   : > { %5142 = vadd.xlane.f32.xlu1 %v11121_v17  ;;  %v4942_v14 = vsub.f32 %v10884_v1, %v4857_v26  ;;  %8593 = vpow2.f32 %v5042_v62 }
 0x7ed   : > { %v4859_v36 = vpop.xlane.xlu1 %4858 }
 0x7ee   : > { %5144 = vadd.xlane.f32.xlu0 %v11126_v33  ;;  %v4943_v50 = vsub.f32 %v10893_v34, %v4859_v36  ;;  %v5048_v4 = vmul.f32 1.442695, %v4942_v14  ;;  %v11738_v14 = vld [vmem:[#allocation17_spill] sm:$0xff] }
 0x7ef   : > { %v11134_v53 = vpop.xlane.xlu0 %4888 }
 0x7f0   : > { %5146 = vadd.xlane.f32.xlu1 %v11131_v0 }
 0x7f1   : > { %v11140_v38 = vpop.xlane.xlu1 %4890 }
 0x7f2   : > { %5148 = vadd.xlane.f32.xlu0 %v11137_v9 }
 0x7f3   : > { %v4853_v60 = vpop.xlane.xlu0 %4852 }
 0x7f4   : > { %5150 = vadd.xlane.f32.xlu1 %v11143_v25  ;;  %v4940_v10 = vsub.f32 %v10891_v15, %v4853_v60  ;;  %v11173_v60 = vpop.eup %8585 }
 0x7f5   : > { %v4855_v58 = vpop.xlane.xlu1 %4854  ;;  %v11177_v26 = vpop.eup %8587 }
 0x7f6   : > { %5152 = vadd.xlane.f32.xlu0 %v11148_v43  ;;  %v4941_v2 = vsub.f32 %v10900_v8, %v4855_v58  ;;  %v5044_v15 = vmul.f32 1.442695, %v4940_v10  ;;  %v5050_v58 = vmul.f32 1.442695, %v4943_v50  ;;  %v11181_v36 = vpop.eup %8589  ;;  %v11737_v10 = vld [vmem:[#allocation19_spill] sm:$0xff] }
 0x7f7   : > { %v11156_v30 = vpop.xlane.xlu0 %4884 }
 0x7f8   : > { %5154 = vadd.xlane.f32.xlu1 %v11153_v27  ;;  %v5046_v35 = vmul.f32 1.442695, %v4941_v2  ;;  %8595 = vpow2.f32 %v5044_v15 }
 0x7f9   : > { %v11162_v22 = vpop.xlane.xlu1 %4886 }
 0x7fa   : > { %5156 = vadd.xlane.f32.xlu0 %v11159_v24  ;;  %8597 = vpow2.f32 %v5046_v35 }
 0x7fb   : > { %v4865_v32 = vpop.xlane.xlu0 %4864  ;;  %8599 = vpow2.f32 %v5048_v4  ;;  %v11740_v4 = vld [vmem:[#allocation8_spill] sm:$0xff] }
 0x7fc   : > { %5158 = vadd.xlane.f32.xlu1 %v11165_v57  ;;  %v4946_v62 = vsub.f32 %v11737_v10, %v4865_v32  ;;  %8601 = vpow2.f32 %v5050_v58 }
 0x7fd   : > { %v4867_v8 = vpop.xlane.xlu1 %4866 }
 0x7fe   : > { %5160 = vadd.xlane.f32.xlu0 %v11169_v20  ;;  %v4947_v15 = vsub.f32 %v11738_v14, %v4867_v8 }
 0x7ff   : > { %v4861_v47 = vpop.xlane.xlu0 %4860 }
 0x800   : > { %v4944_v1 = vsub.f32 %v10911_v19, %v4861_v47  ;;  %5162 = vadd.xlane.f32.xlu1 %v11173_v60  ;;  %v11185_v19 = vpop.eup %8591  ;;  %v5058_v58 = vmul.f32 1.442695, %v4947_v15 }
 0x801   : > { %v4863_v63 = vpop.xlane.xlu1 %4862  ;;  %v11189_v35 = vpop.eup %8593 }
 0x802   : > { %v4945_v34 = vsub.f32 %v10920_v18, %v4863_v63  ;;  %5164 = vadd.xlane.f32.xlu0 %v11177_v26  ;;  %v5052_v2 = vmul.f32 1.442695, %v4944_v1  ;;  %v11739_v18 = vld [vmem:[#allocation6_spill] sm:$0xff]  ;;  %v5056_v63 = vmul.f32 1.442695, %v4946_v62  ;;  %v11194_v32 = vpop.eup %8595  ;;  %v4949_v1 = vsub.f32 %v11740_v4, %v11070_v48  ;;  %v11744_v4 = vld [vmem:[#allocation12_spill] sm:$0xff] }
 0x803   : > { %v4948_v47 = vsub.f32 %v11739_v18, %v11063_v31  ;;  %v11742_v62 = vld [vmem:[#allocation10_spill] sm:$0xff] }
 0x804   : > { %5166 = vadd.xlane.f32.xlu1 %v11181_v36  ;;  %v5054_v50 = vmul.f32 1.442695, %v4945_v34  ;;  %8603 = vpow2.f32 %v5052_v2  ;;  %v11199_v8 = vpop.eup %8597  ;;  %v11741_v34 = vld [vmem:[#allocation7_spill] sm:$0xff]  ;;  %v4951_v2 = vsub.f32 %v11742_v62, %v11046_v41  ;;  %v5062_v18 = vmul.f32 1.442695, %v4949_v1 }
 0x805   : > { %v4950_v10 = vsub.f32 %v11741_v34, %v11040_v11  ;;  %v5060_v14 = vmul.f32 1.442695, %v4948_v47  ;;  %v11204_v31 = vpop.eup %8599  ;;  %v4953_v41 = vsub.f32 %v11744_v4, %v11118_v56 }
 0x806   : > { %5168 = vadd.xlane.f32.xlu0 %v11185_v19  ;;  %8605 = vpow2.f32 %v5054_v50  ;;  %v11209_v48 = vpop.eup %8601  ;;  %v11743_v50 = vld [vmem:[#allocation9_spill] sm:$0xff] }
 0x807   : > { %8607 = vpow2.f32 %v5056_v63  ;;  %v5064_v15 = vmul.f32 1.442695, %v4950_v10  ;;  %v4952_v11 = vsub.f32 %v11743_v50, %v11111_v52  ;;  %v5066_v63 = vmul.f32 1.442695, %v4951_v2 }
 0x808   : > { %5170 = vadd.xlane.f32.xlu1 %v11189_v35  ;;  %8609 = vpow2.f32 %v5058_v58  ;;  %v11745_v58 = vld [vmem:[#allocation11_spill] sm:$0xff]  ;;  %v5070_v2 = vmul.f32 1.442695, %v4953_v41 }
 0x809   : > { %8611 = vpow2.f32 %v5060_v14  ;;  %v4954_v34 = vsub.f32 %v11745_v58, %v11087_v12  ;;  %v5068_v10 = vmul.f32 1.442695, %v4952_v11  ;;  %v11746_v14 = vld [vmem:[#allocation14_spill] sm:$0xff]  ;;  %v11749_v41 = vld [vmem:[#allocation15_spill] sm:$0xff] }
 0x80a   : > { %5172 = vadd.xlane.f32.xlu0 %v11194_v32  ;;  %8613 = vpow2.f32 %v5062_v18  ;;  %v4955_v62 = vsub.f32 %v11746_v14, %v11094_v37  ;;  %v4958_v58 = vsub.f32 %v11749_v41, %v11134_v53 }
 0x80b   : > { %8615 = vpow2.f32 %v5064_v15  ;;  %v5072_v18 = vmul.f32 1.442695, %v4954_v34  ;;  %v11747_v15 = vld [vmem:[#allocation13_spill] sm:$0xff] }
 0x80c   : > { %5174 = vadd.xlane.f32.xlu1 %v11199_v8  ;;  %8617 = vpow2.f32 %v5066_v63  ;;  %v4956_v50 = vsub.f32 %v11747_v15, %v11156_v30  ;;  %v5074_v11 = vmul.f32 1.442695, %v4955_v62  ;;  %v11748_v63 = vld [vmem:[#allocation16_spill] sm:$0xff] }
 0x80d   : > { %8619 = vpow2.f32 %v5068_v10  ;;  %v4957_v4 = vsub.f32 %v11748_v63, %v11162_v22  ;;  %v11751_v10 = vld [vmem:[#allocation18_spill] sm:$0xff] }
 0x80e   : > { %5176 = vadd.xlane.f32.xlu0 %v11204_v31  ;;  %v11214_v47 = vpop.eup %8603  ;;  %8621 = vpow2.f32 %v5070_v2  ;;  %v5076_v34 = vmul.f32 1.442695, %v4956_v50  ;;  %v4959_v14 = vsub.f32 %v11751_v10, %v11140_v38  ;;  %v5080_v2 = vmul.f32 1.442695, %v4958_v58 }
 0x80f   : > { %8623 = vpow2.f32 %v5072_v18  ;;  %v5078_v62 = vmul.f32 1.442695, %v4957_v4 }
 0x810   : > { %5178 = vadd.xlane.f32.xlu1 %v11209_v48  ;;  %v11219_v1 = vpop.eup %8605  ;;  %8625 = vpow2.f32 %v5074_v11  ;;  %v5082_v53 = vmul.f32 1.442695, %v4959_v14 }
 0x811   : > { %v11224_v52 = vpop.eup %8607  ;;  %8627 = vpow2.f32 %v5076_v34 }
 0x812   : > { %5180 = vadd.xlane.f32.xlu0 %v11214_v47  ;;  %v11229_v56 = vpop.eup %8609  ;;  %8629 = vpow2.f32 %v5078_v62 }
 0x813   : > { %v11234_v12 = vpop.eup %8611  ;;  %8631 = vpow2.f32 %v5080_v2 }
 0x814   : > { %5182 = vadd.xlane.f32.xlu1 %v11219_v1  ;;  %v11239_v37 = vpop.eup %8613  ;;  %8633 = vpow2.f32 %v5082_v53 }
 0x815   : > { %v11244_v30 = vpop.eup %8615 }
 0x816   : > { %5184 = vadd.xlane.f32.xlu0 %v11224_v52  ;;  %11750 = vst [vmem:[#allocation25_spill] sm:$0xff] %v11244_v30  ;;  %v11249_v22 = vpop.eup %8617 }
 0x817   : > { %11752 = vst [vmem:[#allocation30_spill] sm:$0xff] %v11249_v22  ;;  %v11252_v18 = vpop.eup %8619 }
 0x818   : > { %5186 = vadd.xlane.f32.xlu1 %v11229_v56  ;;  %11753 = vst [vmem:[#allocation28_spill] sm:$0xff] %v11252_v18  ;;  %v11255_v15 = vpop.eup %8621 }
 0x819   : > { %11754 = vst [vmem:[#allocation31_spill] sm:$0xff] %v11255_v15  ;;  %v11258_v38 = vpop.eup %8623 }
 0x81a   : > { %5188 = vadd.xlane.f32.xlu0 %v11234_v12  ;;  %11755 = vst [vmem:[#allocation29_spill] sm:$0xff] %v11258_v38  ;;  %v11261_v50 = vpop.eup %8625 }
 0x81b   : > { %11756 = vst [vmem:[#allocation19_spill] sm:$0xff] %v11261_v50  ;;  %v11264_v11 = vpop.eup %8627 }
 0x81c   : > { %5190 = vadd.xlane.f32.xlu1 %v11239_v37  ;;  %11757 = vst [vmem:[#allocation17_spill] sm:$0xff] %v11264_v11  ;;  %v11267_v63 = vpop.eup %8629 }
 0x81d   : > { %11758 = vst [vmem:[#allocation6_spill] sm:$0xff] %v11267_v63  ;;  %v11270_v58 = vpop.eup %8631 }
 0x81e   : > { %5192 = vadd.xlane.f32.xlu0 %v11244_v30  ;;  %11759 = vst [vmem:[#allocation8_spill] sm:$0xff] %v11270_v58  ;;  %v11273_v34 = vpop.eup %8633 }
 0x81f   : > { %11760 = vst [vmem:[#allocation7_spill] sm:$0xff] %v11273_v34 }
 0x820   : > { %5194 = vadd.xlane.f32.xlu1 %v11249_v22 }
 0x822   : > { %5196 = vadd.xlane.f32.xlu0 %v11252_v18 }
 0x824   : > { %5198 = vadd.xlane.f32.xlu1 %v11255_v15 }
 0x826   : > { %5200 = vadd.xlane.f32.xlu0 %v11258_v38 }
 0x827   : > { %v5097_v4 = vpop.xlane.xlu0 %5096 }
 0x828   : > { %5202 = vadd.xlane.f32.xlu1 %v11261_v50 }
 0x829   : > { %v5099_v41 = vpop.xlane.xlu1 %5098 }
 0x82a   : > { %5204 = vadd.xlane.f32.xlu0 %v11264_v11  ;;  %8635 = vrcp.f32 %v5099_v41 }
 0x82c   : > { %5206 = vadd.xlane.f32.xlu1 %v11267_v63 }
 0x82e   : > { %5208 = vadd.xlane.f32.xlu0 %v11270_v58 }
 0x82f   : > { %v5093_v10 = vpop.xlane.xlu0 %5092 }
 0x830   : > { %8637 = vrcp.f32 %v5093_v10  ;;  %5210 = vadd.xlane.f32.xlu1 %v11273_v34 }
 0x831   : > { %8639 = vrcp.f32 %v5097_v4  ;;  %v5095_v14 = vpop.xlane.xlu1 %5094 }
 0x832   : > { %8641 = vrcp.f32 %v5095_v14 }
 0x833   : > { %v5125_v62 = vpop.xlane.xlu0 %5124 }
 0x834   : > { %8643 = vrcp.f32 %v5125_v62  ;;  %v8636_v53 = vpop.eup %8635 }
 0x835   : > { %v5127_v2 = vpop.xlane.xlu1 %5126  ;;  %v5287_v58 = vmul.f32 %v8636_v53, %v10949_v51  ;;  %v11767_v53 = vld [vmem:[#allocation21_spill] sm:$0xff] }
 0x836   : > { %8645 = vrcp.f32 %v5127_v2 }
 0x837   : > { %v5105_v50 = vpop.xlane.xlu0 %5104 }
 0x839   : > { %v5107_v15 = vpop.xlane.xlu1 %5106 }
 0x83a   : > { %v8638_v63 = vpop.eup %8637  ;;  %8647 = vrcp.f32 %v5107_v15 }
 0x83b   : > { %v8640_v11 = vpop.eup %8639  ;;  %v5284_v41 = vmul.f32 %v8638_v63, %v10958_v54  ;;  %v11761_v54 = vld [vmem:[#allocation34_spill] sm:$0xff] }
 0x83c   : > { %v8642_v38 = vpop.eup %8641  ;;  %v5286_v4 = vmul.f32 %v8640_v11, %v10945_v59  ;;  %v11763_v59 = vld [vmem:[#allocation38_spill] sm:$0xff] }
 0x83d   : > { %v5285_v10 = vmul.f32 %v8642_v38, %v10961_v29  ;;  %v11762_v38 = vld [vmem:[#allocation32_spill] sm:$0xff] }
 0x83e   : > { %v8644_v34 = vpop.eup %8643  ;;  %v5349_v2 = vpack.c.bf16 %v5287_v58, %v5286_v4 }
 0x83f   : > { %v5101_v14 = vpop.xlane.xlu0 %5100  ;;  %v5348_v62 = vpack.c.bf16 %v5285_v10, %v5284_v41  ;;  %v5300_v30 = vmul.f32 %v8644_v34, %v10965_v49  ;;  %v11768_v10 = vld [vmem:[#allocation22_spill] sm:$0xff] }
 0x840   : > { %v8646_v18 = vpop.eup %8645  ;;  %8649 = vrcp.f32 %v5101_v14 }
 0x841   : > { %8651 = vrcp.f32 %v5105_v50  ;;  %7761 = vmatprep.mubr.bf16.mxu0 %v5348_v62  ;;  %v5103_v22 = vpop.xlane.xlu1 %5102  ;;  %v5301_v51 = vmul.f32 %v8646_v18, %v10971_v7  ;;  %v11765_v18 = vld [vmem:[#allocation20_spill] sm:$0xff] }
 0x842   : > { %8653 = vrcp.f32 %v5103_v22  ;;  %7762 = vmatmul.mubr.bf16.vlgmr.msra.gmra.mrb[192].mxu0 %v5349_v2  ;;  %v11764_v22 = vld [vmem:[#allocation36_spill] sm:$0xff]  ;;  %v11769_v2 = vld [vmem:[#allocation42_spill] sm:$0xff] }
 0x843   : > { %7810 = vmatpush3.bf16.msra.mxu0 %v11761_v54  ;;  %v5356_v29 = vpack.c.bf16 %v5301_v51, %v5300_v30  ;;  %v11766_v30 = vld [vmem:[#allocation23_spill] sm:$0xff] }
 0x844   : > { %7811 = vmatprep.subr.bf16.mxu0 %v11762_v38  ;;  %v8648_v15 = vpop.eup %8647 }
 0x845   : > { %7793 = vmatprep.mubr.bf16.mxu1 %v5356_v29  ;;  %v5291_v58 = vmul.f32 %v8648_v15, %v11765_v18  ;;  %v11770_v29 = vld [vmem:[#allocation40_spill] sm:$0xff] }
 0x846   : > { %v11773_v18 = vld [vmem:[#allocation24_spill] sm:$0xff] }
 0x847   : > { %7812 = vmatpush3.bf16.msra.mxu0 %v11762_v38  ;;  %v5113_v63 = vpop.xlane.xlu0 %5112  ;;  %v11771_v38 = vld [vmem:[#allocation46_spill] sm:$0xff] }
 0x848   : > { %7813 = vmatprep.subr.bf16.mxu0 %v11763_v59 }
 0x849   : > { %v5115_v7 = vpop.xlane.xlu1 %5114 }
 0x84a   : > { %v8650_v50 = vpop.eup %8649  ;;  %8655 = vrcp.f32 %v5115_v7  ;;  %v11772_v7 = vld [vmem:[#allocation44_spill] sm:$0xff] }
 0x84b   : > { %v8652_v11 = vpop.eup %8651  ;;  %7814 = vmatpush3.bf16.msra.mxu0 %v11763_v59  ;;  %v5288_v34 = vmul.f32 %v8650_v50, %v11766_v30 }
 0x84c   : > { %v8654_v49 = vpop.eup %8653  ;;  %7815 = vmatprep.subr.bf16.mxu0 %v11764_v22  ;;  %v5290_v4 = vmul.f32 %v8652_v11, %v11768_v10 }
 0x84d   : > { %v5289_v41 = vmul.f32 %v8654_v49, %v11767_v53 }
 0x84e   : > { %v5351_v51 = vpack.c.bf16 %v5291_v58, %v5290_v4 }
 0x84f   : > { %7816 = vmatpush3.bf16.msra.mxu0 %v11764_v22  ;;  %v5109_v14 = vpop.xlane.xlu0 %5108  ;;  %v5350_v62 = vpack.c.bf16 %v5289_v41, %v5288_v34  ;;  %v11774_v34 = vld [vmem:[#allocation26_spill] sm:$0xff] }
 0x850   : > { %8657 = vrcp.f32 %v5109_v14  ;;  %7817 = vmatprep.subr.bf16.mxu0 %v11769_v2 }
 0x851   : > { %8659 = vrcp.f32 %v5113_v63  ;;  %7765 = vmatprep.mubr.bf16.mxu0 %v5350_v62  ;;  %v5111_v54 = vpop.xlane.xlu1 %5110 }
 0x852   : > { %8661 = vrcp.f32 %v5111_v54  ;;  %7766 = vmatmul.mubr.bf16.gmra.mrb[196].mxu0 %v5351_v51 }
 0x853   : > { %7818 = vmatpush3.bf16.msra.mxu0 %v11769_v2 }
 0x854   : > { %7819 = vmatprep.subr.bf16.mxu0 %v11770_v29  ;;  %v8656_v59 = vpop.eup %8655 }
 0x855   : > { %v5295_v22 = vmul.f32 %v8656_v59, %v11003_v45 }
 0x857   : > { %7820 = vmatpush3.bf16.msra.mxu0 %v11770_v29  ;;  %v5121_v11 = vpop.xlane.xlu0 %5120 }
 0x858   : > { %7821 = vmatprep.subr.bf16.mxu0 %v11771_v38 }
 0x859   : > { %v5123_v63 = vpop.xlane.xlu1 %5122 }
 0x85a   : > { %v8658_v15 = vpop.eup %8657  ;;  %8663 = vrcp.f32 %v5123_v63 }
 0x85b   : > { %v8660_v50 = vpop.eup %8659  ;;  %7822 = vmatpush3.bf16.msra.mxu0 %v11771_v38  ;;  %v5292_v58 = vmul.f32 %v8658_v15, %v11773_v18 }
 0x85c   : > { %v8662_v49 = vpop.eup %8661  ;;  %7823 = vmatprep.subr.bf16.mxu0 %v11772_v7  ;;  %v5294_v53 = vmul.f32 %v8660_v50, %v11774_v34 }
 0x85d   : > { %v5293_v30 = vmul.f32 %v8662_v49, %v11015_v55 }
 0x85e   : > { %v5353_v4 = vpack.c.bf16 %v5295_v22, %v5294_v53 }
 0x85f   : > { %7824 = vmatpush3.bf16.msra.mxu0 %v11772_v7  ;;  %v5117_v41 = vpop.xlane.xlu0 %5116  ;;  %v5352_v10 = vpack.c.bf16 %v5293_v30, %v5292_v58  ;;  %v11775_v30 = vld [vmem:[#allocation27_spill] sm:$0xff] }
 0x860   : > { %8665 = vrcp.f32 %v5117_v41 }
 0x861   : > { %8667 = vrcp.f32 %v5121_v11  ;;  %7769 = vmatprep.mubr.bf16.mxu0 %v5352_v10  ;;  %v5119_v14 = vpop.xlane.xlu1 %5118 }
 0x862   : > { %8669 = vrcp.f32 %v5119_v14  ;;  %7770 = vmatmul.mubr.bf16.gmra.mrb[200].mxu0 %v5353_v4 }
 0x863   : > { %v4893_v62 = vpop.xlane.xlu0 %4892 }
 0x864   : > { %v4960_v45 = vsub.f32 %v10908_v40, %v4893_v62  ;;  %v8664_v38 = vpop.eup %8663 }
 0x865   : > { %v4895_v2 = vpop.xlane.xlu1 %4894  ;;  %v5299_v40 = vmul.f32 %v8664_v38, %v11031_v39 }
 0x866   : > { %v5084_v51 = vmul.f32 1.442695, %v4960_v45  ;;  %v4961_v55 = vsub.f32 %v10917_v5, %v4895_v2 }
 0x867   : > { %v5129_v54 = vpop.xlane.xlu0 %5128 }
 0x868   : > { %8671 = vpow2.f32 %v5084_v51  ;;  %v5086_v29 = vmul.f32 1.442695, %v4961_v55 }
 0x869   : > { %8673 = vrcp.f32 %v5129_v54  ;;  %v5131_v59 = vpop.xlane.xlu1 %5130 }
 0x86a   : > { %v8666_v15 = vpop.eup %8665  ;;  %8675 = vpow2.f32 %v5086_v29 }
 0x86b   : > { %v8668_v50 = vpop.eup %8667  ;;  %8677 = vrcp.f32 %v5131_v59  ;;  %v4897_v11 = vpop.xlane.xlu0 %4896  ;;  %v5296_v22 = vmul.f32 %v8666_v15, %v11042_v16  ;;  %v11776_v59 = vld [vmem:[#allocation35_spill] sm:$0xff] }
 0x86c   : > { %v8670_v49 = vpop.eup %8669  ;;  %v4962_v63 = vsub.f32 %v10906_v28, %v4897_v11  ;;  %v5298_v34 = vmul.f32 %v8668_v50, %v11775_v30 }
 0x86d   : > { %v4899_v7 = vpop.xlane.xlu1 %4898  ;;  %v5297_v5 = vmul.f32 %v8670_v49, %v11049_v61 }
 0x86e   : > { %v5088_v18 = vmul.f32 1.442695, %v4962_v63  ;;  %v4963_v58 = vsub.f32 %v10915_v42, %v4899_v7  ;;  %v5355_v4 = vpack.c.bf16 %v5299_v40, %v5298_v34 }
 0x86f   : > { %v5133_v53 = vpop.xlane.xlu0 %5132  ;;  %v5354_v41 = vpack.c.bf16 %v5297_v5, %v5296_v22  ;;  %v11778_v5 = vld [vmem:[#allocation39_spill] sm:$0xff] }
 0x870   : > { %8679 = vpow2.f32 %v5088_v18  ;;  %v5090_v10 = vmul.f32 1.442695, %v4963_v58 }
 0x871   : > { %8681 = vrcp.f32 %v5133_v53  ;;  %7773 = vmatprep.mubr.bf16.mxu0 %v5354_v41  ;;  %v5135_v28 = vpop.xlane.xlu1 %5134 }
 0x872   : > { %v11313_v14 = vpop.eup %8671  ;;  %8683 = vpow2.f32 %v5090_v10  ;;  %7774 = vmatmul.mubr.bf16.gmra.mrb[204].mxu0 %v5355_v4  ;;  %v11779_v10 = vld [vmem:[#allocation37_spill] sm:$0xff] }
 0x873   : > { %v8674_v39 = vpop.eup %8673  ;;  %8685 = vrcp.f32 %v5135_v28  ;;  %5212 = vadd.xlane.f32.xlu0 %v11313_v14  ;;  %v5137_v16 = vpop.xlane.xlu0 %5136 }
 0x874   : > { %v11316_v42 = vpop.eup %8675  ;;  %8687 = vrcp.f32 %v5137_v16  ;;  %v5302_v45 = vmul.f32 %v8674_v39, %v11066_v3  ;;  %v11777_v3 = vld [vmem:[#allocation33_spill] sm:$0xff] }
 0x875   : > { %v8678_v61 = vpop.eup %8677  ;;  %5214 = vadd.xlane.f32.xlu1 %v11316_v42  ;;  %v5139_v62 = vpop.xlane.xlu1 %5138 }
 0x876   : > { %v5303_v2 = vmul.f32 %v8678_v61, %v11073_v13  ;;  %8689 = vrcp.f32 %v5139_v62  ;;  %v11780_v62 = vld [vmem:[#allocation43_spill] sm:$0xff] }
 0x877   : > { %v5141_v51 = vpop.xlane.xlu0 %5140 }
 0x878   : > { %v5357_v55 = vpack.c.bf16 %v5303_v2, %v5302_v45  ;;  %8691 = vrcp.f32 %v5141_v51 }
 0x879   : > { %v5143_v54 = vpop.xlane.xlu1 %5142 }
 0x87a   : > { %v11321_v29 = vpop.eup %8679  ;;  %7794 = vmatmul.mubr.bf16.vlgmr.msra.gmra.mrb[0].mxu1 %v5357_v55  ;;  %8693 = vrcp.f32 %v5143_v54 }
 0x87b   : > { %v8682_v38 = vpop.eup %8681  ;;  %7842 = vmatpush3.bf16.msra.mxu1 %v11776_v59  ;;  %5216 = vadd.xlane.f32.xlu0 %v11321_v29  ;;  %v5145_v15 = vpop.xlane.xlu0 %5144 }
 0x87c   : > { %v11325_v50 = vpop.eup %8683  ;;  %7843 = vmatprep.subr.bf16.mxu1 %v11777_v3  ;;  %8695 = vrcp.f32 %v5145_v15  ;;  %v5304_v63 = vmul.f32 %v8682_v38, %v11090_v21  ;;  %v11781_v38 = vld [vmem:[#allocation41_spill] sm:$0xff] }
 0x87d   : > { %v8686_v13 = vpop.eup %8685  ;;  %5218 = vadd.xlane.f32.xlu1 %v11325_v50  ;;  %v5147_v11 = vpop.xlane.xlu1 %5146 }
 0x87e   : > { %v8688_v49 = vpop.eup %8687  ;;  %8697 = vrcp.f32 %v5147_v11  ;;  %v5305_v40 = vmul.f32 %v8686_v13, %v11097_v6 }
 0x87f   : > { %7844 = vmatpush3.bf16.msra.mxu1 %v11777_v3  ;;  %v5149_v7 = vpop.xlane.xlu0 %5148  ;;  %v5306_v58 = vmul.f32 %v8688_v49, %v11102_v44  ;;  %v11782_v49 = vld [vmem:[#allocation47_spill] sm:$0xff] }
 0x880   : > { %v8690_v22 = vpop.eup %8689  ;;  %7845 = vmatprep.subr.bf16.mxu1 %v11778_v5  ;;  %8699 = vrcp.f32 %v5149_v7  ;;  %v5358_v18 = vpack.c.bf16 %v5305_v40, %v5304_v63 }
 0x881   : > { %v5307_v30 = vmul.f32 %v8690_v22, %v11107_v46  ;;  %v5151_v34 = vpop.xlane.xlu1 %5150 }
 0x882   : > { %v8692_v53 = vpop.eup %8691  ;;  %7797 = vmatprep.mubr.bf16.mxu1 %v5358_v18  ;;  %8701 = vrcp.f32 %v5151_v34  ;;  %v11783_v18 = vld [vmem:[#allocation45_spill] sm:$0xff] }
 0x883   : > { %v5359_v41 = vpack.c.bf16 %v5307_v30, %v5306_v58  ;;  %7846 = vmatpush3.bf16.msra.mxu1 %v11778_v5  ;;  %v5153_v21 = vpop.xlane.xlu0 %5152  ;;  %v5308_v28 = vmul.f32 %v8692_v53, %v11114_v23 }
 0x884   : > { %v8694_v6 = vpop.eup %8693  ;;  %7847 = vmatprep.subr.bf16.mxu1 %v11779_v10  ;;  %8703 = vrcp.f32 %v5153_v21 }
 0x885   : > { %7798 = vmatmul.mubr.bf16.gmra.mrb[4].mxu1 %v5359_v41  ;;  %v5155_v4 = vpop.xlane.xlu1 %5154  ;;  %v5309_v44 = vmul.f32 %v8694_v6, %v11121_v17 }
 0x886   : > { %v8696_v39 = vpop.eup %8695  ;;  %8705 = vrcp.f32 %v5155_v4 }
 0x887   : > { %7848 = vmatpush3.bf16.msra.mxu1 %v11779_v10  ;;  %v5157_v46 = vpop.xlane.xlu0 %5156  ;;  %v5360_v16 = vpack.c.bf16 %v5309_v44, %v5308_v28  ;;  %v5310_v45 = vmul.f32 %v8696_v39, %v11126_v33  ;;  %v8252_v44 = vld [vmem:[%s11531_s13 + $0x8] sm:$0xff]  }
 0x888   : > { %v8698_v61 = vpop.eup %8697  ;;  %7849 = vmatprep.subr.bf16.mxu1 %v11780_v62  ;;  %8707 = vrcp.f32 %v5157_v46 }
 0x889   : > { %v5311_v2 = vmul.f32 %v8698_v61, %v11131_v0  ;;  %7801 = vmatprep.mubr.bf16.mxu1 %v5360_v16  ;;  %v5159_v51 = vpop.xlane.xlu1 %5158 }
 0x88a   : > { %v8700_v55 = vpop.eup %8699  ;;  %8709 = vrcp.f32 %v5159_v51 }
 0x88b   : > { %v5361_v23 = vpack.c.bf16 %v5311_v2, %v5310_v45  ;;  %7850 = vmatpush3.bf16.msra.mxu1 %v11780_v62  ;;  %v5161_v17 = vpop.xlane.xlu0 %5160  ;;  %v5312_v15 = vmul.f32 %v8700_v55, %v11137_v9 }
 0x88c   : > { %v8702_v54 = vpop.eup %8701  ;;  %7851 = vmatprep.subr.bf16.mxu1 %v11781_v38  ;;  %8711 = vrcp.f32 %v5161_v17 }
 0x88d   : > { %7802 = vmatmul.mubr.bf16.gmra.mrb[8].mxu1 %v5361_v23  ;;  %v5163_v59 = vpop.xlane.xlu1 %5162  ;;  %v5313_v33 = vmul.f32 %v8702_v54, %v11143_v25 }
 0x88e   : > { %v8704_v3 = vpop.eup %8703  ;;  %8713 = vrcp.f32 %v5163_v59 }
 0x88f   : > { %7852 = vmatpush3.bf16.msra.mxu1 %v11781_v38  ;;  %v5165_v0 = vpop.xlane.xlu0 %5164  ;;  %v5362_v13 = vpack.c.bf16 %v5313_v33, %v5312_v15  ;;  %v5314_v63 = vmul.f32 %v8704_v3, %v11148_v43 }
 0x890   : > { %v8706_v11 = vpop.eup %8705  ;;  %7853 = vmatprep.subr.bf16.mxu1 %v11782_v49  ;;  %8715 = vrcp.f32 %v5165_v0 }
 0x891   : > { %v5315_v40 = vmul.f32 %v8706_v11, %v11153_v27  ;;  %7805 = vmatprep.mubr.bf16.mxu1 %v5362_v13  ;;  %v5167_v7 = vpop.xlane.xlu1 %5166  ;;  %v8251_v27 = vld [vmem:[%s11531_s13] sm:$0xff]  }
 0x892   : > { %v8708_v22 = vpop.eup %8707  ;;  %8717 = vrcp.f32 %v5167_v7  ;;  %7873 = vmatprep.subr.bf16.mxu0 %v8251_v27 }
 0x893   : > { %v5363_v9 = vpack.c.bf16 %v5315_v40, %v5314_v63  ;;  %7854 = vmatpush3.bf16.msra.mxu1 %v11782_v49  ;;  %v5169_v25 = vpop.xlane.xlu0 %5168  ;;  %v5316_v30 = vmul.f32 %v8708_v22, %v11159_v24 }
 0x894   : > { %v8710_v5 = vpop.eup %8709  ;;  %7855 = vmatprep.subr.bf16.mxu1 %v11783_v18  ;;  %8719 = vrcp.f32 %v5169_v25 }
 0x895   : > { %7806 = vmatmul.mubr.bf16.gmra.mrb[12].mxu1 %v5363_v9  ;;  %v5171_v58 = vpop.xlane.xlu1 %5170  ;;  %v5317_v43 = vmul.f32 %v8710_v5, %v11165_v57 }
 0x896   : > { %v8712_v34 = vpop.eup %8711  ;;  %8721 = vrcp.f32 %v5171_v58 }
 0x897   : > { %7856 = vmatpush3.bf16.msra.mxu1 %v11783_v18  ;;  %v5173_v53 = vpop.xlane.xlu0 %5172  ;;  %v5364_v41 = vpack.c.bf16 %v5317_v43, %v5316_v30  ;;  %v5318_v6 = vmul.f32 %v8712_v34, %v11169_v20 }
 0x898   : > { %v8714_v21 = vpop.eup %8713  ;;  %8723 = vrcp.f32 %v5173_v53 }
 0x899   : > { %v5319_v10 = vmul.f32 %v8714_v21, %v11173_v60  ;;  %7825 = vmatprep.mubr.bf16.mxu0 %v5364_v41  ;;  %v5175_v24 = vpop.xlane.xlu1 %5174 }
 0x89a   : > { %v8716_v57 = vpop.eup %8715  ;;  %8725 = vrcp.f32 %v5175_v24 }
 0x89b   : > { %v5177_v4 = vpop.xlane.xlu0 %5176  ;;  %v5365_v28 = vpack.c.bf16 %v5319_v10, %v5318_v6  ;;  %v5320_v16 = vmul.f32 %v8716_v57, %v11177_v26  ;;  %v11785_v10 = vld [vmem:[#allocation30_spill] sm:$0xff] }
 0x89c   : > { %v8718_v39 = vpop.eup %8717  ;;  %8727 = vrcp.f32 %v5177_v4 }
 0x89d   : > { %7826 = vmatmul.mubr.bf16.vlgmr.msra.gmra.mrb[208].mxu0 %v5365_v28  ;;  %v5179_v46 = vpop.xlane.xlu1 %5178  ;;  %v5321_v20 = vmul.f32 %v8718_v39, %v11181_v36 }
 0x89e   : > { %v8720_v61 = vpop.eup %8719  ;;  %8729 = vrcp.f32 %v5179_v46  ;;  %7874 = vmatpush3.bf16.msra.mxu0 %v8251_v27 }
 0x89f   : > { %v5181_v60 = vpop.xlane.xlu0 %5180  ;;  %v5366_v62 = vpack.c.bf16 %v5321_v20, %v5320_v16  ;;  %7875 = vmatprep.subr.bf16.mxu0 %v8252_v44  ;;  %v5322_v51 = vmul.f32 %v8720_v61, %v11185_v19  ;;  %v11787_v16 = vld [vmem:[#allocation31_spill] sm:$0xff] }
 0x8a0   : > { %v8722_v45 = vpop.eup %8721  ;;  %8731 = vrcp.f32 %v5181_v60 }
 0x8a1   : > { %7829 = vmatprep.mubr.bf16.mxu0 %v5366_v62  ;;  %v5183_v2 = vpop.xlane.xlu1 %5182  ;;  %v5323_v55 = vmul.f32 %v8722_v45, %v11189_v35  ;;  %v11788_v45 = vld [vmem:[#allocation29_spill] sm:$0xff] }
 0x8a2   : > { %v8724_v23 = vpop.eup %8723  ;;  %8733 = vrcp.f32 %v5183_v2  ;;  %7876 = vmatpush3.bf16.msra.mxu0 %v8252_v44 }
 0x8a3   : > { %v5185_v26 = vpop.xlane.xlu0 %5184  ;;  %v5367_v17 = vpack.c.bf16 %v5323_v55, %v5322_v51  ;;  %v5324_v38 = vmul.f32 %v8724_v23, %v11194_v32  ;;  %v11789_v51 = vld [vmem:[#allocation19_spill] sm:$0xff] }
 0x8a4   : > { %v8726_v36 = vpop.eup %8725  ;;  %8735 = vrcp.f32 %v5185_v26 }
 0x8a5   : > { %7830 = vmatmul.mubr.bf16.gmra.mrb[212].mxu0 %v5367_v17  ;;  %v5187_v54 = vpop.xlane.xlu1 %5186  ;;  %v5325_v59 = vmul.f32 %v8726_v36, %v11199_v8  ;;  %v11790_v36 = vld [vmem:[#allocation17_spill] sm:$0xff] }
 0x8a6   : > { %v8728_v15 = vpop.eup %8727  ;;  %8737 = vrcp.f32 %v5187_v54 }
 0x8a7   : > { %v5189_v33 = vpop.xlane.xlu0 %5188  ;;  %v5368_v3 = vpack.c.bf16 %v5325_v59, %v5324_v38  ;;  %v5326_v0 = vmul.f32 %v8728_v15, %v11204_v31  ;;  %v11791_v38 = vld [vmem:[#allocation6_spill] sm:$0xff] }
 0x8a8   : > { %v8730_v19 = vpop.eup %8729  ;;  %8739 = vrcp.f32 %v5189_v33 }
 0x8a9   : > { %7833 = vmatprep.mubr.bf16.mxu0 %v5368_v3  ;;  %v5191_v35 = vpop.xlane.xlu1 %5190  ;;  %v5327_v13 = vmul.f32 %v8730_v19, %v11209_v48  ;;  %v11792_v19 = vld [vmem:[#allocation8_spill] sm:$0xff] }
 0x8aa   : > { %v8732_v11 = vpop.eup %8731  ;;  %8741 = vrcp.f32 %v5191_v35 }
 0x8ab   : > { %v5193_v49 = vpop.xlane.xlu0 %5192  ;;  %v5369_v63 = vpack.c.bf16 %v5327_v13, %v5326_v0  ;;  %v5328_v8 = vmul.f32 %v8732_v11, %v11214_v47  ;;  %v11793_v0 = vld [vmem:[#allocation7_spill] sm:$0xff] }
 0x8ac   : > { %v8734_v40 = vpop.eup %8733  ;;  %8743 = vrcp.f32 %v5193_v49  ;;  %v8253_v49 = vld [vmem:[%s11531_s13 + $0x10] sm:$0xff]  }
 0x8ad   : > { %7834 = vmatmul.mubr.bf16.gmra.mrb[216].mxu0 %v5369_v63  ;;  %v5195_v32 = vpop.xlane.xlu1 %5194  ;;  %v5329_v7 = vmul.f32 %v8734_v40, %v11219_v1  ;;  %7893 = vmatprep.subr.bf16.mxu0 %v8253_v49 }
 0x8ae   : > { %v8736_v22 = vpop.eup %8735  ;;  %8745 = vrcp.f32 %v5195_v32 }
 0x8af   : > { %v5197_v9 = vpop.xlane.xlu0 %5196  ;;  %v5370_v25 = vpack.c.bf16 %v5329_v7, %v5328_v8  ;;  %v5330_v48 = vmul.f32 %v8736_v22, %v11224_v52  ;;  %v11784_v52 = vld [vmem:[#allocation25_spill] sm:$0xff] }
 0x8b0   : > { %v8738_v5 = vpop.eup %8737  ;;  %8747 = vrcp.f32 %v5197_v9 }
 0x8b1   : > { %7837 = vmatprep.mubr.bf16.mxu0 %v5370_v25  ;;  %v5199_v31 = vpop.xlane.xlu1 %5198  ;;  %v5331_v18 = vmul.f32 %v8738_v5, %v11229_v56 }
 0x8b2   : > { %v8740_v58 = vpop.eup %8739  ;;  %8749 = vrcp.f32 %v5199_v31 }
 0x8b3   : > { %v5201_v30 = vpop.xlane.xlu0 %5200  ;;  %v5371_v43 = vpack.c.bf16 %v5331_v18, %v5330_v48  ;;  %v5332_v1 = vmul.f32 %v8740_v58, %v11234_v12 }
 0x8b4   : > { %v8742_v27 = vpop.eup %8741  ;;  %8751 = vrcp.f32 %v5201_v30 }
 0x8b5   : > { %7838 = vmatmul.mubr.bf16.gmra.mrb[220].mxu0 %v5371_v43  ;;  %v5203_v47 = vpop.xlane.xlu1 %5202  ;;  %v5333_v34 = vmul.f32 %v8742_v27, %v11239_v37  ;;  %v11786_v37 = vld [vmem:[#allocation28_spill] sm:$0xff] }
 0x8b6   : > { %v8744_v53 = vpop.eup %8743  ;;  %8753 = vrcp.f32 %v5203_v47 }
 0x8b7   : > { %v5205_v41 = vpop.xlane.xlu0 %5204  ;;  %v5372_v21 = vpack.c.bf16 %v5333_v34, %v5332_v1  ;;  %v5334_v56 = vmul.f32 %v8744_v53, %v11784_v52 }
 0x8b8   : > { %v8746_v6 = vpop.eup %8745  ;;  %8755 = vrcp.f32 %v5205_v41 }
 0x8b9   : > { %v5335_v24 = vmul.f32 %v8746_v6, %v11785_v10  ;;  %7857 = vmatprep.mubr.bf16.mxu1 %v5372_v21  ;;  %v5207_v57 = vpop.xlane.xlu1 %5206 }
 0x8ba   : > { %v8748_v4 = vpop.eup %8747  ;;  %8757 = vrcp.f32 %v5207_v57 }
 0x8bb   : > { %v5373_v28 = vpack.c.bf16 %v5335_v24, %v5334_v56  ;;  %v5209_v44 = vpop.xlane.xlu0 %5208  ;;  %v5336_v46 = vmul.f32 %v8748_v4, %v11786_v37 }
 0x8bc   : > { %v8750_v39 = vpop.eup %8749  ;;  %8759 = vrcp.f32 %v5209_v44 }
 0x8bd   : > { %7858 = vmatmul.mubr.bf16.vlgmr.msra.gmra.mrb[16].mxu1 %v5373_v28  ;;  %v5211_v12 = vpop.xlane.xlu1 %5210  ;;  %v5337_v20 = vmul.f32 %v8750_v39, %v11787_v16 }
 0x8be   : > { %v8752_v61 = vpop.eup %8751  ;;  %8761 = vrcp.f32 %v5211_v12 }
 0x8bf   : > { %v5374_v60 = vpack.c.bf16 %v5337_v20, %v5336_v46  ;;  %v5338_v2 = vmul.f32 %v8752_v61, %v11788_v45 }
 0x8c0   : > { %v8754_v62 = vpop.eup %8753 }
 0x8c1   : > { %v5339_v55 = vmul.f32 %v8754_v62, %v11789_v51  ;;  %7861 = vmatprep.mubr.bf16.mxu1 %v5374_v60  ;;  %v8256_v51 = vld [vmem:[%s11531_s13 + $0x28] sm:$0xff]  }
 0x8c2   : > { %v8756_v23 = vpop.eup %8755 }
 0x8c3   : > { %v5375_v26 = vpack.c.bf16 %v5339_v55, %v5338_v2  ;;  %v5340_v54 = vmul.f32 %v8756_v23, %v11790_v36  ;;  %v8257_v55 = vld [vmem:[%s11531_s13 + $0x30] sm:$0xff]  }
 0x8c4   : > { %v8758_v17 = vpop.eup %8757 }
 0x8c5   : > { %7862 = vmatmul.mubr.bf16.gmra.mrb[20].mxu1 %v5375_v26  ;;  %v5341_v59 = vmul.f32 %v8758_v17, %v11791_v38 }
 0x8c6   : > { %v8760_v15 = vpop.eup %8759 }
 0x8c7   : > { %v5376_v33 = vpack.c.bf16 %v5341_v59, %v5340_v54  ;;  %v5342_v35 = vmul.f32 %v8760_v15, %v11792_v19 }
 0x8c8   : > { %v8762_v3 = vpop.eup %8761 }
 0x8c9   : > { %v5343_v13 = vmul.f32 %v8762_v3, %v11793_v0  ;;  %7865 = vmatprep.mubr.bf16.mxu1 %v5376_v33 }
 0x8cb   : > { %v5377_v11 = vpack.c.bf16 %v5343_v13, %v5342_v35 }
 0x8cd   : > { %7866 = vmatmul.mubr.bf16.gmra.mrb[24].mxu1 %v5377_v11 }
 0x900   : > { %v5213_v63 = vpop.xlane.xlu0 %5212 }
 0x901   : > { %8763 = vrcp.f32 %v5213_v63 }
 0x902   : > { %v5215_v40 = vpop.xlane.xlu1 %5214 }
 0x903   : > { %8765 = vrcp.f32 %v5215_v40 }
 0x908   : > { %v5217_v32 = vpop.xlane.xlu0 %5216 }
 0x909   : > { %8767 = vrcp.f32 %v5217_v32 }
 0x90a   : > { %v5219_v8 = vpop.xlane.xlu1 %5218 }
 0x90b   : > { %v8764_v7 = vpop.eup %8763  ;;  %8769 = vrcp.f32 %v5219_v8 }
 0x90c   : > { %v5344_v9 = vmul.f32 %v8764_v7, %v11313_v14  ;;  %v8254_v14 = vld [vmem:[%s11531_s13 + $0x18] sm:$0xff]  }
 0x90d   : > { %v8766_v22 = vpop.eup %8765 }
 0x90e   : > { %v5345_v25 = vmul.f32 %v8766_v22, %v11316_v42  ;;  %v8255_v42 = vld [vmem:[%s11531_s13 + $0x20] sm:$0xff]  }
 0x910   : > { %v5378_v5 = vpack.c.bf16 %v5345_v25, %v5344_v9 }
 0x912   : > { %7869 = vmatprep.mubr.bf16.mxu1 %v5378_v5  ;;  %v8258_v5 = vld [vmem:[%s11531_s13 + $0x38] sm:$0xff]  }
 0x913   : > { %v8768_v31 = vpop.eup %8767 }
 0x914   : > { %v5346_v58 = vmul.f32 %v8768_v31, %v11321_v29 }
 0x915   : > { %v8770_v48 = vpop.eup %8769  ;;  %v7763_v18 = vpop.f32.mrb[192].mxu0 }
 0x916   : > { %v5347_v30 = vmul.f32 %v8770_v48, %v11325_v50  ;;  %v5446_v43 = vpop.f32.mrb[193].mxu0 }
 0x917   : > { %v7764_v27 = vpop.f32.mrb[194].mxu0 }
 0x918   : > { %v5379_v47 = vpack.c.bf16 %v5347_v30, %v5346_v58  ;;  %v5801_v1 = vpack.c.bf16 %v7764_v27, %v7763_v18  ;;  %v5449_v34 = vpop.f32.mrb[195].mxu0 }
 0x919   : > { %v5800_v53 = vpack.c.bf16 %v5449_v34, %v5446_v43 }
 0x91a   : > { %7870 = vmatmul.mubr.bf16.gmra.mrb[28].mxu1 %v5379_v47 }
 0x91b   : > { %7877 = vmatprep.mubr.msk.bf16.mxu0 %vm4191_vm0, %v5800_v53 }
 0x91c   : > { %7878 = vmatmul.mubr.msk.bf16.vlgmr.msra.gmra.mrb[224].mxu0 %vm4191_vm0, %v5801_v1 }
 0x91d   : > { %7894 = vmatpush3.bf16.msra.mxu0 %v8253_v49 }
 0x91e   : > { %7895 = vmatprep.subr.bf16.mxu0 %v8254_v14 }
 0x921   : > { %7896 = vmatpush3.bf16.msra.mxu0 %v8254_v14 }
 0x922   : > { %7913 = vmatprep.subr.bf16.mxu0 %v8255_v42 }
 0x925   : > { %v7767_v29 = vpop.f32.mrb[196].mxu0 }
 0x926   : > { %v5462_v50 = vpop.f32.mrb[197].mxu0 }
 0x927   : > { %v7768_v41 = vpop.f32.mrb[198].mxu0 }
 0x928   : > { %v5803_v21 = vpack.c.bf16 %v7768_v41, %v7767_v29  ;;  %v5465_v6 = vpop.f32.mrb[199].mxu0 }
 0x929   : > { %v5802_v52 = vpack.c.bf16 %v5465_v6, %v5462_v50 }
 0x92b   : > { %7881 = vmatprep.mubr.msk.bf16.mxu0 %vm4191_vm0, %v5802_v52 }
 0x92c   : > { %7882 = vmatmul.mubr.msk.bf16.gmra.mrb[228].mxu0 %vm4191_vm0, %v5803_v21 }
 0x935   : > { %v7771_v56 = vpop.f32.mrb[200].mxu0 }
 0x936   : > { %v5478_v10 = vpop.f32.mrb[201].mxu0 }
 0x937   : > { %v7772_v24 = vpop.f32.mrb[202].mxu0 }
 0x938   : > { %v5805_v57 = vpack.c.bf16 %v7772_v24, %v7771_v56  ;;  %v5481_v4 = vpop.f32.mrb[203].mxu0 }
 0x939   : > { %v5804_v28 = vpack.c.bf16 %v5481_v4, %v5478_v10 }
 0x93b   : > { %7885 = vmatprep.mubr.msk.bf16.mxu0 %vm4191_vm0, %v5804_v28 }
 0x93c   : > { %7886 = vmatmul.mubr.msk.bf16.gmra.mrb[232].mxu0 %vm4191_vm0, %v5805_v57 }
 0x945   : > { %v7775_v44 = vpop.f32.mrb[204].mxu0 }
 0x946   : > { %v5494_v39 = vpop.f32.mrb[205].mxu0 }
 0x947   : > { %v7776_v12 = vpop.f32.mrb[206].mxu0 }
 0x948   : > { %v5807_v37 = vpack.c.bf16 %v7776_v12, %v7775_v44  ;;  %v5497_v46 = vpop.f32.mrb[207].mxu0 }
 0x949   : > { %v5806_v16 = vpack.c.bf16 %v5497_v46, %v5494_v39 }
 0x94b   : > { %7889 = vmatprep.mubr.msk.bf16.mxu0 %vm4191_vm0, %v5806_v16 }
 0x94c   : > { %7890 = vmatmul.mubr.msk.bf16.gmra.mrb[236].mxu0 %vm4191_vm0, %v5807_v37 }
 0x94d   : > { %v7795_v20 = vpop.f32.mrb[0].mxu1 }
 0x94e   : > { %v5543_v61 = vpop.f32.mrb[1].mxu1 }
 0x94f   : > { %v7796_v60 = vpop.f32.mrb[2].mxu1 }
 0x950   : > { %v5809_v62 = vpack.c.bf16 %v7796_v60, %v7795_v20  ;;  %v5546_v45 = vpop.f32.mrb[3].mxu1 }
 0x951   : > { %v5808_v2 = vpack.c.bf16 %v5546_v45, %v5543_v61 }
 0x953   : > { %7897 = vmatprep.mubr.msk.bf16.mxu0 %vm4191_vm0, %v5808_v2 }
 0x954   : > { %7898 = vmatmul.mubr.msk.bf16.vlgmr.msra.gmra.mrb[224].mxu0 %vm4191_vm0, %v5809_v62 }
 0x955   : > { %7914 = vmatpush3.bf16.msra.mxu0 %v8255_v42 }
 0x956   : > { %7915 = vmatprep.subr.bf16.mxu0 %v8256_v51 }
 0x958   : > { %v7799_v23 = vpop.f32.mrb[4].mxu1 }
 0x959   : > { %v5559_v26 = vpop.f32.mrb[5].mxu1  ;;  %7916 = vmatpush3.bf16.msra.mxu0 %v8256_v51 }
 0x95a   : > { %v7800_v17 = vpop.f32.mrb[6].mxu1  ;;  %7933 = vmatprep.subr.bf16.mxu0 %v8257_v55 }
 0x95b   : > { %v5811_v36 = vpack.c.bf16 %v7800_v17, %v7799_v23  ;;  %v5562_v54 = vpop.f32.mrb[7].mxu1 }
 0x95c   : > { %v5810_v38 = vpack.c.bf16 %v5562_v54, %v5559_v26 }
 0x95e   : > { %7901 = vmatprep.mubr.msk.bf16.mxu0 %vm4191_vm0, %v5810_v38 }
 0x95f   : > { %7902 = vmatmul.mubr.msk.bf16.gmra.mrb[228].mxu0 %vm4191_vm0, %v5811_v36  ;;  %v6800_v36 = vld [vmem:[%s11532_s14] ss:$0 sm:$0xff] }
 0x960   : > { %v7803_v59 = vpop.f32.mrb[8].mxu1 }
 0x961   : > { %v5575_v15 = vpop.f32.mrb[9].mxu1 }
 0x962   : > { %v7804_v33 = vpop.f32.mrb[10].mxu1 }
 0x963   : > { %v5813_v3 = vpack.c.bf16 %v7804_v33, %v7803_v59  ;;  %v5578_v19 = vpop.f32.mrb[11].mxu1 }
 0x964   : > { %v5812_v35 = vpack.c.bf16 %v5578_v19, %v5575_v15 }
 0x966   : > { %7905 = vmatprep.mubr.msk.bf16.mxu0 %vm4191_vm0, %v5812_v35 }
 0x967   : > { %7906 = vmatmul.mubr.msk.bf16.gmra.mrb[232].mxu0 %vm4191_vm0, %v5813_v3 }
 0x968   : > { %v7807_v0 = vpop.f32.mrb[12].mxu1 }
 0x969   : > { %v5591_v13 = vpop.f32.mrb[13].mxu1 }
 0x96a   : > { %v7808_v11 = vpop.f32.mrb[14].mxu1 }
 0x96b   : > { %v5815_v49 = vpack.c.bf16 %v7808_v11, %v7807_v0  ;;  %v5594_v63 = vpop.f32.mrb[15].mxu1 }
 0x96c   : > { %v5814_v40 = vpack.c.bf16 %v5594_v63, %v5591_v13 }
 0x96e   : > { %7909 = vmatprep.mubr.msk.bf16.mxu0 %vm4191_vm0, %v5814_v40 }
 0x96f   : > { %7910 = vmatmul.mubr.msk.bf16.gmra.mrb[236].mxu0 %vm4191_vm0, %v5815_v49 }
 0x970   : > { %v7827_v32 = vpop.f32.mrb[208].mxu0 }
 0x971   : > { %v5640_v8 = vpop.f32.mrb[209].mxu0 }
 0x972   : > { %v7828_v7 = vpop.f32.mrb[210].mxu0 }
 0x973   : > { %v5817_v22 = vpack.c.bf16 %v7828_v7, %v7827_v32  ;;  %v5643_v9 = vpop.f32.mrb[211].mxu0 }
 0x974   : > { %v5816_v25 = vpack.c.bf16 %v5643_v9, %v5640_v8 }
 0x976   : > { %7917 = vmatprep.mubr.msk.bf16.mxu0 %vm4191_vm0, %v5816_v25 }
 0x977   : > { %7918 = vmatmul.mubr.msk.bf16.vlgmr.msra.gmra.mrb[224].mxu0 %vm4191_vm0, %v5817_v22 }
 0x978   : > { %v7831_v31 = vpop.f32.mrb[212].mxu0  ;;  %7934 = vmatpush3.bf16.msra.mxu0 %v8257_v55 }
 0x979   : > { %v5656_v48 = vpop.f32.mrb[213].mxu0  ;;  %7935 = vmatprep.subr.bf16.mxu0 %v8258_v5 }
 0x97a   : > { %v7832_v18 = vpop.f32.mrb[214].mxu0 }
 0x97b   : > { %v5819_v58 = vpack.c.bf16 %v7832_v18, %v7831_v31  ;;  %v5659_v30 = vpop.f32.mrb[215].mxu0 }
 0x97c   : > { %v5818_v43 = vpack.c.bf16 %v5659_v30, %v5656_v48  ;;  %7936 = vmatpush3.bf16.msra.mxu0 %v8258_v5 }
 0x97e   : > { %7921 = vmatprep.mubr.msk.bf16.mxu0 %vm4191_vm0, %v5818_v43 }
 0x97f   : > { %7922 = vmatmul.mubr.msk.bf16.gmra.mrb[228].mxu0 %vm4191_vm0, %v5819_v58 }
 0x980   : > { %v7835_v27 = vpop.f32.mrb[216].mxu0 }
 0x981   : > { %v5672_v47 = vpop.f32.mrb[217].mxu0 }
 0x982   : > { %v7836_v1 = vpop.f32.mrb[218].mxu0 }
 0x983   : > { %v5821_v34 = vpack.c.bf16 %v7836_v1, %v7835_v27  ;;  %v5675_v53 = vpop.f32.mrb[219].mxu0 }
 0x984   : > { %v5820_v14 = vpack.c.bf16 %v5675_v53, %v5672_v47 }
 0x986   : > { %7925 = vmatprep.mubr.msk.bf16.mxu0 %vm4191_vm0, %v5820_v14 }
 0x987   : > { %7926 = vmatmul.mubr.msk.bf16.gmra.mrb[232].mxu0 %vm4191_vm0, %v5821_v34 }
 0x988   : > { %v7839_v42 = vpop.f32.mrb[220].mxu0 }
 0x989   : > { %v5688_v29 = vpop.f32.mrb[221].mxu0 }
 0x98a   : > { %v7840_v50 = vpop.f32.mrb[222].mxu0 }
 0x98b   : > { %v5823_v41 = vpack.c.bf16 %v7840_v50, %v7839_v42  ;;  %v5691_v21 = vpop.f32.mrb[223].mxu0 }
 0x98c   : > { %v5822_v6 = vpack.c.bf16 %v5691_v21, %v5688_v29 }
 0x98e   : > { %7929 = vmatprep.mubr.msk.bf16.mxu0 %vm4191_vm0, %v5822_v6 }
 0x98f   : > { %7930 = vmatmul.mubr.msk.bf16.gmra.mrb[236].mxu0 %vm4191_vm0, %v5823_v41 }
 0x990   : > { %v7859_v52 = vpop.f32.mrb[16].mxu1 }
 0x991   : > { %v5737_v56 = vpop.f32.mrb[17].mxu1 }
 0x992   : > { %v7860_v10 = vpop.f32.mrb[18].mxu1 }
 0x993   : > { %v5825_v24 = vpack.c.bf16 %v7860_v10, %v7859_v52  ;;  %v5740_v57 = vpop.f32.mrb[19].mxu1 }
 0x994   : > { %v5824_v4 = vpack.c.bf16 %v5740_v57, %v5737_v56 }
 0x996   : > { %7937 = vmatprep.mubr.msk.bf16.mxu0 %vm4191_vm0, %v5824_v4 }
 0x997   : > { %7938 = vmatmul.mubr.msk.bf16.vlgmr.msra.gmra.mrb[224].mxu0 %vm4191_vm0, %v5825_v24 }
 0x998   : > { %v7863_v28 = vpop.f32.mrb[20].mxu1 }
 0x999   : > { %v5753_v44 = vpop.f32.mrb[21].mxu1 }
 0x99a   : > { %v7864_v39 = vpop.f32.mrb[22].mxu1 }
 0x99b   : > { %v5827_v12 = vpack.c.bf16 %v7864_v39, %v7863_v28  ;;  %v5756_v37 = vpop.f32.mrb[23].mxu1 }
 0x99c   : > { %v5826_v46 = vpack.c.bf16 %v5756_v37, %v5753_v44 }
 0x99e   : > { %7941 = vmatprep.mubr.msk.bf16.mxu0 %vm4191_vm0, %v5826_v46 }
 0x99f   : > { %7942 = vmatmul.mubr.msk.bf16.gmra.mrb[228].mxu0 %vm4191_vm0, %v5827_v12 }
 0x9a0   : > { %v7867_v16 = vpop.f32.mrb[24].mxu1 }
 0x9a1   : > { %v5769_v20 = vpop.f32.mrb[25].mxu1 }
 0x9a2   : > { %v7868_v61 = vpop.f32.mrb[26].mxu1 }
 0x9a3   : > { %v5829_v60 = vpack.c.bf16 %v7868_v61, %v7867_v16  ;;  %v5772_v62 = vpop.f32.mrb[27].mxu1 }
 0x9a4   : > { %v5828_v45 = vpack.c.bf16 %v5772_v62, %v5769_v20 }
 0x9a6   : > { %7945 = vmatprep.mubr.msk.bf16.mxu0 %vm4191_vm0, %v5828_v45 }
 0x9a7   : > { %7946 = vmatmul.mubr.msk.bf16.gmra.mrb[232].mxu0 %vm4191_vm0, %v5829_v60 }
 0x9ed   : > { %v7871_v2 = vpop.f32.mrb[28].mxu1 }
 0x9ee   : > { %v5785_v51 = vpop.f32.mrb[29].mxu1 }
 0x9ef   : > { %v7872_v55 = vpop.f32.mrb[30].mxu1 }
 0x9f0   : > { %v5831_v23 = vpack.c.bf16 %v7872_v55, %v7871_v2  ;;  %v5788_v26 = vpop.f32.mrb[31].mxu1 }
 0x9f1   : > { %v5830_v17 = vpack.c.bf16 %v5788_v26, %v5785_v51 }
 0x9f3   : > { %7949 = vmatprep.mubr.msk.bf16.mxu0 %vm4191_vm0, %v5830_v17 }
 0x9f4   : > { %7950 = vmatmul.mubr.msk.bf16.gmra.mrb[236].mxu0 %vm4191_vm0, %v5831_v23 }
 0xa6a   : > { %v7939_v54 = vpop.f32.mrb[224].mxu0 }
 0xa6b   : > { %v6437_v38 = vadd.f32 %v7939_v54, %v6800_v36  ;;  %v6317_v59 = vpop.f32.mrb[225].mxu0 }
 0xa6c   : > { %v6435_v15 = vadd.f32 %v6800_v36, %v6317_v59  ;;  %v7940_v33 = vpop.f32.mrb[226].mxu0 }
 0xa6d   : > { %6453 = vst [vmem:[%s11448_s27 + $0x10] sm:$0xff] %v6437_v38  ;;  %v6438_v3 = vadd.f32 %v7940_v33, %v6800_v36  ;;  %v6320_v19 = vpop.f32.mrb[227].mxu0 }
 0xa6e   : > { %6451 = vst [vmem:[%s11448_s27] sm:$0xff] %v6435_v15  ;;  %v6436_v35 = vadd.f32 %v6800_v36, %v6320_v19 }
 0xa6f   : > { %6454 = vst [vmem:[%s11448_s27 + $0x18] sm:$0xff] %v6438_v3 }
 0xa70   : > { %6452 = vst [vmem:[%s11448_s27 + $0x8] sm:$0xff] %v6436_v35 }
 0xa72   : > { %v7943_v0 = vpop.f32.mrb[228].mxu0 }
 0xa73   : > { %v6441_v13 = vadd.f32 %v7943_v0, %v6800_v36  ;;  %v6333_v11 = vpop.f32.mrb[229].mxu0 }
 0xa74   : > { %v6439_v49 = vadd.f32 %v6800_v36, %v6333_v11  ;;  %v7944_v63 = vpop.f32.mrb[230].mxu0 }
 0xa75   : > { %6457 = vst [vmem:[%s11448_s27 + $0x30] sm:$0xff] %v6441_v13  ;;  %v6442_v40 = vadd.f32 %v7944_v63, %v6800_v36  ;;  %v6336_v32 = vpop.f32.mrb[231].mxu0 }
 0xa76   : > { %6455 = vst [vmem:[%s11448_s27 + $0x20] sm:$0xff] %v6439_v49  ;;  %v6440_v8 = vadd.f32 %v6800_v36, %v6336_v32 }
 0xa77   : > { %6458 = vst [vmem:[%s11448_s27 + $0x38] sm:$0xff] %v6442_v40 }
 0xa78   : > { %6456 = vst [vmem:[%s11448_s27 + $0x28] sm:$0xff] %v6440_v8 }
 0xa7a   : > { %v7947_v7 = vpop.f32.mrb[232].mxu0 }
 0xa7b   : > { %v6445_v22 = vadd.f32 %v7947_v7, %v6800_v36  ;;  %v6349_v9 = vpop.f32.mrb[233].mxu0 }
 0xa7c   : > { %v6443_v25 = vadd.f32 %v6800_v36, %v6349_v9  ;;  %v7948_v5 = vpop.f32.mrb[234].mxu0 }
 0xa7d   : > { %6461 = vst [vmem:[%s11448_s27 + $0x50] sm:$0xff] %v6445_v22  ;;  %v6446_v31 = vadd.f32 %v7948_v5, %v6800_v36  ;;  %v6352_v48 = vpop.f32.mrb[235].mxu0 }
 0xa7e   : > { %6459 = vst [vmem:[%s11448_s27 + $0x40] sm:$0xff] %v6443_v25  ;;  %v6444_v18 = vadd.f32 %v6800_v36, %v6352_v48 }
 0xa7f   : > { %6462 = vst [vmem:[%s11448_s27 + $0x58] sm:$0xff] %v6446_v31 }
 0xa80   : > { %6460 = vst [vmem:[%s11448_s27 + $0x48] sm:$0xff] %v6444_v18 }
 0xac7   : > { %v7951_v58 = vpop.f32.mrb[236].mxu0 }
 0xac8   : > { %v6449_v30 = vadd.f32 %v7951_v58, %v6800_v36  ;;  %v6365_v43 = vpop.f32.mrb[237].mxu0 }
 0xac9   : > { %v6447_v27 = vadd.f32 %v6800_v36, %v6365_v43  ;;  %v7952_v47 = vpop.f32.mrb[238].mxu0 }
 0xaca   : > { %6465 = vst [vmem:[%s11448_s27 + $0x70] sm:$0xff] %v6449_v30  ;;  %v6450_v1 = vadd.f32 %v7952_v47, %v6800_v36  ;;  %v6368_v34 = vpop.f32.mrb[239].mxu0 }
 0xacb   : > { %6463 = vst [vmem:[%s11448_s27 + $0x60] sm:$0xff] %v6447_v27  ;;  %v6448_v53 = vadd.f32 %v6800_v36, %v6368_v34 }
 0xacc   : > { %6466 = vst [vmem:[%s11448_s27 + $0x78] sm:$0xff] %v6450_v1 }
 0xacd   : > { %6464 = vst [vmem:[%s11448_s27 + $0x68] sm:$0xff] %v6448_v53 }
 0xace   : > { %8784 = shalt.err (!%p8781_p3)
}
 0xacf   : > { %s8785_s1 = scalar_lea.hbm %s11468_s23, 2048  ;;  %s8789_s17 = scalar_lea.hbm %s11533_s15, 4096 }
 0xad0   : > { %p8786_p4 = scmp.ne.s32.totalorder %s11468_s23, %s8785_s1  ;;  %p8790_p9 = scmp.lt.u32.totalorder %s11468_s23, %s11533_s15 }
 0xad1   : > { %p8791_p10 = scmp.lt.u32.totalorder %s8789_s17, %s8785_s1  ;;  %p8793_p12 = scmp.lt.u32.totalorder %s8785_s1, %s11468_s23 }
 0xad2   : > { %p8787_p7 = pnand %p8786_p4, %p8957_p5 }
 0xad3   : > { %p8792_p11 = por %p8791_p10, %p8790_p9 }
 0xad4   : > { %p8788_p8 = pneg %p8787_p7 }
 0xad5   : > { %p8794_p13 = por %p8793_p12, %p8792_p11 }
 0xad7   : > { %p8795_p0 = pnand %p8794_p13, %p8788_p8 }
 0xad9   : > { %8798 = shalt.err (!%p8795_p0)
}
 0xada   : > { %s8837_s16 = smov 128   ;;  %s8838_s30 = smov 8  }
 0xadb   : > { %8033 = dma.vmem_to_hbm [thread:$0]  (%p8957_p5), %s11470_s0, 2048, %s11468_s23, %s11477_s22, %s8837_s16, %s8837_s16, %s8838_s30  }
 0xadc PF: > { %p8039_p1 = scmp.ge.s32.totalorder %s8833_s21, 2  ;;  %s6496_s27 = sand.u32 1, %s8821_s18  }
 0xadd   : > { %s6497_s1 = scalar_lea.sflag [#allocation3], %s6496_s27 }
 0xade   : > { %p8036_p2 = pnand %p8039_p1, %p8961_p6 }
 0xae0   : > { %8816 = dma.done.wait (!%p8036_p2), %s6497_s1, 2048  }
 0xae1   : > { %8818 = vsyncadd (!%p8036_p2), %s6497_s1, 4294965248  ;;  %s11794_s2 = sld [smem:[#allocation5_spill]]  ;;  %p25_p3 = scmp.ge.s32.totalorder %s8944_s24, 4  }
 0xae2   : > { %s11795_s18 = smov %s8825_s19  ;;  %s11796_s19 = smov %s8829_s20 }
 0xae3   : > { %s11798_s21 = smov %s8944_s24  ;;  %27 = sbr.rel (!%p25_p3) target bundleno = 7 (0x7), region = 118 }
 0xae7   : > { %s11797_s20 = smov %s11794_s2 }
 0xaea   :  { %6502 = vsyncpa [#allocation3], 1 }
 0xaeb   :  { %6504 = vsyncpa [#allocation3 + $0x1], 1 }

</bundles_post_ra>
